<compile_context>
chip_gen: v7x
topology: tpu7x:2x2x1
jax: 0.10.0
libtpu: 0.0.40
codegen_flags: <defaults>
</compile_context>

<pallas_src>
import numpy as np
import jax
import jax.numpy as jnp
from jax import lax
from jax.experimental import pallas as pl
from jax.experimental.pallas import tpu as pltpu


# --------------------------- architecture constants -------------------------
# Fixed by the PyTorch module: 1x32x32 input.
H = W = 32
OH1 = 30                         # conv1 output height/width (valid, 3x3)
L1 = (OH1 - 1) * W + OH1         # 958: conv1 output length on the 32-wide grid
LM1 = L1 - 33                    # 925: pool1 window-max length (offsets 0,1,32,33)
L2 = LM1 - 66                    # 859: conv2 output length, stretched grid (offsets 64i+2j)
LM2 = L2 - 66                    # 793: pool2 window-max length (offsets 0,2,64,66)


# ------------------------------ fused kernel --------------------------------

def _simple_nn_kernel(x_ref, w1e_ref, b1_ref, w2e_ref, b2_ref, tgt_ref,
                      fc1w_ref, fc1b_ref, fc2w_ref, fc2b_ref, o_ref):
    f32 = jnp.float32
    B = x_ref.shape[0]

    # ---- conv1 (1->6, 3x3) + bias + ReLU -----------------------------------
    # rows = (out_channel, batch), lanes = flattened 32-wide spatial grid.
    acc1 = None
    t = 0
    for i in range(3):
        for j in range(3):
            off = 32 * i + j                                   # tap lane offset
            part = jnp.dot(w1e_ref[t], x_ref[:, off:off + L1],
                           preferred_element_type=f32)         # (6B, 958)
            acc1 = part if acc1 is None else acc1 + part
            t += 1
    c1 = jnp.maximum(acc1 + b1_ref[...], 0.0)                  # (6B, 958)

    # ---- maxpool1: 2x2 window max; stride-2 folded into conv2's offsets ----
    m1 = jnp.maximum(jnp.maximum(c1[:, 0:LM1], c1[:, 1:LM1 + 1]),
                     jnp.maximum(c1[:, 32:LM1 + 32], c1[:, 33:LM1 + 33]))  # (6B, 925)

    # ---- conv2 (6->16, 2x2) + bias + ReLU on the stride-2 (stretched) grid --
    acc2 = None
    t = 0
    for i in range(2):
        for j in range(2):
            off = 64 * i + 2 * j                               # stretched tap offset
            part = jnp.dot(w2e_ref[t], m1[:, off:off + L2],
                           preferred_element_type=f32)         # (16B, 859)
            acc2 = part if acc2 is None else acc2 + part
            t += 1
    c2 = jnp.maximum(acc2 + b2_ref[...], 0.0)                  # (16B, 859)

    # ---- maxpool2: 2x2 window max, stride-2x2 again folded into offsets ----
    m2 = jnp.maximum(jnp.maximum(c2[:, 0:LM2], c2[:, 2:LM2 + 2]),
                     jnp.maximum(c2[:, 64:LM2 + 64], c2[:, 66:LM2 + 66]))  # (16B, 793)

    # ---- gather the 7x7 pooled positions per row via a 0/1 selection matmul -
    lane = lax.broadcasted_iota(jnp.int32, (LM2, 49), 0)
    sel = jnp.where(lane == tgt_ref[...], 1.0, 0.0)            # (793, 49) f32
    compact = jnp.dot(m2, sel, preferred_element_type=f32)     # (16B, 49)

    # ---- fc1 (784 -> 120): one (B,49)@(49,120) block per conv2 channel ------
    h = None
    for c in range(16):
        part = jnp.dot(compact[c * B:(c + 1) * B, :],
                       fc1w_ref[c * 49:(c + 1) * 49, :],
                       preferred_element_type=f32)             # (B, 120)
        h = part if h is None else h + part
    h = h + fc1b_ref[...]                                      # (B, 120)  (no ReLU, as in the module)

    # ---- fc2 (120 -> 10) ----------------------------------------------------
    out = jnp.dot(h, fc2w_ref[...], preferred_element_type=f32) + fc2b_ref[...]
    o_ref[...] = out.astype(o_ref.dtype)


# --------------------- host-side one-time parameter prep --------------------

def prepare_params(params, batch_size):
    """Re-arrange PyTorch-layout parameters into the kernel's layouts.
    Call ONCE outside jit (no per-call transposes / HBM copies)."""
    B = batch_size
    eye = jnp.eye(B, dtype=jnp.float32)
    w1, w2 = params["w1"], params["w2"]        # (6,1,3,3), (16,6,2,2)

    # conv taps expanded with kron(., I_B): rows/cols indexed (channel, batch)
    w1e = jnp.stack([jnp.kron(w1[:, 0, i, j][:, None], eye)
                     for i in range(3) for j in range(3)])     # (9, 6B, B)
    w2e = jnp.stack([jnp.kron(w2[:, :, i, j], eye)
                     for i in range(2) for j in range(2)])     # (4, 16B, 6B)
    b1r = jnp.repeat(params["b1"], B).reshape(6 * B, 1)
    b2r = jnp.repeat(params["b2"], B).reshape(16 * B, 1)

    # stretched-grid lane index of pooled position (h, w): 128*h + 4*w
    k = np.arange(49)
    tgt = (128 * (k // 7) + 4 * (k % 7)).astype(np.int32).reshape(1, 49)

    return {
        "w1e": w1e.astype(jnp.float32),
        "b1r": b1r.astype(jnp.float32),
        "w2e": w2e.astype(jnp.float32),
        "b2r": b2r.astype(jnp.float32),
        "sel_tgt": jnp.asarray(tgt),
        "fc1_wT": params["fc1_w"].T,           # (784, 120); rows already (c, h, w)
        "fc1_b2d": params["fc1_b"].reshape(1, 120),
        "fc2_wT": params["fc2_w"].T,           # (120, 10)
        "fc2_b2d": params["fc2_b"].reshape(1, 10),
    }


# --------------------------------- wrapper ----------------------------------

@jax.jit
def simple_nn_forward(x, prep):
    B = x.shape[0]
    x2d = x.reshape(B, H * W)                  # (B,1,32,32) -> (B,1024), free
    vmem = pl.BlockSpec(memory_space=pltpu.MemorySpace.VMEM)
    return pl.pallas_call(
        _simple_nn_kernel,
        out_shape=jax.ShapeDtypeStruct((B, 10), jnp.float32),
        in_specs=[vmem] * 10,
        out_specs=vmem,
    )(x2d, prep["w1e"], prep["b1r"], prep["w2e"], prep["b2r"], prep["sel_tgt"],
      prep["fc1_wT"], prep["fc1_b2d"], prep["fc2_wT"], prep["fc2_b2d"])


# --------------------------- pure-JAX reference ------------------------------

def reference_forward(x, params):
    hp = lax.Precision.HIGHEST
    dn = ("NCHW", "OIHW", "NCHW")
    y = lax.conv_general_dilated(x, params["w1"], (1, 1), "VALID",
                                 dimension_numbers=dn, precision=hp)
    y = jnp.maximum(y + params["b1"].reshape(1, -1, 1, 1), 0.0)
    y = lax.reduce_window(y, -jnp.inf, lax.max, (1, 1, 2, 2), (1, 1, 2, 2), "VALID")
    y = lax.conv_general_dilated(y, params["w2"], (1, 1), "VALID",
                                 dimension_numbers=dn, precision=hp)
    y = jnp.maximum(y + params["b2"].reshape(1, -1, 1, 1), 0.0)
    y = lax.reduce_window(y, -jnp.inf, lax.max, (1, 1, 2, 2), (1, 1, 2, 2), "VALID")
    y = y.reshape(y.shape[0], -1)
    y = jnp.dot(y, params["fc1_w"].T, precision=hp) + params["fc1_b"]
    y = jnp.dot(y, params["fc2_w"].T, precision=hp) + params["fc2_b"]
    return y


# ----------------------------------- main ------------------------------------

if __name__ == "__main__":
    key = jax.random.PRNGKey(0)
    kx, k1, k2, k3, k4, k5, k6, k7, k8 = jax.random.split(key, 9)

    # fc1 expects 16*7*7 features -> input must be (B, 1, 32, 32).
    B = 2
    x = jax.random.normal(kx, (B, 1, 32, 32), dtype=jnp.float32)

    params = {
        "w1": 0.1 * jax.random.normal(k1, (6, 1, 3, 3), dtype=jnp.float32),
        "b1": 0.1 * jax.random.normal(k2, (6,), dtype=jnp.float32),
        "w2": 0.1 * jax.random.normal(k3, (16, 6, 2, 2), dtype=jnp.float32),
        "b2": 0.1 * jax.random.normal(k4, (16,), dtype=jnp.float32),
        "fc1_w": 0.1 * jax.random.normal(k5, (120, 16 * 7 * 7), dtype=jnp.float32),
        "fc1_b": 0.1 * jax.random.normal(k6, (120,), dtype=jnp.float32),
        "fc2_w": 0.1 * jax.random.normal(k7, (10, 120), dtype=jnp.float32),
        "fc2_b": 0.1 * jax.random.normal(k8, (10,), dtype=jnp.float32),
    }

    prep = prepare_params(params, B)           # one-time, outside jit

    out = jax.block_until_ready(simple_nn_forward(x, prep))
    assert out.shape == (B, 10), out.shape

    ref = jax.block_until_ready(reference_forward(x, params))
    # Kernel matmuls use default MXU precision (no HIGHEST), so compare loosely.
    np.testing.assert_allclose(np.asarray(out), np.asarray(ref),
                               rtol=2e-2, atol=2e-2)

    print("KERNEL_OK")
</pallas_src>

<mosaic_0001>
module attributes {stable_mosaic.version = 11 : i64} {
  func.func @_simple_nn_kernel(%arg0: memref<2x1024xf32, #tpu.memory_space<vmem>>, %arg1: memref<9x12x2xf32, #tpu.memory_space<vmem>>, %arg2: memref<12x1xf32, #tpu.memory_space<vmem>>, %arg3: memref<4x32x12xf32, #tpu.memory_space<vmem>>, %arg4: memref<32x1xf32, #tpu.memory_space<vmem>>, %arg5: memref<1x49xi32, #tpu.memory_space<vmem>>, %arg6: memref<784x120xf32, #tpu.memory_space<vmem>>, %arg7: memref<1x120xf32, #tpu.memory_space<vmem>>, %arg8: memref<120x10xf32, #tpu.memory_space<vmem>>, %arg9: memref<1x10xf32, #tpu.memory_space<vmem>>, %arg10: memref<2x10xf32, #tpu.memory_space<vmem>>) attributes {dimension_semantics = [], scalar_prefetch = 0 : i64, scratch_operands = 0 : i64, tpu.core_type = #tpu.core_type<tc>} {
    %c0 = arith.constant 0 : index
    %c0_0 = arith.constant 0 : index
    %c0_1 = arith.constant 0 : index
    %0 = vector.load %arg1[%c0, %c0_0, %c0_1] : memref<9x12x2xf32, #tpu.memory_space<vmem>>, vector<1x12x2xf32>
    %1 = vector.shape_cast %0 : vector<1x12x2xf32> to vector<12x2xf32>
    %c0_2 = arith.constant 0 : index
    %c0_3 = arith.constant 0 : index
    %2 = vector.load %arg0[%c0_2, %c0_3] : memref<2x1024xf32, #tpu.memory_space<vmem>>, vector<2x958xf32>
    %cst = arith.constant dense<0.000000e+00> : vector<12x958xf32>
    %3 = tpu.matmul %1, %2, %cst {dimension_numbers = #tpu.dot_dimension_numbers<[1], [0], [0], [1], [0, 0, 1, 1], [], []>} : vector<12x2xf32>, vector<2x958xf32>, vector<12x958xf32> -> vector<12x958xf32>
    %c1 = arith.constant 1 : index
    %c0_4 = arith.constant 0 : index
    %c0_5 = arith.constant 0 : index
    %4 = vector.load %arg1[%c1, %c0_4, %c0_5] : memref<9x12x2xf32, #tpu.memory_space<vmem>>, vector<1x12x2xf32>
    %5 = vector.shape_cast %4 : vector<1x12x2xf32> to vector<12x2xf32>
    %c0_6 = arith.constant 0 : index
    %c1_7 = arith.constant 1 : index
    %6 = vector.load %arg0[%c0_6, %c1_7] : memref<2x1024xf32, #tpu.memory_space<vmem>>, vector<2x958xf32>
    %cst_8 = arith.constant dense<0.000000e+00> : vector<12x958xf32>
    %7 = tpu.matmul %5, %6, %cst_8 {dimension_numbers = #tpu.dot_dimension_numbers<[1], [0], [0], [1], [0, 0, 1, 1], [], []>} : vector<12x2xf32>, vector<2x958xf32>, vector<12x958xf32> -> vector<12x958xf32>
    %8 = arith.addf %3, %7 : vector<12x958xf32>
    %c2 = arith.constant 2 : index
    %c0_9 = arith.constant 0 : index
    %c0_10 = arith.constant 0 : index
    %9 = vector.load %arg1[%c2, %c0_9, %c0_10] : memref<9x12x2xf32, #tpu.memory_space<vmem>>, vector<1x12x2xf32>
    %10 = vector.shape_cast %9 : vector<1x12x2xf32> to vector<12x2xf32>
    %c0_11 = arith.constant 0 : index
    %c2_12 = arith.constant 2 : index
    %11 = vector.load %arg0[%c0_11, %c2_12] : memref<2x1024xf32, #tpu.memory_space<vmem>>, vector<2x958xf32>
    %cst_13 = arith.constant dense<0.000000e+00> : vector<12x958xf32>
    %12 = tpu.matmul %10, %11, %cst_13 {dimension_numbers = #tpu.dot_dimension_numbers<[1], [0], [0], [1], [0, 0, 1, 1], [], []>} : vector<12x2xf32>, vector<2x958xf32>, vector<12x958xf32> -> vector<12x958xf32>
    %13 = arith.addf %8, %12 : vector<12x958xf32>
    %c3 = arith.constant 3 : index
    %c0_14 = arith.constant 0 : index
    %c0_15 = arith.constant 0 : index
    %14 = vector.load %arg1[%c3, %c0_14, %c0_15] : memref<9x12x2xf32, #tpu.memory_space<vmem>>, vector<1x12x2xf32>
    %15 = vector.shape_cast %14 : vector<1x12x2xf32> to vector<12x2xf32>
    %c0_16 = arith.constant 0 : index
    %c32 = arith.constant 32 : index
    %16 = vector.load %arg0[%c0_16, %c32] : memref<2x1024xf32, #tpu.memory_space<vmem>>, vector<2x958xf32>
    %cst_17 = arith.constant dense<0.000000e+00> : vector<12x958xf32>
    %17 = tpu.matmul %15, %16, %cst_17 {dimension_numbers = #tpu.dot_dimension_numbers<[1], [0], [0], [1], [0, 0, 1, 1], [], []>} : vector<12x2xf32>, vector<2x958xf32>, vector<12x958xf32> -> vector<12x958xf32>
    %18 = arith.addf %13, %17 : vector<12x958xf32>
    %c4 = arith.constant 4 : index
    %c0_18 = arith.constant 0 : index
    %c0_19 = arith.constant 0 : index
    %19 = vector.load %arg1[%c4, %c0_18, %c0_19] : memref<9x12x2xf32, #tpu.memory_space<vmem>>, vector<1x12x2xf32>
    %20 = vector.shape_cast %19 : vector<1x12x2xf32> to vector<12x2xf32>
    %c0_20 = arith.constant 0 : index
    %c33 = arith.constant 33 : index
    %21 = vector.load %arg0[%c0_20, %c33] : memref<2x1024xf32, #tpu.memory_space<vmem>>, vector<2x958xf32>
    %cst_21 = arith.constant dense<0.000000e+00> : vector<12x958xf32>
    %22 = tpu.matmul %20, %21, %cst_21 {dimension_numbers = #tpu.dot_dimension_numbers<[1], [0], [0], [1], [0, 0, 1, 1], [], []>} : vector<12x2xf32>, vector<2x958xf32>, vector<12x958xf32> -> vector<12x958xf32>
    %23 = arith.addf %18, %22 : vector<12x958xf32>
    %c5 = arith.constant 5 : index
    %c0_22 = arith.constant 0 : index
    %c0_23 = arith.constant 0 : index
    %24 = vector.load %arg1[%c5, %c0_22, %c0_23] : memref<9x12x2xf32, #tpu.memory_space<vmem>>, vector<1x12x2xf32>
    %25 = vector.shape_cast %24 : vector<1x12x2xf32> to vector<12x2xf32>
    %c0_24 = arith.constant 0 : index
    %c34 = arith.constant 34 : index
    %26 = vector.load %arg0[%c0_24, %c34] : memref<2x1024xf32, #tpu.memory_space<vmem>>, vector<2x958xf32>
    %cst_25 = arith.constant dense<0.000000e+00> : vector<12x958xf32>
    %27 = tpu.matmul %25, %26, %cst_25 {dimension_numbers = #tpu.dot_dimension_numbers<[1], [0], [0], [1], [0, 0, 1, 1], [], []>} : vector<12x2xf32>, vector<2x958xf32>, vector<12x958xf32> -> vector<12x958xf32>
    %28 = arith.addf %23, %27 : vector<12x958xf32>
    %c6 = arith.constant 6 : index
    %c0_26 = arith.constant 0 : index
    %c0_27 = arith.constant 0 : index
    %29 = vector.load %arg1[%c6, %c0_26, %c0_27] : memref<9x12x2xf32, #tpu.memory_space<vmem>>, vector<1x12x2xf32>
    %30 = vector.shape_cast %29 : vector<1x12x2xf32> to vector<12x2xf32>
    %c0_28 = arith.constant 0 : index
    %c64 = arith.constant 64 : index
    %31 = vector.load %arg0[%c0_28, %c64] : memref<2x1024xf32, #tpu.memory_space<vmem>>, vector<2x958xf32>
    %cst_29 = arith.constant dense<0.000000e+00> : vector<12x958xf32>
    %32 = tpu.matmul %30, %31, %cst_29 {dimension_numbers = #tpu.dot_dimension_numbers<[1], [0], [0], [1], [0, 0, 1, 1], [], []>} : vector<12x2xf32>, vector<2x958xf32>, vector<12x958xf32> -> vector<12x958xf32>
    %33 = arith.addf %28, %32 : vector<12x958xf32>
    %c7 = arith.constant 7 : index
    %c0_30 = arith.constant 0 : index
    %c0_31 = arith.constant 0 : index
    %34 = vector.load %arg1[%c7, %c0_30, %c0_31] : memref<9x12x2xf32, #tpu.memory_space<vmem>>, vector<1x12x2xf32>
    %35 = vector.shape_cast %34 : vector<1x12x2xf32> to vector<12x2xf32>
    %c0_32 = arith.constant 0 : index
    %c65 = arith.constant 65 : index
    %36 = vector.load %arg0[%c0_32, %c65] : memref<2x1024xf32, #tpu.memory_space<vmem>>, vector<2x958xf32>
    %cst_33 = arith.constant dense<0.000000e+00> : vector<12x958xf32>
    %37 = tpu.matmul %35, %36, %cst_33 {dimension_numbers = #tpu.dot_dimension_numbers<[1], [0], [0], [1], [0, 0, 1, 1], [], []>} : vector<12x2xf32>, vector<2x958xf32>, vector<12x958xf32> -> vector<12x958xf32>
    %38 = arith.addf %33, %37 : vector<12x958xf32>
    %c8 = arith.constant 8 : index
    %c0_34 = arith.constant 0 : index
    %c0_35 = arith.constant 0 : index
    %39 = vector.load %arg1[%c8, %c0_34, %c0_35] : memref<9x12x2xf32, #tpu.memory_space<vmem>>, vector<1x12x2xf32>
    %40 = vector.shape_cast %39 : vector<1x12x2xf32> to vector<12x2xf32>
    %c0_36 = arith.constant 0 : index
    %c66 = arith.constant 66 : index
    %41 = vector.load %arg0[%c0_36, %c66] : memref<2x1024xf32, #tpu.memory_space<vmem>>, vector<2x958xf32>
    %cst_37 = arith.constant dense<0.000000e+00> : vector<12x958xf32>
    %42 = tpu.matmul %40, %41, %cst_37 {dimension_numbers = #tpu.dot_dimension_numbers<[1], [0], [0], [1], [0, 0, 1, 1], [], []>} : vector<12x2xf32>, vector<2x958xf32>, vector<12x958xf32> -> vector<12x958xf32>
    %43 = arith.addf %38, %42 : vector<12x958xf32>
    %c0_38 = arith.constant 0 : index
    %c0_39 = arith.constant 0 : index
    %44 = vector.load %arg2[%c0_38, %c0_39] : memref<12x1xf32, #tpu.memory_space<vmem>>, vector<12x1xf32>
    %45 = vector.broadcast %44 : vector<12x1xf32> to vector<12x958xf32>
    %46 = arith.addf %43, %45 : vector<12x958xf32>
    %cst_40 = arith.constant 0.000000e+00 : f32
    %47 = vector.broadcast %cst_40 : f32 to vector<12x958xf32>
    %48 = arith.maximumf %46, %47 : vector<12x958xf32>
    %49 = vector.extract_strided_slice %48 {offsets = [0, 0], sizes = [12, 925], strides = [1, 1]} : vector<12x958xf32> to vector<12x925xf32>
    %50 = vector.extract_strided_slice %48 {offsets = [0, 1], sizes = [12, 925], strides = [1, 1]} : vector<12x958xf32> to vector<12x925xf32>
    %51 = arith.maximumf %49, %50 : vector<12x925xf32>
    %52 = vector.extract_strided_slice %48 {offsets = [0, 32], sizes = [12, 925], strides = [1, 1]} : vector<12x958xf32> to vector<12x925xf32>
    %53 = vector.extract_strided_slice %48 {offsets = [0, 33], sizes = [12, 925], strides = [1, 1]} : vector<12x958xf32> to vector<12x925xf32>
    %54 = arith.maximumf %52, %53 : vector<12x925xf32>
    %55 = arith.maximumf %51, %54 : vector<12x925xf32>
    %c0_41 = arith.constant 0 : index
    %c0_42 = arith.constant 0 : index
    %c0_43 = arith.constant 0 : index
    %56 = vector.load %arg3[%c0_41, %c0_42, %c0_43] : memref<4x32x12xf32, #tpu.memory_space<vmem>>, vector<1x32x12xf32>
    %57 = vector.shape_cast %56 : vector<1x32x12xf32> to vector<32x12xf32>
    %58 = vector.extract_strided_slice %55 {offsets = [0, 0], sizes = [12, 859], strides = [1, 1]} : vector<12x925xf32> to vector<12x859xf32>
    %cst_44 = arith.constant dense<0.000000e+00> : vector<32x859xf32>
    %59 = tpu.matmul %57, %58, %cst_44 {dimension_numbers = #tpu.dot_dimension_numbers<[1], [0], [0], [1], [0, 0, 1, 1], [], []>} : vector<32x12xf32>, vector<12x859xf32>, vector<32x859xf32> -> vector<32x859xf32>
    %c1_45 = arith.constant 1 : index
    %c0_46 = arith.constant 0 : index
    %c0_47 = arith.constant 0 : index
    %60 = vector.load %arg3[%c1_45, %c0_46, %c0_47] : memref<4x32x12xf32, #tpu.memory_space<vmem>>, vector<1x32x12xf32>
    %61 = vector.shape_cast %60 : vector<1x32x12xf32> to vector<32x12xf32>
    %62 = vector.extract_strided_slice %55 {offsets = [0, 2], sizes = [12, 859], strides = [1, 1]} : vector<12x925xf32> to vector<12x859xf32>
    %cst_48 = arith.constant dense<0.000000e+00> : vector<32x859xf32>
    %63 = tpu.matmul %61, %62, %cst_48 {dimension_numbers = #tpu.dot_dimension_numbers<[1], [0], [0], [1], [0, 0, 1, 1], [], []>} : vector<32x12xf32>, vector<12x859xf32>, vector<32x859xf32> -> vector<32x859xf32>
    %64 = arith.addf %59, %63 : vector<32x859xf32>
    %c2_49 = arith.constant 2 : index
    %c0_50 = arith.constant 0 : index
    %c0_51 = arith.constant 0 : index
    %65 = vector.load %arg3[%c2_49, %c0_50, %c0_51] : memref<4x32x12xf32, #tpu.memory_space<vmem>>, vector<1x32x12xf32>
    %66 = vector.shape_cast %65 : vector<1x32x12xf32> to vector<32x12xf32>
    %67 = vector.extract_strided_slice %55 {offsets = [0, 64], sizes = [12, 859], strides = [1, 1]} : vector<12x925xf32> to vector<12x859xf32>
    %cst_52 = arith.constant dense<0.000000e+00> : vector<32x859xf32>
    %68 = tpu.matmul %66, %67, %cst_52 {dimension_numbers = #tpu.dot_dimension_numbers<[1], [0], [0], [1], [0, 0, 1, 1], [], []>} : vector<32x12xf32>, vector<12x859xf32>, vector<32x859xf32> -> vector<32x859xf32>
    %69 = arith.addf %64, %68 : vector<32x859xf32>
    %c3_53 = arith.constant 3 : index
    %c0_54 = arith.constant 0 : index
    %c0_55 = arith.constant 0 : index
    %70 = vector.load %arg3[%c3_53, %c0_54, %c0_55] : memref<4x32x12xf32, #tpu.memory_space<vmem>>, vector<1x32x12xf32>
    %71 = vector.shape_cast %70 : vector<1x32x12xf32> to vector<32x12xf32>
    %72 = vector.extract_strided_slice %55 {offsets = [0, 66], sizes = [12, 859], strides = [1, 1]} : vector<12x925xf32> to vector<12x859xf32>
    %cst_56 = arith.constant dense<0.000000e+00> : vector<32x859xf32>
    %73 = tpu.matmul %71, %72, %cst_56 {dimension_numbers = #tpu.dot_dimension_numbers<[1], [0], [0], [1], [0, 0, 1, 1], [], []>} : vector<32x12xf32>, vector<12x859xf32>, vector<32x859xf32> -> vector<32x859xf32>
    %74 = arith.addf %69, %73 : vector<32x859xf32>
    %c0_57 = arith.constant 0 : index
    %c0_58 = arith.constant 0 : index
    %75 = vector.load %arg4[%c0_57, %c0_58] : memref<32x1xf32, #tpu.memory_space<vmem>>, vector<32x1xf32>
    %76 = vector.broadcast %75 : vector<32x1xf32> to vector<32x859xf32>
    %77 = arith.addf %74, %76 : vector<32x859xf32>
    %cst_59 = arith.constant 0.000000e+00 : f32
    %78 = vector.broadcast %cst_59 : f32 to vector<32x859xf32>
    %79 = arith.maximumf %77, %78 : vector<32x859xf32>
    %80 = vector.extract_strided_slice %79 {offsets = [0, 0], sizes = [32, 793], strides = [1, 1]} : vector<32x859xf32> to vector<32x793xf32>
    %81 = vector.extract_strided_slice %79 {offsets = [0, 2], sizes = [32, 793], strides = [1, 1]} : vector<32x859xf32> to vector<32x793xf32>
    %82 = arith.maximumf %80, %81 : vector<32x793xf32>
    %83 = vector.extract_strided_slice %79 {offsets = [0, 64], sizes = [32, 793], strides = [1, 1]} : vector<32x859xf32> to vector<32x793xf32>
    %84 = vector.extract_strided_slice %79 {offsets = [0, 66], sizes = [32, 793], strides = [1, 1]} : vector<32x859xf32> to vector<32x793xf32>
    %85 = arith.maximumf %83, %84 : vector<32x793xf32>
    %86 = arith.maximumf %82, %85 : vector<32x793xf32>
    %87 = tpu.iota {dimensions = array<i32: 0>} : vector<793x49xi32>
    %c0_60 = arith.constant 0 : index
    %c0_61 = arith.constant 0 : index
    %88 = vector.load %arg5[%c0_60, %c0_61] : memref<1x49xi32, #tpu.memory_space<vmem>>, vector<1x49xi32>
    %89 = vector.broadcast %88 : vector<1x49xi32> to vector<793x49xi32>
    %90 = arith.cmpi eq, %87, %89 : vector<793x49xi32>
    %cst_62 = arith.constant 1.000000e+00 : f32
    %cst_63 = arith.constant 0.000000e+00 : f32
    %91 = vector.broadcast %cst_62 : f32 to vector<793x49xf32>
    %92 = vector.broadcast %cst_63 : f32 to vector<793x49xf32>
    %93 = arith.select %90, %91, %92 : vector<793x49xi1>, vector<793x49xf32>
    %cst_64 = arith.constant dense<0.000000e+00> : vector<32x49xf32>
    %94 = tpu.matmul %86, %93, %cst_64 {dimension_numbers = #tpu.dot_dimension_numbers<[1], [0], [0], [1], [0, 0, 1, 1], [], []>} : vector<32x793xf32>, vector<793x49xf32>, vector<32x49xf32> -> vector<32x49xf32>
    %95 = vector.extract_strided_slice %94 {offsets = [0, 0], sizes = [2, 49], strides = [1, 1]} : vector<32x49xf32> to vector<2x49xf32>
    %c0_65 = arith.constant 0 : index
    %c0_66 = arith.constant 0 : index
    %96 = vector.load %arg6[%c0_65, %c0_66] : memref<784x120xf32, #tpu.memory_space<vmem>>, vector<49x120xf32>
    %cst_67 = arith.constant dense<0.000000e+00> : vector<2x120xf32>
    %97 = tpu.matmul %95, %96, %cst_67 {dimension_numbers = #tpu.dot_dimension_numbers<[1], [0], [0], [1], [0, 0, 1, 1], [], []>} : vector<2x49xf32>, vector<49x120xf32>, vector<2x120xf32> -> vector<2x120xf32>
    %98 = vector.extract_strided_slice %94 {offsets = [2, 0], sizes = [2, 49], strides = [1, 1]} : vector<32x49xf32> to vector<2x49xf32>
    %c49 = arith.constant 49 : index
    %c0_68 = arith.constant 0 : index
    %99 = vector.load %arg6[%c49, %c0_68] : memref<784x120xf32, #tpu.memory_space<vmem>>, vector<49x120xf32>
    %cst_69 = arith.constant dense<0.000000e+00> : vector<2x120xf32>
    %100 = tpu.matmul %98, %99, %cst_69 {dimension_numbers = #tpu.dot_dimension_numbers<[1], [0], [0], [1], [0, 0, 1, 1], [], []>} : vector<2x49xf32>, vector<49x120xf32>, vector<2x120xf32> -> vector<2x120xf32>
    %101 = arith.addf %97, %100 : vector<2x120xf32>
    %102 = vector.extract_strided_slice %94 {offsets = [4, 0], sizes = [2, 49], strides = [1, 1]} : vector<32x49xf32> to vector<2x49xf32>
    %c98 = arith.constant 98 : index
    %c0_70 = arith.constant 0 : index
    %103 = vector.load %arg6[%c98, %c0_70] : memref<784x120xf32, #tpu.memory_space<vmem>>, vector<49x120xf32>
    %cst_71 = arith.constant dense<0.000000e+00> : vector<2x120xf32>
    %104 = tpu.matmul %102, %103, %cst_71 {dimension_numbers = #tpu.dot_dimension_numbers<[1], [0], [0], [1], [0, 0, 1, 1], [], []>} : vector<2x49xf32>, vector<49x120xf32>, vector<2x120xf32> -> vector<2x120xf32>
    %105 = arith.addf %101, %104 : vector<2x120xf32>
    %106 = vector.extract_strided_slice %94 {offsets = [6, 0], sizes = [2, 49], strides = [1, 1]} : vector<32x49xf32> to vector<2x49xf32>
    %c147 = arith.constant 147 : index
    %c0_72 = arith.constant 0 : index
    %107 = vector.load %arg6[%c147, %c0_72] : memref<784x120xf32, #tpu.memory_space<vmem>>, vector<49x120xf32>
    %cst_73 = arith.constant dense<0.000000e+00> : vector<2x120xf32>
    %108 = tpu.matmul %106, %107, %cst_73 {dimension_numbers = #tpu.dot_dimension_numbers<[1], [0], [0], [1], [0, 0, 1, 1], [], []>} : vector<2x49xf32>, vector<49x120xf32>, vector<2x120xf32> -> vector<2x120xf32>
    %109 = arith.addf %105, %108 : vector<2x120xf32>
    %110 = vector.extract_strided_slice %94 {offsets = [8, 0], sizes = [2, 49], strides = [1, 1]} : vector<32x49xf32> to vector<2x49xf32>
    %c196 = arith.constant 196 : index
    %c0_74 = arith.constant 0 : index
    %111 = vector.load %arg6[%c196, %c0_74] : memref<784x120xf32, #tpu.memory_space<vmem>>, vector<49x120xf32>
    %cst_75 = arith.constant dense<0.000000e+00> : vector<2x120xf32>
    %112 = tpu.matmul %110, %111, %cst_75 {dimension_numbers = #tpu.dot_dimension_numbers<[1], [0], [0], [1], [0, 0, 1, 1], [], []>} : vector<2x49xf32>, vector<49x120xf32>, vector<2x120xf32> -> vector<2x120xf32>
    %113 = arith.addf %109, %112 : vector<2x120xf32>
    %114 = vector.extract_strided_slice %94 {offsets = [10, 0], sizes = [2, 49], strides = [1, 1]} : vector<32x49xf32> to vector<2x49xf32>
    %c245 = arith.constant 245 : index
    %c0_76 = arith.constant 0 : index
    %115 = vector.load %arg6[%c245, %c0_76] : memref<784x120xf32, #tpu.memory_space<vmem>>, vector<49x120xf32>
    %cst_77 = arith.constant dense<0.000000e+00> : vector<2x120xf32>
    %116 = tpu.matmul %114, %115, %cst_77 {dimension_numbers = #tpu.dot_dimension_numbers<[1], [0], [0], [1], [0, 0, 1, 1], [], []>} : vector<2x49xf32>, vector<49x120xf32>, vector<2x120xf32> -> vector<2x120xf32>
    %117 = arith.addf %113, %116 : vector<2x120xf32>
    %118 = vector.extract_strided_slice %94 {offsets = [12, 0], sizes = [2, 49], strides = [1, 1]} : vector<32x49xf32> to vector<2x49xf32>
    %c294 = arith.constant 294 : index
    %c0_78 = arith.constant 0 : index
    %119 = vector.load %arg6[%c294, %c0_78] : memref<784x120xf32, #tpu.memory_space<vmem>>, vector<49x120xf32>
    %cst_79 = arith.constant dense<0.000000e+00> : vector<2x120xf32>
    %120 = tpu.matmul %118, %119, %cst_79 {dimension_numbers = #tpu.dot_dimension_numbers<[1], [0], [0], [1], [0, 0, 1, 1], [], []>} : vector<2x49xf32>, vector<49x120xf32>, vector<2x120xf32> -> vector<2x120xf32>
    %121 = arith.addf %117, %120 : vector<2x120xf32>
    %122 = vector.extract_strided_slice %94 {offsets = [14, 0], sizes = [2, 49], strides = [1, 1]} : vector<32x49xf32> to vector<2x49xf32>
    %c343 = arith.constant 343 : index
    %c0_80 = arith.constant 0 : index
    %123 = vector.load %arg6[%c343, %c0_80] : memref<784x120xf32, #tpu.memory_space<vmem>>, vector<49x120xf32>
    %cst_81 = arith.constant dense<0.000000e+00> : vector<2x120xf32>
    %124 = tpu.matmul %122, %123, %cst_81 {dimension_numbers = #tpu.dot_dimension_numbers<[1], [0], [0], [1], [0, 0, 1, 1], [], []>} : vector<2x49xf32>, vector<49x120xf32>, vector<2x120xf32> -> vector<2x120xf32>
    %125 = arith.addf %121, %124 : vector<2x120xf32>
    %126 = vector.extract_strided_slice %94 {offsets = [16, 0], sizes = [2, 49], strides = [1, 1]} : vector<32x49xf32> to vector<2x49xf32>
    %c392 = arith.constant 392 : index
    %c0_82 = arith.constant 0 : index
    %127 = vector.load %arg6[%c392, %c0_82] : memref<784x120xf32, #tpu.memory_space<vmem>>, vector<49x120xf32>
    %cst_83 = arith.constant dense<0.000000e+00> : vector<2x120xf32>
    %128 = tpu.matmul %126, %127, %cst_83 {dimension_numbers = #tpu.dot_dimension_numbers<[1], [0], [0], [1], [0, 0, 1, 1], [], []>} : vector<2x49xf32>, vector<49x120xf32>, vector<2x120xf32> -> vector<2x120xf32>
    %129 = arith.addf %125, %128 : vector<2x120xf32>
    %130 = vector.extract_strided_slice %94 {offsets = [18, 0], sizes = [2, 49], strides = [1, 1]} : vector<32x49xf32> to vector<2x49xf32>
    %c441 = arith.constant 441 : index
    %c0_84 = arith.constant 0 : index
    %131 = vector.load %arg6[%c441, %c0_84] : memref<784x120xf32, #tpu.memory_space<vmem>>, vector<49x120xf32>
    %cst_85 = arith.constant dense<0.000000e+00> : vector<2x120xf32>
    %132 = tpu.matmul %130, %131, %cst_85 {dimension_numbers = #tpu.dot_dimension_numbers<[1], [0], [0], [1], [0, 0, 1, 1], [], []>} : vector<2x49xf32>, vector<49x120xf32>, vector<2x120xf32> -> vector<2x120xf32>
    %133 = arith.addf %129, %132 : vector<2x120xf32>
    %134 = vector.extract_strided_slice %94 {offsets = [20, 0], sizes = [2, 49], strides = [1, 1]} : vector<32x49xf32> to vector<2x49xf32>
    %c490 = arith.constant 490 : index
    %c0_86 = arith.constant 0 : index
    %135 = vector.load %arg6[%c490, %c0_86] : memref<784x120xf32, #tpu.memory_space<vmem>>, vector<49x120xf32>
    %cst_87 = arith.constant dense<0.000000e+00> : vector<2x120xf32>
    %136 = tpu.matmul %134, %135, %cst_87 {dimension_numbers = #tpu.dot_dimension_numbers<[1], [0], [0], [1], [0, 0, 1, 1], [], []>} : vector<2x49xf32>, vector<49x120xf32>, vector<2x120xf32> -> vector<2x120xf32>
    %137 = arith.addf %133, %136 : vector<2x120xf32>
    %138 = vector.extract_strided_slice %94 {offsets = [22, 0], sizes = [2, 49], strides = [1, 1]} : vector<32x49xf32> to vector<2x49xf32>
    %c539 = arith.constant 539 : index
    %c0_88 = arith.constant 0 : index
    %139 = vector.load %arg6[%c539, %c0_88] : memref<784x120xf32, #tpu.memory_space<vmem>>, vector<49x120xf32>
    %cst_89 = arith.constant dense<0.000000e+00> : vector<2x120xf32>
    %140 = tpu.matmul %138, %139, %cst_89 {dimension_numbers = #tpu.dot_dimension_numbers<[1], [0], [0], [1], [0, 0, 1, 1], [], []>} : vector<2x49xf32>, vector<49x120xf32>, vector<2x120xf32> -> vector<2x120xf32>
    %141 = arith.addf %137, %140 : vector<2x120xf32>
    %142 = vector.extract_strided_slice %94 {offsets = [24, 0], sizes = [2, 49], strides = [1, 1]} : vector<32x49xf32> to vector<2x49xf32>
    %c588 = arith.constant 588 : index
    %c0_90 = arith.constant 0 : index
    %143 = vector.load %arg6[%c588, %c0_90] : memref<784x120xf32, #tpu.memory_space<vmem>>, vector<49x120xf32>
    %cst_91 = arith.constant dense<0.000000e+00> : vector<2x120xf32>
    %144 = tpu.matmul %142, %143, %cst_91 {dimension_numbers = #tpu.dot_dimension_numbers<[1], [0], [0], [1], [0, 0, 1, 1], [], []>} : vector<2x49xf32>, vector<49x120xf32>, vector<2x120xf32> -> vector<2x120xf32>
    %145 = arith.addf %141, %144 : vector<2x120xf32>
    %146 = vector.extract_strided_slice %94 {offsets = [26, 0], sizes = [2, 49], strides = [1, 1]} : vector<32x49xf32> to vector<2x49xf32>
    %c637 = arith.constant 637 : index
    %c0_92 = arith.constant 0 : index
    %147 = vector.load %arg6[%c637, %c0_92] : memref<784x120xf32, #tpu.memory_space<vmem>>, vector<49x120xf32>
    %cst_93 = arith.constant dense<0.000000e+00> : vector<2x120xf32>
    %148 = tpu.matmul %146, %147, %cst_93 {dimension_numbers = #tpu.dot_dimension_numbers<[1], [0], [0], [1], [0, 0, 1, 1], [], []>} : vector<2x49xf32>, vector<49x120xf32>, vector<2x120xf32> -> vector<2x120xf32>
    %149 = arith.addf %145, %148 : vector<2x120xf32>
    %150 = vector.extract_strided_slice %94 {offsets = [28, 0], sizes = [2, 49], strides = [1, 1]} : vector<32x49xf32> to vector<2x49xf32>
    %c686 = arith.constant 686 : index
    %c0_94 = arith.constant 0 : index
    %151 = vector.load %arg6[%c686, %c0_94] : memref<784x120xf32, #tpu.memory_space<vmem>>, vector<49x120xf32>
    %cst_95 = arith.constant dense<0.000000e+00> : vector<2x120xf32>
    %152 = tpu.matmul %150, %151, %cst_95 {dimension_numbers = #tpu.dot_dimension_numbers<[1], [0], [0], [1], [0, 0, 1, 1], [], []>} : vector<2x49xf32>, vector<49x120xf32>, vector<2x120xf32> -> vector<2x120xf32>
    %153 = arith.addf %149, %152 : vector<2x120xf32>
    %154 = vector.extract_strided_slice %94 {offsets = [30, 0], sizes = [2, 49], strides = [1, 1]} : vector<32x49xf32> to vector<2x49xf32>
    %c735 = arith.constant 735 : index
    %c0_96 = arith.constant 0 : index
    %155 = vector.load %arg6[%c735, %c0_96] : memref<784x120xf32, #tpu.memory_space<vmem>>, vector<49x120xf32>
    %cst_97 = arith.constant dense<0.000000e+00> : vector<2x120xf32>
    %156 = tpu.matmul %154, %155, %cst_97 {dimension_numbers = #tpu.dot_dimension_numbers<[1], [0], [0], [1], [0, 0, 1, 1], [], []>} : vector<2x49xf32>, vector<49x120xf32>, vector<2x120xf32> -> vector<2x120xf32>
    %157 = arith.addf %153, %156 : vector<2x120xf32>
    %c0_98 = arith.constant 0 : index
    %c0_99 = arith.constant 0 : index
    %158 = vector.load %arg7[%c0_98, %c0_99] : memref<1x120xf32, #tpu.memory_space<vmem>>, vector<1x120xf32>
    %159 = vector.broadcast %158 : vector<1x120xf32> to vector<2x120xf32>
    %160 = arith.addf %157, %159 : vector<2x120xf32>
    %c0_100 = arith.constant 0 : index
    %c0_101 = arith.constant 0 : index
    %161 = vector.load %arg8[%c0_100, %c0_101] : memref<120x10xf32, #tpu.memory_space<vmem>>, vector<120x10xf32>
    %cst_102 = arith.constant dense<0.000000e+00> : vector<2x10xf32>
    %162 = tpu.matmul %160, %161, %cst_102 {dimension_numbers = #tpu.dot_dimension_numbers<[1], [0], [0], [1], [0, 0, 1, 1], [], []>} : vector<2x120xf32>, vector<120x10xf32>, vector<2x10xf32> -> vector<2x10xf32>
    %c0_103 = arith.constant 0 : index
    %c0_104 = arith.constant 0 : index
    %163 = vector.load %arg9[%c0_103, %c0_104] : memref<1x10xf32, #tpu.memory_space<vmem>>, vector<1x10xf32>
    %164 = vector.broadcast %163 : vector<1x10xf32> to vector<2x10xf32>
    %165 = arith.addf %162, %164 : vector<2x10xf32>
    %c0_105 = arith.constant 0 : index
    %c0_106 = arith.constant 0 : index
    %166 = vector.load %arg10[%c0_105, %c0_106] : memref<2x10xf32, #tpu.memory_space<vmem>>, vector<2x10xf32>
    tpu.vector_store %arg10[%c0_105, %c0_106], %165 {strides = array<i32>} : memref<2x10xf32, #tpu.memory_space<vmem>>, vector<2x10xf32>,
    return
  }
}

</mosaic_0001>

<bundles_post_ra>
// kernel: simple_nn_forward.1
= control target key start
LH: loop header
LB: loop body
LE: loop exit
PB: predicated region body
PF: predicated region fallthrough
CT: control target
= control target key end

     0   :  { %15 = vsyncpa [#allocation3], 0  ;;  %s12765_s0 = inlined_call_operand.vmem [shape: f32[2,1024], index: 0, kind: input, shape index: {}]   ;;  %s12766_s1 = inlined_call_operand.vmem [shape: f32[9,12,2], index: 1, kind: input, shape index: {}]   ;;  %s12767_s2 = inlined_call_operand.vmem [shape: f32[12,1], index: 2, kind: input, shape index: {}]   ;;  %s12768_s3 = inlined_call_operand.vmem [shape: f32[4,32,12], index: 3, kind: input, shape index: {}]   ;;  %s12769_s4 = inlined_call_operand.vmem [shape: f32[32,1], index: 4, kind: input, shape index: {}]   ;;  %s12770_s5 = inlined_call_operand.vmem [shape: s32[1,49], index: 5, kind: input, shape index: {}]   ;;  %s12771_s6 = inlined_call_operand.hbm [shape: f32[784,120], index: 6, kind: input, shape index: {}]   ;;  %s12772_s7 = inlined_call_operand.vmem [shape: f32[1,120], index: 7, kind: input, shape index: {}]   ;;  %s12773_s8 = inlined_call_operand.vmem [shape: f32[120,10], index: 8, kind: input, shape index: {}]   ;;  %s12774_s9 = inlined_call_operand.vmem [shape: f32[1,10], index: 9, kind: input, shape index: {}]   ;;  %s12775_s10 = inlined_call_operand.hbm [shape: f32[2,10], index: 10, kind: output, shape index: {}]  }
   0x1   :  { %16 = vsyncpa [#allocation4], 0  ;;  %s10210_s13 = smov [#allocation2]   ;;  %s10162_s17 = scalar_lea.hbm %s12771_s6, 12544 }
   0x2   :  { %s34_s14 = sshll.u32 %s10210_s13, 4  ;;  %p10163_p0 = scmp.ne.s32.totalorder %s12771_s6, %s10162_s17  ;;  %s35_s14 = int_to_ptr.vmem [resolvable:$true] %s34_s14 }
   0x3   :  { %p10166_p1 = scmp.lt.u32.totalorder %s10162_s17, %s12771_s6 }
   0x5   :  { %p10168_p2 = pnand %p10166_p1, %p10163_p0 }
   0x7   :  { %10171 = shalt.err (!%p10168_p2)
}
   0x8   :  { %s10172_s22 = scalar_lea.vmem %s35_s14, 12544  ;;  %p10177_p4 = scmp.lt.s32.totalorder %s35_s14, %s35_s14 }
   0x9   :  { %p10173_p3 = scmp.ne.s32.totalorder %s35_s14, %s10172_s22  ;;  %p10178_p5 = scmp.lt.s32.totalorder %s10172_s22, %s10172_s22 }
   0xb   :  { %p10179_p6 = por %p10178_p5, %p10177_p4 }
   0xd   :  { %p10180_p7 = pnand %p10179_p6, %p10173_p3 }
   0xf   :  { %10183 = shalt.err (!%p10180_p7)
}
  0x10   :  { %s10211_s23 = smov 128   ;;  %s10212_s24 = smov 8  }
  0x11   :  { %40 = dma.hbm_to_vmem [thread:$0]  %s12771_s6, 12544, %s35_s14, [#allocation3], %s10211_s23, %s10211_s23, %s10212_s24  }
  0x12   :  { %10206 = dma.done.wait [#allocation3], 12544  }
  0x13   :  { %10207 = vsyncadd [#allocation3], 4294954752  ;;  %v63_v0 = vlaneseq  ;;  %v10213_v1 = vmov 1983009808   ;;  %v12777_v6 = vmov 0.0   ;;  %v52_v7 = vld [vmem:[%s12765_s0] sm:$0xff] }
  0x14   :  { %v61_v2 = vunpack.c.l.s4 %v10213_v1  ;;  %205 = vmatprep.mubr.f32.mxu0 %v12777_v6  ;;  %282 = vmatprep.mubr.f32.mxu1 %v12777_v6  ;;  %v53_v8 = vld [vmem:[%s12765_s0 + $0x8] sm:$0xff]  ;;  %v59_v10 = vcombine.high %v52_v7, %v52_v7  ;;  %s10215_s30 = smov 127   ;;  %s10216_s0 = smov 126   ;;  %vm109_vm0 = vcmask 1039360   ;;  %vm124_vm1 = vcmask 1041408   ;;  %v8181_v24 = vld [vmem:[%s12766_s1 + $0x10] sm:$0xff] }
  0x15   :  { %v10297_v3 = vshrl.u32 %v63_v0, 7  ;;  %v76_v14 = vcombine.high %v53_v8, %v53_v8  ;;  %s10217_s11 = smov 96   ;;  %s10218_s12 = smov 95   ;;  %vm117_vm2 = vcmask 15360   ;;  %v8182_v29 = vld [vmem:[%s12766_s1 + $0x18] sm:$0xf] }
  0x16   :  { %v62_v4 = vunpack.c.0.s8 %v61_v2  ;;  %s10219_s13 = smov 94   ;;  %s10220_s14 = smov 64   ;;  %v50_v40 = vld [vmem:[%s12766_s1] sm:$0xff]  ;;  %vm836_vm3 = vcmask 1031168   ;;  %v51_v45 = vld [vmem:[%s12766_s1 + $0x8] sm:$0xf] }
  0x17   :  { %s10221_s15 = smov 63   ;;  %s10222_s16 = smov 62   ;;  %v3656_v44 = vld [vmem:[%s12767_s2] sm:$0xff]  ;;  %v10223_v47 = vmov 0   ;;  %v3657_v50 = vld [vmem:[%s12767_s2 + $0x8] sm:$0xf] }
  0x18   :  { %v65_v5 = vsub.s32 %v62_v4, %v10297_v3  ;;  %9853 = vset.pattern.permute.xlu0 %v10223_v47  ;;  %9854 = vset.pattern.permute.xlu1 %v10223_v47  ;;  %vm1247_vm4 = vcmask 785408   ;;  %v8215_v58 = vld [vmem:[%s12766_s1 + $0x20] sm:$0xff]  ;;  %v8216_v63 = vld [vmem:[%s12766_s1 + $0x28] sm:$0xf]  ;;  %vm1658_vm5 = vcmask 777216   ;;  %vm2069_vm6 = vcmask 769024  }
  0x19   :  { %vm2480_vm7 = vcmask 523264   ;;  %v8269_v47 = vld [vmem:[%s12766_s1 + $0x50] sm:$0xff]  ;;  %vm2891_vm8 = vcmask 515072   ;;  %vm3302_vm9 = vcmask 506880   ;;  %vm3971_vm10 = vcmask 1043456   ;;  %s10229_s19 = smov [#allocation5]  }
  0x1a   :  { %v10308_v9 = vrot.slane %v52_v7, %v65_v5  ;;  %v10316_v12 = vrot.slane %v59_v10, %v65_v5  ;;  %v10318_v13 = vrot.slane %v53_v8, %v65_v5  ;;  %v10332_v17 = vrot.slane %v76_v14, %v65_v5  ;;  %s8172_s20 = sshll.u32 %s10229_s19, 4  ;;  %s8173_s20 = int_to_ptr.vmem [resolvable:$true] %s8172_s20 }
  0x1b   :  { %vm10224_vm11 = vmmov 1   ;;  %vm3958_vm13 = vcmask 97280   ;;  %p10189_p9 = scmp.lt.s32.totalorder %s8173_s20, %s8173_s20 }
  0x1c   :  { %93 = vrot.lane.b32.xlu1 %v10308_v9, %s10215_s30  ;;  %v10314_v11 = vcombine.high %v10308_v9, %v10308_v9  ;;  %v10324_v15 = vcombine.high %v10316_v12, %v10316_v12  ;;  %v10330_v16 = vcombine.high %v10318_v13, %v10318_v13  ;;  %v10340_v18 = vcombine.high %v10332_v17, %v10332_v17  ;;  %vm11049_vm12 = vmpackc.low %vm3971_vm10, %vm10224_vm11 }
  0x1e   :  { %95 = vrot.lane.b32.xlu0 %v10314_v11, %s10215_s30 }
  0x20   :  { %99 = vrot.lane.b32.xlu1 %v10324_v15, %s10215_s30 }
  0x22   :  { %97 = vrot.lane.b32.xlu0 %v10316_v12, %s10215_s30 }
  0x24   :  { %103 = vrot.lane.b32.xlu1 %v10330_v16, %s10215_s30 }
  0x26   :  { %101 = vrot.lane.b32.xlu0 %v10318_v13, %s10215_s30 }
  0x28   :  { %107 = vrot.lane.b32.xlu1 %v10340_v18, %s10215_s30 }
  0x2a   :  { %105 = vrot.lane.b32.xlu0 %v10332_v17, %s10215_s30 }
  0x2c   :  { %824 = vrot.lane.b32.xlu1 %v10316_v12, %s10216_s0 }
  0x2e   :  { %822 = vrot.lane.b32.xlu0 %v10314_v11, %s10216_s0 }
  0x30   :  { %826 = vrot.lane.b32.xlu1 %v10324_v15, %s10216_s0 }
  0x32   :  { %820 = vrot.lane.b32.xlu0 %v10308_v9, %s10216_s0 }
  0x34   :  { %830 = vrot.lane.b32.xlu1 %v10330_v16, %s10216_s0 }
  0x36   :  { %828 = vrot.lane.b32.xlu0 %v10318_v13, %s10216_s0 }
  0x38   :  { %834 = vrot.lane.b32.xlu1 %v10340_v18, %s10216_s0 }
  0x3a   :  { %832 = vrot.lane.b32.xlu0 %v10332_v17, %s10216_s0 }
  0x3c   :  { %1235 = vrot.lane.b32.xlu1 %v10316_v12, %s10217_s11 }
  0x3e   :  { %1233 = vrot.lane.b32.xlu0 %v10314_v11, %s10217_s11 }
  0x40   :  { %1237 = vrot.lane.b32.xlu1 %v10324_v15, %s10217_s11 }
  0x42   :  { %1231 = vrot.lane.b32.xlu0 %v10308_v9, %s10217_s11 }
  0x44   :  { %1241 = vrot.lane.b32.xlu1 %v10330_v16, %s10217_s11 }
  0x46   :  { %1239 = vrot.lane.b32.xlu0 %v10318_v13, %s10217_s11 }
  0x48   :  { %1245 = vrot.lane.b32.xlu1 %v10340_v18, %s10217_s11 }
  0x4a   :  { %1243 = vrot.lane.b32.xlu0 %v10332_v17, %s10217_s11 }
  0x4c   :  { %1646 = vrot.lane.b32.xlu1 %v10316_v12, %s10218_s12 }
  0x4e   :  { %1644 = vrot.lane.b32.xlu0 %v10314_v11, %s10218_s12 }
  0x50   :  { %1648 = vrot.lane.b32.xlu1 %v10324_v15, %s10218_s12 }
  0x52   :  { %1642 = vrot.lane.b32.xlu0 %v10308_v9, %s10218_s12 }
  0x54   :  { %1652 = vrot.lane.b32.xlu1 %v10330_v16, %s10218_s12 }
  0x56   :  { %1650 = vrot.lane.b32.xlu0 %v10318_v13, %s10218_s12 }
  0x58   :  { %1656 = vrot.lane.b32.xlu1 %v10340_v18, %s10218_s12 }
  0x5a   :  { %1654 = vrot.lane.b32.xlu0 %v10332_v17, %s10218_s12 }
  0x5c   :  { %2057 = vrot.lane.b32.xlu1 %v10316_v12, %s10219_s13 }
  0x5e   :  { %2055 = vrot.lane.b32.xlu0 %v10314_v11, %s10219_s13 }
  0x60   :  { %2059 = vrot.lane.b32.xlu1 %v10324_v15, %s10219_s13 }
  0x62   :  { %2053 = vrot.lane.b32.xlu0 %v10308_v9, %s10219_s13 }
  0x64   :  { %2063 = vrot.lane.b32.xlu1 %v10330_v16, %s10219_s13 }
  0x66   :  { %2061 = vrot.lane.b32.xlu0 %v10318_v13, %s10219_s13 }
  0x68   :  { %2067 = vrot.lane.b32.xlu1 %v10340_v18, %s10219_s13 }
  0x6a   :  { %2065 = vrot.lane.b32.xlu0 %v10332_v17, %s10219_s13 }
  0x6c   :  { %2468 = vrot.lane.b32.xlu1 %v10316_v12, %s10220_s14 }
  0x6e   :  { %2466 = vrot.lane.b32.xlu0 %v10314_v11, %s10220_s14 }
  0x70   :  { %2470 = vrot.lane.b32.xlu1 %v10324_v15, %s10220_s14 }
  0x72   :  { %2464 = vrot.lane.b32.xlu0 %v10308_v9, %s10220_s14 }
  0x74   :  { %2474 = vrot.lane.b32.xlu1 %v10330_v16, %s10220_s14 }
  0x76   :  { %2472 = vrot.lane.b32.xlu0 %v10318_v13, %s10220_s14 }
  0x78   :  { %2478 = vrot.lane.b32.xlu1 %v10340_v18, %s10220_s14 }
  0x7a   :  { %2476 = vrot.lane.b32.xlu0 %v10332_v17, %s10220_s14 }
  0x7c   :  { %2879 = vrot.lane.b32.xlu1 %v10316_v12, %s10221_s15 }
  0x7e   :  { %2877 = vrot.lane.b32.xlu0 %v10314_v11, %s10221_s15 }
  0x80   :  { %2881 = vrot.lane.b32.xlu1 %v10324_v15, %s10221_s15 }
  0x82   :  { %2875 = vrot.lane.b32.xlu0 %v10308_v9, %s10221_s15 }
  0x84   :  { %2885 = vrot.lane.b32.xlu1 %v10330_v16, %s10221_s15 }
  0x86   :  { %2883 = vrot.lane.b32.xlu0 %v10318_v13, %s10221_s15 }
  0x88   :  { %2889 = vrot.lane.b32.xlu1 %v10340_v18, %s10221_s15 }
  0x8a   :  { %2887 = vrot.lane.b32.xlu0 %v10332_v17, %s10221_s15 }
  0x8c   :  { %3290 = vrot.lane.b32.xlu1 %v10316_v12, %s10222_s16 }
  0x8e   :  { %v94_v19 = vpop.permute.xlu1 %93  ;;  %3288 = vrot.lane.b32.xlu0 %v10314_v11, %s10222_s16 }
  0x90   :  { %v96_v20 = vpop.permute.xlu0 %95  ;;  %3292 = vrot.lane.b32.xlu1 %v10324_v15, %s10222_s16 }
  0x91   :  { %v110_v25 = vsel %vm109_vm0, %v94_v19, %v96_v20 }
  0x92   :  { %v100_v21 = vpop.permute.xlu1 %99  ;;  %3286 = vrot.lane.b32.xlu0 %v10308_v9, %s10222_s16 }
  0x94   :  { %v98_v22 = vpop.permute.xlu0 %97  ;;  %3296 = vrot.lane.b32.xlu1 %v10330_v16, %s10222_s16 }
  0x95   :  { %v111_v23 = vsel %vm109_vm0, %v96_v20, %v98_v22  ;;  %v112_v30 = vsel %vm109_vm0, %v98_v22, %v100_v21 }
  0x96   :  { %8183 = vmatprep.subr.msk.mxu0 %vm124_vm1, %v111_v23  ;;  %v104_v26 = vpop.permute.xlu1 %103  ;;  %3294 = vrot.lane.b32.xlu0 %v10318_v13, %s10222_s16 }
  0x97   :  { %8184 = vmatpush1.msk.msra.mxu0 %vm124_vm1, %v110_v25 }
  0x98   :  { %8185 = vmatmul.mubr.msk.f32.vlgmr.msra.gmra.mrb[0].mxu0 %vm117_vm2, %v8181_v24  ;;  %v102_v27 = vpop.permute.xlu0 %101  ;;  %3300 = vrot.lane.b32.xlu1 %v10340_v18, %s10222_s16 }
  0x99   :  { %v113_v28 = vsel %vm109_vm0, %v100_v21, %v102_v27  ;;  %211 = vmatprep.mubr.f32.mxu0 %v12777_v6  ;;  %v114_v35 = vsel %vm109_vm0, %v102_v27, %v104_v26 }
  0x9a   :  { %8187 = vmatprep.subr.msk.mxu1 %vm124_vm1, %v113_v28  ;;  %v108_v31 = vpop.permute.xlu1 %107  ;;  %3298 = vrot.lane.b32.xlu0 %v10332_v17, %s10222_s16 }
  0x9b   :  { %8188 = vmatpush1.msk.msra.mxu1 %vm124_vm1, %v112_v30  ;;  %v8251_v30 = vld [vmem:[%s12766_s1 + $0x40] sm:$0xff] }
  0x9c   :  { %8186 = vmatmul.mubr.msk.f32.gmra.mrb[2].mxu0 %vm117_vm2, %v8182_v29  ;;  %v106_v32 = vpop.permute.xlu0 %105  ;;  %8189 = vmatmul.mubr.msk.f32.vlgmr.msra.gmra.mrb[0].mxu1 %vm117_vm2, %v8181_v24 }
  0x9d   :  { %v116_v33 = vsel %vm109_vm0, %v106_v32, %v108_v31  ;;  %8195 = vmatprep.subr.msk.mxu1 %vm124_vm1, %v108_v31  ;;  %v115_v34 = vsel %vm109_vm0, %v104_v26, %v106_v32  ;;  %288 = vmatprep.mubr.f32.mxu1 %v12777_v6 }
  0x9e   :  { %8191 = vmatprep.subr.msk.mxu0 %vm124_vm1, %v115_v34  ;;  %8196 = vmatpush1.msk.msra.mxu1 %vm124_vm1, %v116_v33  ;;  %v825_v36 = vpop.permute.xlu1 %824 }
  0x9f   :  { %8192 = vmatpush1.msk.msra.mxu0 %vm124_vm1, %v114_v35  ;;  %359 = vmatprep.mubr.f32.mxu0 %v12777_v6  ;;  %v8252_v35 = vld [vmem:[%s12766_s1 + $0x48] sm:$0xf] }
  0xa0   :  { %8190 = vmatmul.mubr.msk.f32.gmra.mrb[2].mxu1 %vm117_vm2, %v8182_v29  ;;  %8193 = vmatmul.mubr.msk.f32.vlgmr.msra.gmra.mrb[4].mxu0 %vm117_vm2, %v8181_v24  ;;  %v823_v37 = vpop.permute.xlu0 %822 }
  0xa1   :  { %365 = vmatprep.mubr.f32.mxu0 %v12777_v6  ;;  %436 = vmatprep.mubr.f32.mxu1 %v12777_v6  ;;  %v838_v42 = vsel %vm836_vm3, %v823_v37, %v825_v36 }
  0xa2   :  { %8199 = vmatprep.subr.msk.mxu0 %vm124_vm1, %v10314_v11  ;;  %8203 = vmatprep.subr.msk.mxu1 %vm124_vm1, %v10324_v15  ;;  %v827_v38 = vpop.permute.xlu1 %826 }
  0xa3   :  { %8200 = vmatpush1.msk.msra.mxu0 %vm124_vm1, %v10308_v9  ;;  %3660 = vperm.xlu0 %9853, %v3656_v44   ;;  %v839_v55 = vsel %vm836_vm3, %v825_v36, %v827_v38 }
  0xa4   :  { %8194 = vmatmul.mubr.msk.f32.gmra.mrb[6].mxu0 %vm117_vm2, %v8182_v29  ;;  %8197 = vmatmul.mubr.msk.f32.vlgmr.msra.gmra.mrb[4].mxu1 %vm117_vm2, %v8181_v24  ;;  %v821_v39 = vpop.permute.xlu0 %820 }
  0xa5   :  { %442 = vmatprep.mubr.f32.mxu1 %v12777_v6  ;;  %535 = vmatprep.mubr.f32.mxu0 %v12777_v6  ;;  %v837_v51 = vsel %vm836_vm3, %v821_v39, %v823_v37 }
  0xa6   :  { %8204 = vmatpush1.msk.msra.mxu1 %vm124_vm1, %v10316_v12  ;;  %8207 = vmatprep.subr.msk.mxu0 %vm124_vm1, %v10330_v16  ;;  %v831_v41 = vpop.permute.xlu1 %830 }
  0xa7   :  { %8211 = vmatprep.subr.msk.mxu1 %vm124_vm1, %v10340_v18  ;;  %3665 = vperm.xlu1 %9854, %v3657_v50   ;;  %v8234_v18 = vld [vmem:[%s12766_s1 + $0x38] sm:$0xf] }
  0xa8   :  { %8198 = vmatmul.mubr.msk.f32.gmra.mrb[6].mxu1 %vm117_vm2, %v8182_v29  ;;  %8201 = vmatmul.mubr.msk.f32.vlgmr.msra.gmra.mrb[0].mxu0 %vm117_vm2, %v50_v40  ;;  %v829_v43 = vpop.permute.xlu0 %828 }
  0xa9   :  { %541 = vmatprep.mubr.f32.mxu0 %v12777_v6  ;;  %612 = vmatprep.mubr.f32.mxu1 %v12777_v6  ;;  %v840_v48 = vsel %vm836_vm3, %v827_v38, %v829_v43  ;;  %v841_v59 = vsel %vm836_vm3, %v829_v43, %v831_v41 }
  0xaa   :  { %8208 = vmatpush1.msk.msra.mxu0 %vm124_vm1, %v10318_v13  ;;  %v835_v46 = vpop.permute.xlu1 %834  ;;  %v8233_v13 = vld [vmem:[%s12766_s1 + $0x30] sm:$0xff] }
  0xab   :  { %8217 = vmatprep.subr.msk.mxu0 %vm124_vm1, %v838_v42 }
  0xac   :  { %8202 = vmatmul.mubr.msk.f32.gmra.mrb[2].mxu0 %vm117_vm2, %v51_v45  ;;  %8205 = vmatmul.mubr.msk.f32.vlgmr.msra.gmra.mrb[0].mxu1 %vm117_vm2, %v50_v40  ;;  %v833_v49 = vpop.permute.xlu0 %832 }
  0xad   :  { %618 = vmatprep.mubr.f32.mxu1 %v12777_v6  ;;  %689 = vmatprep.mubr.f32.mxu0 %v12777_v6  ;;  %v842_v53 = vsel %vm836_vm3, %v831_v41, %v833_v49  ;;  %v843_v0 = vsel %vm836_vm3, %v833_v49, %v835_v46 }
  0xae   :  { %8212 = vmatpush1.msk.msra.mxu1 %vm124_vm1, %v10332_v17  ;;  %v1236_v52 = vpop.permute.xlu1 %1235 }
  0xaf   :  { %8221 = vmatprep.subr.msk.mxu1 %vm124_vm1, %v840_v48 }
  0xb0   :  { %8206 = vmatmul.mubr.msk.f32.gmra.mrb[2].mxu1 %vm117_vm2, %v51_v45  ;;  %8209 = vmatmul.mubr.msk.f32.vlgmr.msra.gmra.mrb[4].mxu0 %vm117_vm2, %v50_v40  ;;  %v1234_v54 = vpop.permute.xlu0 %1233 }
  0xb1   :  { %8218 = vmatpush1.msk.msra.mxu0 %vm124_vm1, %v837_v51  ;;  %695 = vmatprep.mubr.f32.mxu0 %v12777_v6  ;;  %v1249_v61 = vsel %vm1247_vm4, %v1234_v54, %v1236_v52 }
  0xb2   :  { %766 = vmatprep.mubr.f32.mxu1 %v12777_v6  ;;  %8225 = vmatprep.subr.msk.mxu0 %vm124_vm1, %v842_v53  ;;  %v1238_v56 = vpop.permute.xlu1 %1237 }
  0xb3   :  { %v1250_v10 = vsel %vm1247_vm4, %v1236_v52, %v1238_v56  ;;  %v8270_v52 = vld [vmem:[%s12766_s1 + $0x58] sm:$0xf] }
  0xb4   :  { %8210 = vmatmul.mubr.msk.f32.gmra.mrb[6].mxu0 %vm117_vm2, %v51_v45  ;;  %8213 = vmatmul.mubr.msk.f32.vlgmr.msra.gmra.mrb[4].mxu1 %vm117_vm2, %v50_v40  ;;  %v1232_v57 = vpop.permute.xlu0 %1231 }
  0xb5   :  { %8222 = vmatpush1.msk.msra.mxu1 %vm124_vm1, %v839_v55  ;;  %772 = vmatprep.mubr.f32.mxu1 %v12777_v6  ;;  %v1248_v5 = vsel %vm1247_vm4, %v1232_v57, %v1234_v54 }
  0xb6   :  { %930 = vmatprep.mubr.f32.mxu0 %v12777_v6  ;;  %8229 = vmatprep.subr.msk.mxu1 %vm124_vm1, %v835_v46  ;;  %v1242_v60 = vpop.permute.xlu1 %1241 }
  0xb8   :  { %8214 = vmatmul.mubr.msk.f32.gmra.mrb[6].mxu1 %vm117_vm2, %v51_v45  ;;  %8219 = vmatmul.mubr.msk.f32.vlgmr.msra.gmra.mrb[0].mxu0 %vm117_vm2, %v8215_v58  ;;  %v1240_v62 = vpop.permute.xlu0 %1239 }
  0xb9   :  { %8226 = vmatpush1.msk.msra.mxu0 %vm124_vm1, %v841_v59  ;;  %936 = vmatprep.mubr.f32.mxu0 %v12777_v6  ;;  %v1251_v2 = vsel %vm1247_vm4, %v1238_v56, %v1240_v62  ;;  %v1252_v14 = vsel %vm1247_vm4, %v1240_v62, %v1242_v60 }
  0xba   :  { %1007 = vmatprep.mubr.f32.mxu1 %v12777_v6  ;;  %8235 = vmatprep.subr.msk.mxu0 %vm124_vm1, %v1249_v61  ;;  %v1246_v1 = vpop.permute.xlu1 %1245 }
  0xbc   :  { %8220 = vmatmul.mubr.msk.f32.gmra.mrb[2].mxu0 %vm117_vm2, %v8216_v63  ;;  %8223 = vmatmul.mubr.msk.f32.vlgmr.msra.gmra.mrb[0].mxu1 %vm117_vm2, %v8215_v58  ;;  %v1244_v4 = vpop.permute.xlu0 %1243 }
  0xbd   :  { %8230 = vmatpush1.msk.msra.mxu1 %vm124_vm1, %v843_v0  ;;  %1013 = vmatprep.mubr.f32.mxu1 %v12777_v6  ;;  %v1253_v8 = vsel %vm1247_vm4, %v1242_v60, %v1244_v4  ;;  %v1254_v19 = vsel %vm1247_vm4, %v1244_v4, %v1246_v1  ;;  %v8287_v0 = vld [vmem:[%s12766_s1 + $0x60] sm:$0xff] }
  0xbe   :  { %1084 = vmatprep.mubr.f32.mxu0 %v12777_v6  ;;  %8239 = vmatprep.subr.msk.mxu1 %vm124_vm1, %v1251_v2  ;;  %v1647_v7 = vpop.permute.xlu1 %1646 }
  0xc0   :  { %8224 = vmatmul.mubr.msk.f32.gmra.mrb[2].mxu1 %vm117_vm2, %v8216_v63  ;;  %8227 = vmatmul.mubr.msk.f32.vlgmr.msra.gmra.mrb[4].mxu0 %vm117_vm2, %v8215_v58  ;;  %v1645_v9 = vpop.permute.xlu0 %1644 }
  0xc1   :  { %8236 = vmatpush1.msk.msra.mxu0 %vm124_vm1, %v1248_v5  ;;  %1090 = vmatprep.mubr.f32.mxu0 %v12777_v6  ;;  %v1660_v16 = vsel %vm1658_vm5, %v1645_v9, %v1647_v7 }
  0xc2   :  { %1161 = vmatprep.mubr.f32.mxu1 %v12777_v6  ;;  %8243 = vmatprep.subr.msk.mxu0 %vm124_vm1, %v1253_v8  ;;  %v1649_v11 = vpop.permute.xlu1 %1648 }
  0xc3   :  { %v1661_v27 = vsel %vm1658_vm5, %v1647_v7, %v1649_v11  ;;  %v8288_v7 = vld [vmem:[%s12766_s1 + $0x68] sm:$0xf] }
  0xc4   :  { %8228 = vmatmul.mubr.msk.f32.gmra.mrb[6].mxu0 %vm117_vm2, %v8216_v63  ;;  %8231 = vmatmul.mubr.msk.f32.vlgmr.msra.gmra.mrb[4].mxu1 %vm117_vm2, %v8215_v58  ;;  %v1643_v12 = vpop.permute.xlu0 %1642 }
  0xc5   :  { %8240 = vmatpush1.msk.msra.mxu1 %vm124_vm1, %v1250_v10  ;;  %1167 = vmatprep.mubr.f32.mxu1 %v12777_v6  ;;  %v1659_v23 = vsel %vm1658_vm5, %v1643_v12, %v1645_v9 }
  0xc6   :  { %1341 = vmatprep.mubr.f32.mxu0 %v12777_v6  ;;  %8247 = vmatprep.subr.msk.mxu1 %vm124_vm1, %v1246_v1  ;;  %v1653_v15 = vpop.permute.xlu1 %1652 }
  0xc8   :  { %8232 = vmatmul.mubr.msk.f32.gmra.mrb[6].mxu1 %vm117_vm2, %v8216_v63  ;;  %8237 = vmatmul.mubr.msk.f32.vlgmr.msra.gmra.mrb[0].mxu0 %vm117_vm2, %v8233_v13  ;;  %v1651_v17 = vpop.permute.xlu0 %1650 }
  0xc9   :  { %8244 = vmatpush1.msk.msra.mxu0 %vm124_vm1, %v1252_v14  ;;  %1347 = vmatprep.mubr.f32.mxu0 %v12777_v6  ;;  %v1662_v21 = vsel %vm1658_vm5, %v1649_v11, %v1651_v17  ;;  %v1663_v31 = vsel %vm1658_vm5, %v1651_v17, %v1653_v15 }
  0xca   :  { %1418 = vmatprep.mubr.f32.mxu1 %v12777_v6  ;;  %8253 = vmatprep.subr.msk.mxu0 %vm124_vm1, %v1660_v16  ;;  %v1657_v20 = vpop.permute.xlu1 %1656 }
  0xcc   :  { %8238 = vmatmul.mubr.msk.f32.gmra.mrb[2].mxu0 %vm117_vm2, %v8234_v18  ;;  %8241 = vmatmul.mubr.msk.f32.vlgmr.msra.gmra.mrb[0].mxu1 %vm117_vm2, %v8233_v13  ;;  %v1655_v22 = vpop.permute.xlu0 %1654 }
  0xcd   :  { %8248 = vmatpush1.msk.msra.mxu1 %vm124_vm1, %v1254_v19  ;;  %1424 = vmatprep.mubr.f32.mxu1 %v12777_v6  ;;  %v1664_v25 = vsel %vm1658_vm5, %v1653_v15, %v1655_v22  ;;  %v1665_v36 = vsel %vm1658_vm5, %v1655_v22, %v1657_v20 }
  0xce   :  { %1495 = vmatprep.mubr.f32.mxu0 %v12777_v6  ;;  %8257 = vmatprep.subr.msk.mxu1 %vm124_vm1, %v1662_v21  ;;  %v2058_v24 = vpop.permute.xlu1 %2057 }
  0xd0   :  { %8242 = vmatmul.mubr.msk.f32.gmra.mrb[2].mxu1 %vm117_vm2, %v8234_v18  ;;  %8245 = vmatmul.mubr.msk.f32.vlgmr.msra.gmra.mrb[4].mxu0 %vm117_vm2, %v8233_v13  ;;  %v2056_v26 = vpop.permute.xlu0 %2055 }
  0xd1   :  { %8254 = vmatpush1.msk.msra.mxu0 %vm124_vm1, %v1659_v23  ;;  %1501 = vmatprep.mubr.f32.mxu0 %v12777_v6  ;;  %v2071_v33 = vsel %vm2069_vm6, %v2056_v26, %v2058_v24  ;;  %v8306_v23 = vld [vmem:[%s12766_s1 + $0x78] sm:$0xf] }
  0xd2   :  { %1572 = vmatprep.mubr.f32.mxu1 %v12777_v6  ;;  %8261 = vmatprep.subr.msk.mxu0 %vm124_vm1, %v1664_v25  ;;  %v2060_v28 = vpop.permute.xlu1 %2059 }
  0xd3   :  { %v2072_v44 = vsel %vm2069_vm6, %v2058_v24, %v2060_v28 }
  0xd4   :  { %8246 = vmatmul.mubr.msk.f32.gmra.mrb[6].mxu0 %vm117_vm2, %v8234_v18  ;;  %8249 = vmatmul.mubr.msk.f32.vlgmr.msra.gmra.mrb[4].mxu1 %vm117_vm2, %v8233_v13  ;;  %v2054_v29 = vpop.permute.xlu0 %2053 }
  0xd5   :  { %8258 = vmatpush1.msk.msra.mxu1 %vm124_vm1, %v1661_v27  ;;  %1578 = vmatprep.mubr.f32.mxu1 %v12777_v6  ;;  %v2070_v40 = vsel %vm2069_vm6, %v2054_v29, %v2056_v26 }
  0xd6   :  { %1752 = vmatprep.mubr.f32.mxu0 %v12777_v6  ;;  %8265 = vmatprep.subr.msk.mxu1 %vm124_vm1, %v1657_v20  ;;  %v2064_v32 = vpop.permute.xlu1 %2063 }
  0xd8   :  { %8250 = vmatmul.mubr.msk.f32.gmra.mrb[6].mxu1 %vm117_vm2, %v8234_v18  ;;  %8255 = vmatmul.mubr.msk.f32.vlgmr.msra.gmra.mrb[0].mxu0 %vm117_vm2, %v8251_v30  ;;  %v2062_v34 = vpop.permute.xlu0 %2061  ;;  %v8305_v18 = vld [vmem:[%s12766_s1 + $0x70] sm:$0xff] }
  0xd9   :  { %8262 = vmatpush1.msk.msra.mxu0 %vm124_vm1, %v1663_v31  ;;  %1758 = vmatprep.mubr.f32.mxu0 %v12777_v6  ;;  %v2073_v38 = vsel %vm2069_vm6, %v2060_v28, %v2062_v34  ;;  %v2074_v48 = vsel %vm2069_vm6, %v2062_v34, %v2064_v32  ;;  %v8324_v34 = vld [vmem:[%s12766_s1 + $0x88] sm:$0xf] }
  0xda   :  { %1829 = vmatprep.mubr.f32.mxu1 %v12777_v6  ;;  %8271 = vmatprep.subr.msk.mxu0 %vm124_vm1, %v2071_v33  ;;  %v2068_v37 = vpop.permute.xlu1 %2067 }
  0xdc   :  { %8256 = vmatmul.mubr.msk.f32.gmra.mrb[2].mxu0 %vm117_vm2, %v8252_v35  ;;  %8259 = vmatmul.mubr.msk.f32.vlgmr.msra.gmra.mrb[0].mxu1 %vm117_vm2, %v8251_v30  ;;  %v2066_v39 = vpop.permute.xlu0 %2065 }
  0xdd   :  { %8266 = vmatpush1.msk.msra.mxu1 %vm124_vm1, %v1665_v36  ;;  %1835 = vmatprep.mubr.f32.mxu1 %v12777_v6  ;;  %v2075_v42 = vsel %vm2069_vm6, %v2064_v32, %v2066_v39  ;;  %v2076_v53 = vsel %vm2069_vm6, %v2066_v39, %v2068_v37  ;;  %v8323_v32 = vld [vmem:[%s12766_s1 + $0x80] sm:$0xff]  ;;  %s10184_s1 = scalar_lea.vmem %s8173_s20, 32 }
  0xde   :  { %1906 = vmatprep.mubr.f32.mxu0 %v12777_v6  ;;  %8275 = vmatprep.subr.msk.mxu1 %vm124_vm1, %v2073_v38  ;;  %v2469_v41 = vpop.permute.xlu1 %2468  ;;  %p10185_p8 = scmp.ne.s32.totalorder %s8173_s20, %s10184_s1  ;;  %p10190_p10 = scmp.lt.s32.totalorder %s10184_s1, %s10184_s1 }
  0xe0   :  { %8260 = vmatmul.mubr.msk.f32.gmra.mrb[2].mxu1 %vm117_vm2, %v8252_v35  ;;  %8263 = vmatmul.mubr.msk.f32.vlgmr.msra.gmra.mrb[4].mxu0 %vm117_vm2, %v8251_v30  ;;  %v2467_v43 = vpop.permute.xlu0 %2466  ;;  %p10191_p11 = por %p10190_p10, %p10189_p9 }
  0xe1   :  { %8272 = vmatpush1.msk.msra.mxu0 %vm124_vm1, %v2070_v40  ;;  %1912 = vmatprep.mubr.f32.mxu0 %v12777_v6  ;;  %v2482_v50 = vsel %vm2480_vm7, %v2467_v43, %v2469_v41 }
  0xe2   :  { %1983 = vmatprep.mubr.f32.mxu1 %v12777_v6  ;;  %8279 = vmatprep.subr.msk.mxu0 %vm124_vm1, %v2075_v42  ;;  %v2471_v45 = vpop.permute.xlu1 %2470  ;;  %p10192_p12 = pnand %p10191_p11, %p10185_p8 }
  0xe3   :  { %v2483_v61 = vsel %vm2480_vm7, %v2469_v41, %v2471_v45 }
  0xe4   :  { %8264 = vmatmul.mubr.msk.f32.gmra.mrb[6].mxu0 %vm117_vm2, %v8252_v35  ;;  %8267 = vmatmul.mubr.msk.f32.vlgmr.msra.gmra.mrb[4].mxu1 %vm117_vm2, %v8251_v30  ;;  %v2465_v46 = vpop.permute.xlu0 %2464 }
  0xe5   :  { %8276 = vmatpush1.msk.msra.mxu1 %vm124_vm1, %v2072_v44  ;;  %1989 = vmatprep.mubr.f32.mxu1 %v12777_v6  ;;  %v2481_v57 = vsel %vm2480_vm7, %v2465_v46, %v2467_v43 }
  0xe6   :  { %2163 = vmatprep.mubr.f32.mxu0 %v12777_v6  ;;  %8283 = vmatprep.subr.msk.mxu1 %vm124_vm1, %v2068_v37  ;;  %v2475_v49 = vpop.permute.xlu1 %2474 }
  0xe8   :  { %8268 = vmatmul.mubr.msk.f32.gmra.mrb[6].mxu1 %vm117_vm2, %v8252_v35  ;;  %8273 = vmatmul.mubr.msk.f32.vlgmr.msra.gmra.mrb[0].mxu0 %vm117_vm2, %v8269_v47  ;;  %v2473_v51 = vpop.permute.xlu0 %2472 }
  0xe9   :  { %8280 = vmatpush1.msk.msra.mxu0 %vm124_vm1, %v2074_v48  ;;  %2169 = vmatprep.mubr.f32.mxu0 %v12777_v6  ;;  %v2484_v55 = vsel %vm2480_vm7, %v2471_v45, %v2473_v51  ;;  %v2485_v1 = vsel %vm2480_vm7, %v2473_v51, %v2475_v49 }
  0xea   :  { %2240 = vmatprep.mubr.f32.mxu1 %v12777_v6  ;;  %8289 = vmatprep.subr.msk.mxu0 %vm124_vm1, %v2482_v50  ;;  %v2479_v54 = vpop.permute.xlu1 %2478 }
  0xec   :  { %8274 = vmatmul.mubr.msk.f32.gmra.mrb[2].mxu0 %vm117_vm2, %v8270_v52  ;;  %8277 = vmatmul.mubr.msk.f32.vlgmr.msra.gmra.mrb[0].mxu1 %vm117_vm2, %v8269_v47  ;;  %v2477_v56 = vpop.permute.xlu0 %2476 }
  0xed   :  { %8284 = vmatpush1.msk.msra.mxu1 %vm124_vm1, %v2076_v53  ;;  %2246 = vmatprep.mubr.f32.mxu1 %v12777_v6  ;;  %v2486_v59 = vsel %vm2480_vm7, %v2475_v49, %v2477_v56  ;;  %v2487_v8 = vsel %vm2480_vm7, %v2477_v56, %v2479_v54 }
  0xee   :  { %2317 = vmatprep.mubr.f32.mxu0 %v12777_v6  ;;  %8293 = vmatprep.subr.msk.mxu1 %vm124_vm1, %v2484_v55  ;;  %v2880_v58 = vpop.permute.xlu1 %2879 }
  0xf0   :  { %8278 = vmatmul.mubr.msk.f32.gmra.mrb[2].mxu1 %vm117_vm2, %v8270_v52  ;;  %8281 = vmatmul.mubr.msk.f32.vlgmr.msra.gmra.mrb[4].mxu0 %vm117_vm2, %v8269_v47  ;;  %v2878_v60 = vpop.permute.xlu0 %2877 }
  0xf1   :  { %8290 = vmatpush1.msk.msra.mxu0 %vm124_vm1, %v2481_v57  ;;  %2323 = vmatprep.mubr.f32.mxu0 %v12777_v6  ;;  %v2893_v4 = vsel %vm2891_vm8, %v2878_v60, %v2880_v58 }
  0xf2   :  { %2394 = vmatprep.mubr.f32.mxu1 %v12777_v6  ;;  %8297 = vmatprep.subr.msk.mxu0 %vm124_vm1, %v2486_v59  ;;  %v2882_v62 = vpop.permute.xlu1 %2881 }
  0xf3   :  { %v2894_v16 = vsel %vm2891_vm8, %v2880_v58, %v2882_v62 }
  0xf4   :  { %8282 = vmatmul.mubr.msk.f32.gmra.mrb[6].mxu0 %vm117_vm2, %v8270_v52  ;;  %8285 = vmatmul.mubr.msk.f32.vlgmr.msra.gmra.mrb[4].mxu1 %vm117_vm2, %v8269_v47  ;;  %v2876_v63 = vpop.permute.xlu0 %2875 }
  0xf5   :  { %8294 = vmatpush1.msk.msra.mxu1 %vm124_vm1, %v2483_v61  ;;  %2400 = vmatprep.mubr.f32.mxu1 %v12777_v6  ;;  %v2892_v12 = vsel %vm2891_vm8, %v2876_v63, %v2878_v60 }
  0xf6   :  { %2574 = vmatprep.mubr.f32.mxu0 %v12777_v6  ;;  %8301 = vmatprep.subr.msk.mxu1 %vm124_vm1, %v2479_v54  ;;  %v2886_v2 = vpop.permute.xlu1 %2885 }
  0xf8   :  { %8286 = vmatmul.mubr.msk.f32.gmra.mrb[6].mxu1 %vm117_vm2, %v8270_v52  ;;  %8291 = vmatmul.mubr.msk.f32.vlgmr.msra.gmra.mrb[0].mxu0 %vm117_vm2, %v8287_v0  ;;  %v2884_v5 = vpop.permute.xlu0 %2883 }
  0xf9   :  { %8298 = vmatpush1.msk.msra.mxu0 %vm124_vm1, %v2485_v1  ;;  %2580 = vmatprep.mubr.f32.mxu0 %v12777_v6  ;;  %v2895_v10 = vsel %vm2891_vm8, %v2882_v62, %v2884_v5  ;;  %v2896_v19 = vsel %vm2891_vm8, %v2884_v5, %v2886_v2 }
  0xfa   :  { %2651 = vmatprep.mubr.f32.mxu1 %v12777_v6  ;;  %8307 = vmatprep.subr.msk.mxu0 %vm124_vm1, %v2893_v4  ;;  %v2890_v9 = vpop.permute.xlu1 %2889 }
  0xfc   :  { %8292 = vmatmul.mubr.msk.f32.gmra.mrb[2].mxu0 %vm117_vm2, %v8288_v7  ;;  %8295 = vmatmul.mubr.msk.f32.vlgmr.msra.gmra.mrb[0].mxu1 %vm117_vm2, %v8287_v0  ;;  %v2888_v11 = vpop.permute.xlu0 %2887 }
  0xfd   :  { %8302 = vmatpush1.msk.msra.mxu1 %vm124_vm1, %v2487_v8  ;;  %2657 = vmatprep.mubr.f32.mxu1 %v12777_v6  ;;  %v2897_v13 = vsel %vm2891_vm8, %v2886_v2, %v2888_v11  ;;  %v2898_v24 = vsel %vm2891_vm8, %v2888_v11, %v2890_v9 }
  0xfe   :  { %2728 = vmatprep.mubr.f32.mxu0 %v12777_v6  ;;  %8311 = vmatprep.subr.msk.mxu1 %vm124_vm1, %v2895_v10  ;;  %v3291_v15 = vpop.permute.xlu1 %3290 }
 0x100   :  { %8296 = vmatmul.mubr.msk.f32.gmra.mrb[2].mxu1 %vm117_vm2, %v8288_v7  ;;  %8299 = vmatmul.mubr.msk.f32.vlgmr.msra.gmra.mrb[4].mxu0 %vm117_vm2, %v8287_v0  ;;  %v3289_v14 = vpop.permute.xlu0 %3288 }
 0x101   :  { %8308 = vmatpush1.msk.msra.mxu0 %vm124_vm1, %v2892_v12  ;;  %2734 = vmatprep.mubr.f32.mxu0 %v12777_v6  ;;  %v3304_v21 = vsel %vm3302_vm9, %v3289_v14, %v3291_v15 }
 0x102   :  { %2805 = vmatprep.mubr.f32.mxu1 %v12777_v6  ;;  %8315 = vmatprep.subr.msk.mxu0 %vm124_vm1, %v2897_v13  ;;  %v3293_v20 = vpop.permute.xlu1 %3292 }
 0x103   :  { %v3305_v30 = vsel %vm3302_vm9, %v3291_v15, %v3293_v20 }
 0x104   :  { %8300 = vmatmul.mubr.msk.f32.gmra.mrb[6].mxu0 %vm117_vm2, %v8288_v7  ;;  %8303 = vmatmul.mubr.msk.f32.vlgmr.msra.gmra.mrb[4].mxu1 %vm117_vm2, %v8287_v0  ;;  %v3287_v17 = vpop.permute.xlu0 %3286 }
 0x105   :  { %8312 = vmatpush1.msk.msra.mxu1 %vm124_vm1, %v2894_v16  ;;  %2811 = vmatprep.mubr.f32.mxu1 %v12777_v6  ;;  %v3303_v28 = vsel %vm3302_vm9, %v3287_v17, %v3289_v14 }
 0x106   :  { %2985 = vmatprep.mubr.f32.mxu0 %v12777_v6  ;;  %8319 = vmatprep.subr.msk.mxu1 %vm124_vm1, %v2890_v9  ;;  %v3297_v27 = vpop.permute.xlu1 %3296 }
 0x108   :  { %8304 = vmatmul.mubr.msk.f32.gmra.mrb[6].mxu1 %vm117_vm2, %v8288_v7  ;;  %8309 = vmatmul.mubr.msk.f32.vlgmr.msra.gmra.mrb[0].mxu0 %vm117_vm2, %v8305_v18  ;;  %v3295_v22 = vpop.permute.xlu0 %3294 }
 0x109   :  { %8316 = vmatpush1.msk.msra.mxu0 %vm124_vm1, %v2896_v19  ;;  %2991 = vmatprep.mubr.f32.mxu0 %v12777_v6  ;;  %v3306_v25 = vsel %vm3302_vm9, %v3293_v20, %v3295_v22  ;;  %v3307_v33 = vsel %vm3302_vm9, %v3295_v22, %v3297_v27 }
 0x10a   :  { %3062 = vmatprep.mubr.f32.mxu1 %v12777_v6  ;;  %8325 = vmatprep.subr.msk.mxu0 %vm124_vm1, %v3304_v21  ;;  %v3301_v31 = vpop.permute.xlu1 %3300 }
 0x10c   :  { %8310 = vmatmul.mubr.msk.f32.gmra.mrb[2].mxu0 %vm117_vm2, %v8306_v23  ;;  %8313 = vmatmul.mubr.msk.f32.vlgmr.msra.gmra.mrb[0].mxu1 %vm117_vm2, %v8305_v18  ;;  %v3299_v26 = vpop.permute.xlu0 %3298 }
 0x10d   :  { %8320 = vmatpush1.msk.msra.mxu1 %vm124_vm1, %v2898_v24  ;;  %3068 = vmatprep.mubr.f32.mxu1 %v12777_v6  ;;  %v3308_v29 = vsel %vm3302_vm9, %v3297_v27, %v3299_v26  ;;  %v3309_v35 = vsel %vm3302_vm9, %v3299_v26, %v3301_v31 }
 0x10e   :  { %3139 = vmatprep.mubr.f32.mxu0 %v12777_v6  ;;  %8329 = vmatprep.subr.msk.mxu1 %vm124_vm1, %v3306_v25 }
 0x110   :  { %8314 = vmatmul.mubr.msk.f32.gmra.mrb[2].mxu1 %vm117_vm2, %v8306_v23  ;;  %8317 = vmatmul.mubr.msk.f32.vlgmr.msra.gmra.mrb[4].mxu0 %vm117_vm2, %v8305_v18 }
 0x111   :  { %8326 = vmatpush1.msk.msra.mxu0 %vm124_vm1, %v3303_v28  ;;  %3145 = vmatprep.mubr.f32.mxu0 %v12777_v6 }
 0x112   :  { %3216 = vmatprep.mubr.f32.mxu1 %v12777_v6  ;;  %8333 = vmatprep.subr.msk.mxu0 %vm124_vm1, %v3308_v29 }
 0x114   :  { %8318 = vmatmul.mubr.msk.f32.gmra.mrb[6].mxu0 %vm117_vm2, %v8306_v23  ;;  %8321 = vmatmul.mubr.msk.f32.vlgmr.msra.gmra.mrb[4].mxu1 %vm117_vm2, %v8305_v18 }
 0x115   :  { %8330 = vmatpush1.msk.msra.mxu1 %vm124_vm1, %v3305_v30  ;;  %3222 = vmatprep.mubr.f32.mxu1 %v12777_v6 }
 0x116   :  { %3396 = vmatprep.mubr.f32.mxu0 %v12777_v6  ;;  %8337 = vmatprep.subr.msk.mxu1 %vm124_vm1, %v3301_v31 }
 0x118   :  { %8322 = vmatmul.mubr.msk.f32.gmra.mrb[6].mxu1 %vm117_vm2, %v8306_v23  ;;  %8327 = vmatmul.mubr.msk.f32.vlgmr.msra.gmra.mrb[0].mxu0 %vm117_vm2, %v8323_v32 }
 0x119   :  { %8334 = vmatpush1.msk.msra.mxu0 %vm124_vm1, %v3307_v33  ;;  %3402 = vmatprep.mubr.f32.mxu0 %v12777_v6 }
 0x11a   :  { %3473 = vmatprep.mubr.f32.mxu1 %v12777_v6 }
 0x11c   :  { %8328 = vmatmul.mubr.msk.f32.gmra.mrb[2].mxu0 %vm117_vm2, %v8324_v34  ;;  %8331 = vmatmul.mubr.msk.f32.vlgmr.msra.gmra.mrb[0].mxu1 %vm117_vm2, %v8323_v32 }
 0x11d   :  { %8338 = vmatpush1.msk.msra.mxu1 %vm124_vm1, %v3309_v35  ;;  %3479 = vmatprep.mubr.f32.mxu1 %v12777_v6 }
 0x11e   :  { %3550 = vmatprep.mubr.f32.mxu0 %v12777_v6 }
 0x120   :  { %8332 = vmatmul.mubr.msk.f32.gmra.mrb[2].mxu1 %vm117_vm2, %v8324_v34  ;;  %8335 = vmatmul.mubr.msk.f32.vlgmr.msra.gmra.mrb[4].mxu0 %vm117_vm2, %v8323_v32 }
 0x121   :  { %3556 = vmatprep.mubr.f32.mxu0 %v12777_v6  ;;  %3627 = vmatprep.mubr.f32.mxu1 %v12777_v6 }
 0x122   :  { %v3661_v36 = vpop.permute.xlu0 %3660 }
 0x124   :  { %8336 = vmatmul.mubr.msk.f32.gmra.mrb[6].mxu0 %vm117_vm2, %v8324_v34  ;;  %8339 = vmatmul.mubr.msk.f32.vlgmr.msra.gmra.mrb[4].mxu1 %vm117_vm2, %v8323_v32 }
 0x125   :  { %3633 = vmatprep.mubr.f32.mxu1 %v12777_v6  ;;  %4050 = vmatprep.mubr.f32.mxu0 %v12777_v6 }
 0x126   :  { %v3666_v40 = vpop.permute.xlu1 %3665 }
 0x128   :  { %8340 = vmatmul.mubr.msk.f32.gmra.mrb[6].mxu1 %vm117_vm2, %v8324_v34 }
 0x129   :  { %4157 = vmatprep.mubr.f32.mxu1 %v12777_v6 }
 0x1eb   :  { %v3398_v37 = vpop.f32.mrb[0].mxu0 }
 0x1ec   :  { %v3400_v38 = vpop.f32.mrb[1].mxu0  ;;  %v10796_v58 = vadd.f32 %v3661_v36, %v3398_v37 }
 0x1ed   :  { %v10776_v39 = vadd.f32 %v3661_v36, %v3400_v38 }
 0x1ee   :  { %v3684_v11 = vmax.f32 %v10796_v58, 0.0 }
 0x1ef   :  { %v3404_v41 = vpop.f32.mrb[2].mxu0  ;;  %v3475_v42 = vpop.f32.mrb[0].mxu1  ;;  %v3685_v47 = vmax.f32 %v10776_v39, 0.0 }
 0x1f0   :  { %v10778_v43 = vadd.f32 %v3661_v36, %v3475_v42  ;;  %v3406_v44 = vpop.f32.mrb[3].mxu0  ;;  %v3477_v45 = vpop.f32.mrb[1].mxu1  ;;  %v10786_v50 = vadd.f32 %v3666_v40, %v3404_v41 }
 0x1f1   :  { %v10780_v46 = vadd.f32 %v3666_v40, %v3406_v44  ;;  %v10784_v49 = vadd.f32 %v3661_v36, %v3477_v45 }
 0x1f2   :  { %v3686_v48 = vmax.f32 %v10778_v43, 0.0  ;;  %v3692_v0 = vmax.f32 %v10786_v50, 0.0 }
 0x1f3   :  { %v3481_v51 = vpop.f32.mrb[2].mxu1  ;;  %v3552_v52 = vpop.f32.mrb[4].mxu0  ;;  %v3693_v59 = vmax.f32 %v10780_v46, 0.0  ;;  %v3687_v60 = vmax.f32 %v10784_v49, 0.0 }
 0x1f4   :  { %v9855_v53 = vpack.i.bf16 %v3686_v48, %v3685_v47  ;;  %v10792_v54 = vadd.f32 %v3666_v40, %v3481_v51  ;;  %v10794_v55 = vadd.f32 %v3661_v36, %v3552_v52  ;;  %v3483_v56 = vpop.f32.mrb[3].mxu1  ;;  %v3554_v57 = vpop.f32.mrb[5].mxu0  ;;  %v9875_v17 = vpack.i.bf16 %v3692_v0, %v3684_v11 }
 0x1f5   :  { %v10802_v63 = vadd.f32 %v3666_v40, %v3483_v56  ;;  %v10816_v13 = vadd.f32 %v3661_v36, %v3554_v57 }
 0x1f6   :  { %v3694_v61 = vmax.f32 %v10792_v54, 0.0  ;;  %v3688_v62 = vmax.f32 %v10794_v55, 0.0  ;;  %9856 = vrot.lane.b32.xlu1 %v9855_v53, %s10215_s30 }
 0x1f7   :  { %v3558_v1 = vpop.f32.mrb[6].mxu0  ;;  %v3629_v2 = vpop.f32.mrb[4].mxu1  ;;  %v3695_v12 = vmax.f32 %v10802_v63, 0.0  ;;  %v3689_v23 = vmax.f32 %v10816_v13, 0.0 }
 0x1f8   :  { %v9860_v4 = vpack.i.bf16 %v3694_v61, %v3693_v59  ;;  %v9865_v5 = vpack.i.bf16 %v3688_v62, %v3687_v60  ;;  %v10810_v7 = vadd.f32 %v3666_v40, %v3558_v1  ;;  %v10812_v8 = vadd.f32 %v3661_v36, %v3629_v2  ;;  %v3560_v9 = vpop.f32.mrb[7].mxu0  ;;  %v3631_v10 = vpop.f32.mrb[5].mxu1 }
 0x1f9   :  { %v10819_v15 = vadd.f32 %v3666_v40, %v3560_v9  ;;  %v10836_v25 = vadd.f32 %v3661_v36, %v3631_v10 }
 0x1fa   :  { %v3696_v14 = vmax.f32 %v10810_v7, 0.0  ;;  %9861 = vrot.lane.b32.xlu1 %v9860_v4, %s10215_s30  ;;  %9866 = vrot.lane.b32.xlu0 %v9865_v5, %s10215_s30  ;;  %v3690_v19 = vmax.f32 %v10812_v8, 0.0 }
 0x1fb   :  { %v3635_v16 = vpop.f32.mrb[6].mxu1  ;;  %v3697_v24 = vmax.f32 %v10819_v15, 0.0  ;;  %v3691_v30 = vmax.f32 %v10836_v25, 0.0 }
 0x1fc   :  { %v9870_v18 = vpack.i.bf16 %v3696_v14, %v3695_v12  ;;  %v10830_v20 = vadd.f32 %v3666_v40, %v3635_v16  ;;  %v3637_v21 = vpop.f32.mrb[7].mxu1  ;;  %v9880_v27 = vpack.i.bf16 %v3690_v19, %v3689_v23 }
 0x1fd   :  { %v10832_v22 = vadd.f32 %v3666_v40, %v3637_v21 }
 0x1fe   :  { %v3698_v26 = vmax.f32 %v10830_v20, 0.0  ;;  %9876 = vrot.lane.b32.xlu1 %v9875_v17, %s10215_s30  ;;  %9871 = vrot.lane.b32.xlu0 %v9870_v18, %s10215_s30 }
 0x1ff   :  { %v3699_v29 = vmax.f32 %v10832_v22, 0.0 }
 0x200   :  { %v9885_v28 = vpack.i.bf16 %v3698_v26, %v3697_v24 }
 0x201   :  { %v9890_v31 = vpack.i.bf16 %v3699_v29, %v3691_v30 }
 0x202   :  { %9881 = vrot.lane.b32.xlu0 %v9880_v27, %s10215_s30  ;;  %9886 = vrot.lane.b32.xlu1 %v9885_v28, %s10215_s30 }
 0x206   :  { %9891 = vrot.lane.b32.xlu0 %v9890_v31, %s10215_s30 }
 0x268   :  { %v9857_v32 = vpop.permute.xlu1 %9856 }
 0x269   :  { %v9859_v33 = vunpack.i.h.bf16 %v9857_v32  ;;  %v9858_v34 = vunpack.i.l.bf16 %v9857_v32 }
 0x26b   :  { %v3749_v35 = vsel %vm109_vm0, %v9858_v34, %v9859_v33 }
 0x26c   :  { %v9862_v36 = vpop.permute.xlu1 %9861  ;;  %v9867_v37 = vpop.permute.xlu0 %9866  ;;  %v3779_v56 = vmax.f32 %v3685_v47, %v3749_v35 }
 0x26d   :  { %v9864_v38 = vunpack.i.h.bf16 %v9862_v36  ;;  %v9863_v40 = vunpack.i.l.bf16 %v9862_v36  ;;  %v9869_v41 = vunpack.i.h.bf16 %v9867_v37  ;;  %v9868_v42 = vunpack.i.l.bf16 %v9867_v37 }
 0x26f   :  { %v3756_v44 = vsel %vm109_vm0, %v9863_v40, %v9864_v38  ;;  %v3750_v45 = vsel %vm109_vm0, %v9859_v33, %v9868_v42  ;;  %v3751_v46 = vsel %vm109_vm0, %v9868_v42, %v9869_v41 }
 0x270   :  { %v9877_v49 = vpop.permute.xlu1 %9876  ;;  %v9872_v51 = vpop.permute.xlu0 %9871  ;;  %v10862_v52 = vmax.f32 %v3687_v60, %v3751_v46  ;;  %v10864_v53 = vmax.f32 %v3693_v59, %v3756_v44  ;;  %v3780_v57 = vmax.f32 %v3686_v48, %v3750_v45 }
 0x271   :  { %v9879_v58 = vunpack.i.h.bf16 %v9877_v49  ;;  %v9878_v1 = vunpack.i.l.bf16 %v9877_v49  ;;  %v9874_v2 = vunpack.i.h.bf16 %v9872_v51  ;;  %v9873_v4 = vunpack.i.l.bf16 %v9872_v51 }
 0x272   :  { %v9900_v5 = vpack.i.bf16 %v10864_v53, %v10862_v52  ;;  %v9895_v9 = vpack.i.bf16 %v3780_v57, %v3779_v56 }
 0x273   :  { %v3748_v10 = vsel %vm109_vm0, %v9878_v1, %v9858_v34  ;;  %v3755_v60 = vsel %vm109_vm0, %v9879_v58, %v9863_v40  ;;  %v3757_v59 = vsel %vm109_vm0, %v9864_v38, %v9873_v4  ;;  %v3758_v39 = vsel %vm109_vm0, %v9873_v4, %v9874_v2 }
 0x274   :  { %9901 = vrot.lane.b32.xlu0 %v9900_v5, %s10217_s11  ;;  %v9882_v43 = vpop.permute.xlu0 %9881  ;;  %9896 = vrot.lane.b32.xlu1 %v9895_v9, %s10217_s11  ;;  %v9887_v47 = vpop.permute.xlu1 %9886  ;;  %v3778_v48 = vmax.f32 %v3684_v11, %v3748_v10  ;;  %v3786_v16 = vmax.f32 %v3692_v0, %v3755_v60  ;;  %v3788_v17 = vmax.f32 %v3694_v61, %v3757_v59 }
 0x275   :  { %v9884_v18 = vunpack.i.h.bf16 %v9882_v43  ;;  %v9883_v21 = vunpack.i.l.bf16 %v9882_v43  ;;  %v9889_v27 = vunpack.i.h.bf16 %v9887_v47  ;;  %v9888_v28 = vunpack.i.l.bf16 %v9887_v47 }
 0x276   :  { %v9910_v31 = vpack.i.bf16 %v3786_v16, %v3778_v48  ;;  %v10884_v32 = vmax.f32 %v3695_v12, %v3758_v39 }
 0x277   :  { %v3752_v33 = vsel %vm109_vm0, %v9869_v41, %v9883_v21  ;;  %v3753_v34 = vsel %vm109_vm0, %v9883_v21, %v9884_v18  ;;  %v3759_v11 = vsel %vm109_vm0, %v9874_v2, %v9888_v28  ;;  %v3760_v50 = vsel %vm109_vm0, %v9888_v28, %v9889_v27 }
 0x278   :  { %9911 = vrot.lane.b32.xlu0 %v9910_v31, %s10217_s11  ;;  %v9892_v54 = vpop.permute.xlu0 %9891  ;;  %v9905_v61 = vpack.i.bf16 %v10884_v32, %v3788_v17  ;;  %v3782_v0 = vmax.f32 %v3688_v62, %v3752_v33  ;;  %v10896_v63 = vmax.f32 %v3689_v23, %v3753_v34  ;;  %v3790_v12 = vmax.f32 %v3696_v14, %v3759_v11 }
 0x279   :  { %v9894_v35 = vunpack.i.h.bf16 %v9892_v54  ;;  %v9893_v36 = vunpack.i.l.bf16 %v9892_v54  ;;  %v10902_v37 = vmax.f32 %v3697_v24, %v3760_v50 }
 0x27a   :  { %9906 = vrot.lane.b32.xlu1 %v9905_v61, %s10217_s11  ;;  %v9915_v38 = vpack.i.bf16 %v10896_v63, %v3782_v0 }
 0x27b   :  { %v10908_v55 = vmax.f32 %v3699_v29, %v9894_v35  ;;  %v3754_v62 = vsel %vm109_vm0, %v9884_v18, %v9893_v36  ;;  %v3761_v13 = vsel %vm109_vm0, %v9889_v27, %v9894_v35  ;;  %v10914_v7 = vmax.f32 %v3691_v30, %v9893_v36 }
 0x27c   :  { %v9920_v14 = vpack.i.bf16 %v10902_v37, %v3790_v12  ;;  %v10919_v15 = vmax.f32 %v3690_v19, %v3754_v62  ;;  %v10923_v23 = vmax.f32 %v3698_v26, %v3761_v13 }
 0x27e   :  { %9916 = vrot.lane.b32.xlu1 %v9915_v38, %s10217_s11  ;;  %9921 = vrot.lane.b32.xlu0 %v9920_v14, %s10217_s11  ;;  %v9925_v22 = vpack.i.bf16 %v10914_v7, %v10919_v15  ;;  %v9930_v24 = vpack.i.bf16 %v10908_v55, %v10923_v23 }
 0x282   :  { %9926 = vrot.lane.b32.xlu1 %v9925_v22, %s10217_s11  ;;  %9931 = vrot.lane.b32.xlu0 %v9930_v24, %s10217_s11 }
 0x2e6   :  { %v9902_v8 = vpop.permute.xlu0 %9901  ;;  %v9897_v19 = vpop.permute.xlu1 %9896 }
 0x2e7   :  { %v9903_v25 = vunpack.i.l.bf16 %v9902_v8  ;;  %v9899_v20 = vunpack.i.h.bf16 %v9897_v19  ;;  %v9898_v26 = vunpack.i.l.bf16 %v9897_v19  ;;  %v9904_v44 = vunpack.i.h.bf16 %v9902_v8 }
 0x2e9   :  { %v3844_v29 = vsel %vm1247_vm4, %v9899_v20, %v9903_v25  ;;  %v3843_v30 = vsel %vm1247_vm4, %v9898_v26, %v9899_v20 }
 0x2ea   :  { %v10935_v40 = vmax.f32 %v3780_v57, %v3844_v29  ;;  %v10937_v41 = vmax.f32 %v3779_v56, %v3843_v30  ;;  %v9912_v42 = vpop.permute.xlu0 %9911 }
 0x2eb   :  { %v9914_v45 = vunpack.i.h.bf16 %v9912_v42  ;;  %v9913_v46 = vunpack.i.l.bf16 %v9912_v42 }
 0x2ec   :  { %v9907_v49 = vpop.permute.xlu1 %9906  ;;  %v9935_v51 = vpack.i.bf16 %v10935_v40, %v10937_v41 }
 0x2ed   :  { %v3842_v58 = vsel %vm1247_vm4, %v9913_v46, %v9898_v26  ;;  %v3849_v1 = vsel %vm1247_vm4, %v9914_v45, %v9904_v44  ;;  %v9909_v2 = vunpack.i.h.bf16 %v9907_v49  ;;  %v9908_v4 = vunpack.i.l.bf16 %v9907_v49  ;;  %v5647_v46 = vld [vmem:[%s12769_s4 + $0x8] sm:$0xff]  ;;  %v5648_v49 = vld [vmem:[%s12769_s4 + $0x10] sm:$0xff] }
 0x2ee   :  { %v10943_v5 = vmax.f32 %v3778_v48, %v3842_v58  ;;  %v10945_v57 = vmax.f32 %v3786_v16, %v3849_v1  ;;  %9936 = vrot.lane.b32.xlu1 %v9935_v51, %s10216_s0 }
 0x2ef   :  { %v3850_v56 = vsel %vm1247_vm4, %v9904_v44, %v9908_v4  ;;  %v3851_v9 = vsel %vm1247_vm4, %v9908_v4, %v9909_v2 }
 0x2f0   :  { %v10951_v10 = vmax.f32 %v10864_v53, %v3850_v56  ;;  %v10953_v60 = vmax.f32 %v3788_v17, %v3851_v9  ;;  %v9917_v59 = vpop.permute.xlu1 %9916  ;;  %v9922_v39 = vpop.permute.xlu0 %9921  ;;  %v9945_v43 = vpack.i.bf16 %v10945_v57, %v10943_v5  ;;  %v9279_v20 = vpack.c.bf16 %v10945_v57, %v10943_v5 }
 0x2f1   :  { %v9919_v47 = vunpack.i.h.bf16 %v9917_v59  ;;  %v9918_v48 = vunpack.i.l.bf16 %v9917_v59  ;;  %v9924_v16 = vunpack.i.h.bf16 %v9922_v39  ;;  %v9923_v18 = vunpack.i.l.bf16 %v9922_v39 }
 0x2f2   :  { %9946 = vrot.lane.b32.xlu1 %v9945_v43, %s10216_s0  ;;  %v9940_v21 = vpack.i.bf16 %v10953_v60, %v10951_v10  ;;  %v10020_v45 = vpack.i.bf16 %v10953_v60, %v10935_v40 }
 0x2f3   :  { %v3845_v27 = vsel %vm1247_vm4, %v9903_v25, %v9918_v48  ;;  %v3846_v53 = vsel %vm1247_vm4, %v9918_v48, %v9919_v47  ;;  %v3852_v17 = vsel %vm1247_vm4, %v9909_v2, %v9923_v18  ;;  %v3853_v28 = vsel %vm1247_vm4, %v9923_v18, %v9924_v16 }
 0x2f4   :  { %v10965_v31 = vmax.f32 %v10862_v52, %v3845_v27  ;;  %v10967_v33 = vmax.f32 %v3782_v0, %v3846_v53  ;;  %v10970_v34 = vmax.f32 %v10884_v32, %v3852_v17  ;;  %v10972_v11 = vmax.f32 %v3790_v12, %v3853_v28  ;;  %v9927_v50 = vpop.permute.xlu1 %9926  ;;  %9941 = vrot.lane.b32.xlu0 %v9940_v21, %s10216_s0  ;;  %v9932_v54 = vpop.permute.xlu0 %9931 }
 0x2f5   :  { %v9929_v61 = vunpack.i.h.bf16 %v9927_v50  ;;  %v9928_v35 = vunpack.i.l.bf16 %v9927_v50  ;;  %v9934_v36 = vunpack.i.h.bf16 %v9932_v54  ;;  %v9933_v38 = vunpack.i.l.bf16 %v9932_v54 }
 0x2f6   :  { %v9950_v62 = vpack.i.bf16 %v10967_v33, %v10965_v31  ;;  %v9955_v52 = vpack.i.bf16 %v10972_v11, %v10970_v34  ;;  %v9285_v25 = vpack.c.bf16 %v10953_v60, %v10935_v40  ;;  %v9291_v29 = vpack.c.bf16 %v10972_v11, %v10967_v33 }
 0x2f7   :  { %v3847_v0 = vsel %vm1247_vm4, %v9919_v47, %v9928_v35  ;;  %v3848_v32 = vsel %vm1247_vm4, %v9928_v35, %v9929_v61  ;;  %v3854_v14 = vsel %vm1247_vm4, %v9924_v16, %v9933_v38  ;;  %v3855_v22 = vsel %vm1247_vm4, %v9933_v38, %v9934_v36 }
 0x2f8   :  { %v10982_v12 = vmax.f32 %v10896_v63, %v3847_v0  ;;  %v3878_v13 = vmax.f32 %v10919_v15, %v3848_v32  ;;  %9951 = vrot.lane.b32.xlu0 %v9950_v62, %s10216_s0  ;;  %v10989_v24 = vmax.f32 %v10902_v37, %v3854_v14  ;;  %v3886_v8 = vmax.f32 %v10923_v23, %v3855_v22 }
 0x2f9   :  { %9956 = vrot.lane.b32.xlu1 %v9955_v52, %s10216_s0  ;;  %v9282_v15 = vpack.c.bf16 %v10970_v34, %v10965_v31  ;;  %v9276_v23 = vpack.c.bf16 %v10951_v10, %v10937_v41  ;;  %v3879_v30 = vmax.f32 %v10914_v7, %v9929_v61  ;;  %v3887_v42 = vmax.f32 %v10908_v55, %v9934_v36  ;;  %v5646_v55 = vld [vmem:[%s12769_s4] sm:$0xff] }
 0x2fa   :  { %v9960_v19 = vpack.i.bf16 %v3878_v13, %v10982_v12  ;;  %v9965_v63 = vpack.i.bf16 %v3886_v8, %v10989_v24  ;;  %v11001_v37 = vpack.c.bf16 %v3886_v8, %v3878_v13  ;;  %v9288_v26 = vpack.c.bf16 %v10989_v24, %v10982_v12 }
 0x2fb   :  { %v10005_v44 = vpack.i.bf16 %v3887_v42, %v3879_v30  ;;  %v10025_v7 = vpack.i.bf16 %v10951_v10, %v10937_v41  ;;  %v11202_v41 = vld [vmem:[%s12768_s3 + $0x10] sm:$0xff] }
 0x2fc   :  { %9961 = vrot.lane.b32.xlu0 %v9960_v19, %s10216_s0 }
 0x2fd   :  { %9966 = vrot.lane.b32.xlu1 %v9965_v63, %s10216_s0 }
 0x300   :  { %9971 = vrot.lane.b32.xlu0 %v9935_v51, %s10220_s14  ;;  %v5649_v51 = vld [vmem:[%s12769_s4 + $0x18] sm:$0xff] }
 0x301   :  { %9976 = vrot.lane.b32.xlu1 %v9940_v21, %s10220_s14 }
 0x304   :  { %9981 = vrot.lane.b32.xlu0 %v9945_v43, %s10220_s14 }
 0x305   :  { %9986 = vrot.lane.b32.xlu1 %v9950_v62, %s10220_s14 }
 0x308   :  { %9991 = vrot.lane.b32.xlu0 %v9955_v52, %s10220_s14 }
 0x309   :  { %9996 = vrot.lane.b32.xlu1 %v9960_v19, %s10220_s14 }
 0x30c   :  { %10001 = vrot.lane.b32.xlu0 %v9965_v63, %s10220_s14 }
 0x30d   :  { %10006 = vrot.lane.b32.xlu1 %v10005_v44, %s10220_s14 }
 0x310   :  { %10011 = vrot.lane.b32.xlu0 %v9950_v62, %s10222_s16  ;;  %v11062_v62 = vld [vmem:[%s12768_s3 + $0x20] sm:$0xff] }
 0x311   :  { %10016 = vrot.lane.b32.xlu1 %v9955_v52, %s10222_s16 }
 0x314   :  { %10021 = vrot.lane.b32.xlu0 %v10020_v45, %s10222_s16 }
 0x315   :  { %10026 = vrot.lane.b32.xlu1 %v10025_v7, %s10222_s16 }
 0x318   :  { %10031 = vrot.lane.b32.xlu0 %v9945_v43, %s10222_s16 }
 0x319   :  { %10036 = vrot.lane.b32.xlu1 %v9960_v19, %s10222_s16 }
 0x31c   :  { %10041 = vrot.lane.b32.xlu0 %v9965_v63, %s10222_s16 }
 0x31d   :  { %10046 = vrot.lane.b32.xlu1 %v10005_v44, %s10222_s16  ;;  %v11076_v44 = vld [vmem:[%s12768_s3 + $0x28] sm:$0xff] }
 0x320   :  { %5652 = vperm.xlu0 %9853, %v5646_v55  }
 0x321   :  { %5657 = vperm.xlu1 %9854, %v5647_v46   ;;  %v11088_v46 = vld [vmem:[%s12768_s3 + $0x38] sm:$0xff] }
 0x324   :  { %5662 = vperm.xlu0 %9853, %v5648_v49  }
 0x325   :  { %5667 = vperm.xlu1 %9854, %v5649_v51  }
 0x360   :  { %v9937_v58 = vpop.permute.xlu1 %9936 }
 0x361   :  { %v9939_v2 = vunpack.i.h.bf16 %v9937_v58  ;;  %v9938_v4 = vunpack.i.l.bf16 %v9937_v58  ;;  %v11104_v58 = vld [vmem:[%s12768_s3 + $0x30] sm:$0xff] }
 0x363   :  { %v3940_v48 = vsel %vm836_vm3, %v9938_v4, %v9939_v2 }
 0x364   :  { %v9947_v1 = vpop.permute.xlu1 %9946 }
 0x365   :  { %v9949_v56 = vunpack.i.h.bf16 %v9947_v1  ;;  %v9948_v9 = vunpack.i.l.bf16 %v9947_v1 }
 0x366   :  { %v9942_v59 = vpop.permute.xlu0 %9941 }
 0x367   :  { %v3939_v39 = vsel %vm836_vm3, %v9948_v9, %v9938_v4  ;;  %v9944_v43 = vunpack.i.h.bf16 %v9942_v59  ;;  %v9943_v47 = vunpack.i.l.bf16 %v9942_v59 }
 0x369   :  { %v3945_v16 = vsel %vm836_vm3, %v9949_v56, %v9943_v47  ;;  %v3946_v18 = vsel %vm836_vm3, %v9943_v47, %v9944_v43 }
 0x36a   :  { %v9252_v27 = vpack.c.bf16 %v3946_v18, %v3940_v48  ;;  %v9255_v53 = vpack.c.bf16 %v3945_v16, %v3939_v39  ;;  %v9952_v17 = vpop.permute.xlu0 %9951 }
 0x36b   :  { %v9954_v28 = vunpack.i.h.bf16 %v9952_v17  ;;  %v9953_v50 = vunpack.i.l.bf16 %v9952_v17  ;;  %v9957_v54 = vpop.permute.xlu1 %9956 }
 0x36c   :  { %v9959_v61 = vunpack.i.h.bf16 %v9957_v54  ;;  %v9958_v35 = vunpack.i.l.bf16 %v9957_v54  ;;  %9254 = vmatprep.subr.msk.bf16.mxu0 %vm11049_vm12, %v9252_v27  ;;  %v11178_v27 = vld [vmem:[%s12768_s3 + $0x8] sm:$0xff]  ;;  %v11218_v54 = vld [vmem:[%s12768_s3 + $0x18] sm:$0xff] }
 0x36d   :  { %v3941_v36 = vsel %vm836_vm3, %v9939_v2, %v9953_v50  ;;  %v3942_v38 = vsel %vm836_vm3, %v9953_v50, %v9954_v28  ;;  %9257 = vmatpush1.bf16.msk.msra.mxu0 %vm11049_vm12, %v9255_v53 }
 0x36e   :  { %v3947_v52 = vsel %vm836_vm3, %v9944_v43, %v9958_v35  ;;  %v3948_v0 = vsel %vm836_vm3, %v9958_v35, %v9959_v61  ;;  %v9962_v32 = vpop.permute.xlu0 %9961  ;;  %v11162_v43 = vld [vmem:[%s12768_s3] sm:$0xff] }
 0x36f   :  { %v9258_v13 = vpack.c.bf16 %v3948_v0, %v3942_v38  ;;  %v9261_v14 = vpack.c.bf16 %v3947_v52, %v3941_v36  ;;  %v9964_v22 = vunpack.i.h.bf16 %v9962_v32  ;;  %v9963_v8 = vunpack.i.l.bf16 %v9962_v32  ;;  %v9967_v19 = vpop.permute.xlu1 %9966 }
 0x370   :  { %v9969_v63 = vunpack.i.h.bf16 %v9967_v19  ;;  %v9968_v30 = vunpack.i.l.bf16 %v9967_v19  ;;  %8347 = vmatmul.mubr.msk.f32.vlgmr.msra.gmra.mrb[8].mxu0 %vm3958_vm13, %v11062_v62 }
 0x371   :  { %v3944_v42 = vsel %vm836_vm3, %v9963_v8, %v9964_v22  ;;  %9260 = vmatprep.subr.msk.bf16.mxu0 %vm11049_vm12, %v9258_v13  ;;  %9619 = vmatprep.subr.msk.bf16.mxu1 %vm11049_vm12, %v9258_v13  ;;  %v3943_v40 = vsel %vm836_vm3, %v9954_v28, %v9963_v8 }
 0x372   :  { %v9270_v45 = vpack.c.bf16 %v9969_v63, %v9964_v22  ;;  %v3950_v7 = vsel %vm836_vm3, %v9968_v30, %v9969_v63  ;;  %9263 = vmatpush1.bf16.msk.msra.mxu0 %vm11049_vm12, %v9261_v14  ;;  %9620 = vmatpush1.bf16.msk.msra.mxu1 %vm11049_vm12, %v9261_v14  ;;  %v11083_v55 = vpop.permute.xlu0 %9971  ;;  %v3949_v60 = vsel %vm836_vm3, %v9959_v61, %v9968_v30 }
 0x373   :  { %v9264_v49 = vpack.c.bf16 %v3950_v7, %v3944_v42  ;;  %v11090_v51 = vpop.permute.xlu1 %9976  ;;  %4056 = vmatprep.mubr.f32.mxu0 %v12777_v6  ;;  %v9267_v47 = vpack.c.bf16 %v3949_v60, %v3943_v40  ;;  %v9974_v38 = vunpack.i.h.bf16 %v11083_v55  ;;  %v9973_v30 = vunpack.i.l.bf16 %v11083_v55  ;;  %v11294_v7 = vld [vmem:[%s12768_s3 + $0x40] sm:$0xff] }
 0x374   :  { %9272 = vmatprep.subr.msk.bf16.mxu1 %vm11049_vm12, %v9270_v45  ;;  %8348 = vmatmul.mubr.msk.f32.gmra.mrb[10].mxu0 %vm3958_vm13, %v11076_v44  ;;  %v9979_v61 = vunpack.i.h.bf16 %v11090_v51  ;;  %v9978_v42 = vunpack.i.l.bf16 %v11090_v51 }
 0x375   :  { %8356 = vmatmul.mubr.msk.f32.vlgmr.msra.gmra.mrb[8].mxu1 %vm3958_vm13, %v11088_v46  ;;  %9266 = vmatprep.subr.msk.bf16.mxu0 %vm11049_vm12, %v9264_v49  ;;  %v4756_v55 = vsel %vm2480_vm7, %v9973_v30, %v9974_v38 }
 0x376   :  { %9275 = vmatpush3.bf16.msk.msra.mxu1 %vm11049_vm12, %v9270_v45  ;;  %v11108_v1 = vpop.permute.xlu0 %9981  ;;  %4062 = vmatprep.mubr.f32.mxu0 %v12777_v6  ;;  %v4763_v51 = vsel %vm2480_vm7, %v9978_v42, %v9979_v61 }
 0x377   :  { %v11111_v2 = vpop.permute.xlu1 %9986  ;;  %9284 = vmatprep.subr.msk.bf16.mxu1 %vm11049_vm12, %v9282_v15  ;;  %8897 = vmatprep.mubr.msk.f32.mxu1 %vm3958_vm13, %v11062_v62 }
 0x378   :  { %8349 = vmatmul.mubr.msk.f32.gmra.mrb[12].mxu0 %vm3958_vm13, %v11104_v58  ;;  %v9989_v4 = vunpack.i.h.bf16 %v11111_v2  ;;  %v9988_v56 = vunpack.i.l.bf16 %v11111_v2 }
 0x379   :  { %8898 = vmatmul.mubr.msk.f32.vlgmr.msra.gmra.mrb[10].mxu1 %vm3958_vm13, %v11076_v44  ;;  %4068 = vmatprep.mubr.f32.mxu0 %v12777_v6 }
 0x37a   :  { %9287 = vmatpush1.bf16.msk.msra.mxu1 %vm11049_vm12, %v9285_v25  ;;  %v11132_v31 = vpop.permute.xlu0 %9991  ;;  %8900 = vmatprep.mubr.msk.f32.mxu1 %vm3958_vm13, %v11104_v58  ;;  %v4758_v59 = vsel %vm2480_vm7, %v9988_v56, %v9989_v4 }
 0x37b   :  { %v9994_v34 = vunpack.i.h.bf16 %v11132_v31  ;;  %v9993_v15 = vunpack.i.l.bf16 %v11132_v31  ;;  %v11138_v9 = vpop.permute.xlu1 %9996  ;;  %9296 = vmatprep.subr.msk.bf16.mxu1 %vm11049_vm12, %v11001_v37 }
 0x37c   :  { %8350 = vmatmul.mubr.msk.f32.gmra.mrb[14].mxu0 %vm3958_vm13, %v11088_v46  ;;  %v9999_v36 = vunpack.i.h.bf16 %v11138_v9 }
 0x37d   :  { %v4765_v25 = vsel %vm2480_vm7, %v9993_v15, %v9994_v34  ;;  %8901 = vmatmul.mubr.msk.f32.gmra.mrb[12].mxu1 %vm3958_vm13, %v11088_v46  ;;  %4139 = vmatprep.mubr.f32.mxu0 %v12777_v6  ;;  %v4764_v52 = vsel %vm2480_vm7, %v9979_v61, %v9993_v15 }
 0x37e   :  { %v11156_v39 = vpop.permute.xlu0 %10001  ;;  %4517 = vmatprep.mubr.f32.mxu1 %v12777_v6  ;;  %v9306_v48 = vpack.c.bf16 %v4765_v25, %v4758_v59  ;;  %v11343_v25 = vld [vmem:[%s12768_s3 + $0x58] sm:$0xff] }
 0x37f   :  { %v10007_v16 = vpop.permute.xlu1 %10006 }
 0x380   :  { %8353 = vmatmul.mubr.msk.f32.vlgmr.msra.gmra.mrb[16].mxu0 %vm3958_vm13, %v11062_v62  ;;  %v10009_v17 = vunpack.i.h.bf16 %v10007_v16  ;;  %v10008_v28 = vunpack.i.l.bf16 %v10007_v16 }
 0x381   :  { %9269 = vmatpush1.bf16.msk.msra.mxu0 %vm11049_vm12, %v9267_v47  ;;  %8376 = vmatmul.mubr.msk.f32.vlgmr.msra.gmra.mrb[14].mxu1 %vm3958_vm13, %v11162_v43  ;;  %v9984_v47 = vunpack.i.h.bf16 %v11108_v1 }
 0x382   :  { %9299 = vmatpush3.bf16.msk.msra.mxu1 %vm11049_vm12, %v11001_v37  ;;  %v11173_v18 = vpop.permute.xlu0 %10011  ;;  %9278 = vmatprep.subr.msk.bf16.mxu0 %vm11049_vm12, %v9276_v23  ;;  %v10004_v23 = vunpack.i.h.bf16 %v11156_v39  ;;  %v4761_v13 = vsel %vm2480_vm7, %v9999_v36, %v10008_v28 }
 0x383   :  { %9308 = vmatprep.subr.msk.bf16.mxu1 %vm11049_vm12, %v9306_v48  ;;  %v11187_v53 = vpop.permute.xlu1 %10016  ;;  %4145 = vmatprep.mubr.f32.mxu0 %v12777_v6  ;;  %v10014_v22 = vunpack.i.h.bf16 %v11173_v18  ;;  %v10013_v12 = vunpack.i.l.bf16 %v11173_v18  ;;  %v9983_v48 = vunpack.i.l.bf16 %v11108_v1 }
 0x384   :  { %4523 = vmatprep.mubr.f32.mxu1 %v12777_v6  ;;  %8354 = vmatmul.mubr.msk.f32.gmra.mrb[18].mxu0 %vm3958_vm13, %v11076_v44  ;;  %v4768_v32 = vsel %vm2480_vm7, %v10004_v23, %v10009_v17  ;;  %v10019_v8 = vunpack.i.h.bf16 %v11187_v53  ;;  %v10018_v24 = vunpack.i.l.bf16 %v11187_v53  ;;  %v10003_v53 = vunpack.i.l.bf16 %v11156_v39  ;;  %v11394_v39 = vld [vmem:[%s12768_s3 + $0x60] sm:$0xff] }
 0x385   :  { %8377 = vmatmul.mubr.msk.f32.gmra.mrb[16].mxu1 %vm3958_vm13, %v11178_v27  ;;  %4151 = vmatprep.mubr.f32.mxu0 %v12777_v6  ;;  %v9998_v17 = vunpack.i.l.bf16 %v11138_v9  ;;  %v4755_v61 = vsel %vm2480_vm7, %v9983_v48, %v9973_v30  ;;  %v11409_v9 = vld [vmem:[%s12768_s3 + $0x68] sm:$0xff] }
 0x386   :  { %v11195_v37 = vpop.permute.xlu0 %10021  ;;  %4529 = vmatprep.mubr.f32.mxu1 %v12777_v6  ;;  %v5229_v45 = vsel %vm3302_vm9, %v10018_v24, %v10019_v8 }
 0x387   :  { %v11204_v10 = vpop.permute.xlu1 %10026  ;;  %v10024_v40 = vunpack.i.h.bf16 %v11195_v37  ;;  %v10023_v33 = vunpack.i.l.bf16 %v11195_v37  ;;  %v4759_v31 = vsel %vm2480_vm7, %v9989_v4, %v9998_v17 }
 0x388   :  { %8355 = vmatmul.mubr.msk.f32.gmra.mrb[20].mxu0 %vm3958_vm13, %v11104_v58 }
 0x389   :  { %8378 = vmatmul.mubr.msk.f32.gmra.mrb[18].mxu1 %vm3958_vm13, %v11202_v41  ;;  %4228 = vmatprep.mubr.f32.mxu0 %v12777_v6  ;;  %v5221_v16 = vsel %vm3302_vm9, %v10023_v33, %v10013_v12  ;;  %v5228_v18 = vsel %vm3302_vm9, %v10024_v40, %v10018_v24 }
 0x38a   :  { %v11211_v50 = vpop.permute.xlu0 %10031  ;;  %4535 = vmatprep.mubr.f32.mxu1 %v12777_v6  ;;  %v9333_v28 = vpack.c.bf16 %v5228_v18, %v5221_v16 }
 0x38b   :  { %v11221_v35 = vpop.permute.xlu1 %10036  ;;  %v10034_v2 = vunpack.i.h.bf16 %v11211_v50  ;;  %v10033_v4 = vunpack.i.l.bf16 %v11211_v50 }
 0x38c   :  { %v10038_v0 = vunpack.i.l.bf16 %v11221_v35  ;;  %8359 = vmatmul.mubr.msk.f32.vlgmr.msra.gmra.mrb[22].mxu0 %vm3958_vm13, %v11062_v62  ;;  %v4757_v62 = vsel %vm2480_vm7, %v9974_v38, %v9988_v56  ;;  %v11326_v56 = vld [vmem:[%s12768_s3 + $0x50] sm:$0xff]  ;;  %v10039_v59 = vunpack.i.h.bf16 %v11221_v35  ;;  %v4762_v38 = vsel %vm2480_vm7, %v9984_v47, %v9978_v42 }
 0x38d   :  { %8379 = vmatmul.mubr.msk.f32.gmra.mrb[8].mxu1 %vm3958_vm13, %v11218_v54  ;;  %9281 = vmatpush1.bf16.msk.msra.mxu0 %vm11049_vm12, %v9279_v20  ;;  %v9309_v57 = vpack.c.bf16 %v4764_v52, %v4757_v62  ;;  %v9318_v20 = vpack.c.bf16 %v4768_v32, %v4761_v13  ;;  %v4767_v32 = vsel %vm2480_vm7, %v10003_v53, %v10004_v23  ;;  %v8420_v23 = vld [vmem:[%s12768_s3 + $0x70] sm:$0xff] }
 0x38e   :  { %v11242_v14 = vpop.permute.xlu0 %10041  ;;  %4234 = vmatprep.mubr.f32.mxu0 %v12777_v6  ;;  %9290 = vmatprep.subr.msk.bf16.mxu0 %vm11049_vm12, %v9288_v26  ;;  %v11259_v19 = vsel %vm3302_vm9, %v10014_v22, %v10038_v0  ;;  %v9303_v13 = vpack.c.bf16 %v4762_v38, %v4755_v61  ;;  %v4760_v62 = vsel %vm2480_vm7, %v9998_v17, %v9999_v36 }
 0x38f   :  { %v10043_v5 = vunpack.i.l.bf16 %v11242_v14  ;;  %8907 = vmatprep.mubr.msk.f32.mxu1 %vm3958_vm13, %v11162_v43  ;;  %v10047_v15 = vpop.permute.xlu1 %10046  ;;  %v10044_v11 = vunpack.i.h.bf16 %v11242_v14  ;;  %v4766_v36 = vsel %vm2480_vm7, %v9994_v34, %v10003_v53  ;;  %v5224_v24 = vsel %vm3302_vm9, %v10038_v0, %v10039_v59 }
 0x390   :  { %8360 = vmatmul.mubr.msk.f32.gmra.mrb[24].mxu0 %vm3958_vm13, %v11076_v44  ;;  %v5222_v44 = vsel %vm3302_vm9, %v10013_v12, %v10014_v22  ;;  %v10048_v60 = vunpack.i.l.bf16 %v10047_v15  ;;  %v9312_v22 = vpack.c.bf16 %v4767_v32, %v4760_v62  ;;  %v9315_v34 = vpack.c.bf16 %v4766_v36, %v4759_v31 }
 0x391   :  { %v11264_v63 = vsel %vm3302_vm9, %v10019_v8, %v10043_v5  ;;  %8908 = vmatmul.mubr.msk.f32.vlgmr.msra.gmra.mrb[10].mxu1 %vm3958_vm13, %v11178_v27  ;;  %4240 = vmatprep.mubr.f32.mxu0 %v12777_v6  ;;  %v9330_v49 = vpack.c.bf16 %v5229_v45, %v5222_v44  ;;  %v8421_v8 = vld [vmem:[%s12768_s3 + $0x78] sm:$0xff]  ;;  %v5231_v50 = vsel %vm3302_vm9, %v10043_v5, %v10044_v11 }
 0x392   :  { %v9339_v26 = vpack.c.bf16 %v11264_v63, %v11259_v19  ;;  %9311 = vmatpush1.bf16.msk.msra.mxu1 %vm11049_vm12, %v9309_v57  ;;  %8910 = vmatprep.mubr.msk.f32.mxu1 %vm3958_vm13, %v11202_v41  ;;  %v5225_v1 = vsel %vm3302_vm9, %v10039_v59, %v10048_v60  ;;  %v9336_v30 = vpack.c.bf16 %v5231_v50, %v5224_v24 }
 0x393   :  { %9320 = vmatprep.subr.msk.bf16.mxu1 %vm11049_vm12, %v9318_v20 }
 0x394   :  { %8361 = vmatmul.mubr.msk.f32.gmra.mrb[26].mxu0 %vm3958_vm13, %v11104_v58  ;;  %v11308_v58 = vld [vmem:[%s12768_s3 + $0x48] sm:$0xff] }
 0x395   :  { %8911 = vmatmul.mubr.msk.f32.gmra.mrb[12].mxu1 %vm3958_vm13, %v11218_v54  ;;  %4246 = vmatprep.mubr.f32.mxu0 %v12777_v6 }
 0x396   :  { %4955 = vmatprep.mubr.f32.mxu1 %v12777_v6 }
 0x398   :  { %8362 = vmatmul.mubr.msk.f32.gmra.mrb[28].mxu0 %vm3958_vm13, %v11088_v46  ;;  %v9300_v46 = vpack.c.bf16 %v4763_v51, %v4756_v55 }
 0x399   :  { %8403 = vmatmul.mubr.msk.f32.vlgmr.msra.gmra.mrb[14].mxu1 %vm3958_vm13, %v11294_v7  ;;  %4428 = vmatprep.mubr.f32.mxu0 %v12777_v6 }
 0x39a   :  { %9323 = vmatpush3.bf16.msk.msra.mxu1 %vm11049_vm12, %v9318_v20  ;;  %4961 = vmatprep.mubr.f32.mxu1 %v12777_v6 }
 0x39b   :  { %9332 = vmatprep.subr.msk.bf16.mxu1 %vm11049_vm12, %v9330_v49 }
 0x39c   :  { %8370 = vmatmul.mubr.msk.f32.vlgmr.msra.gmra.mrb[8].mxu0 %vm3958_vm13, %v11162_v43 }
 0x39d   :  { %8404 = vmatmul.mubr.msk.f32.gmra.mrb[16].mxu1 %vm3958_vm13, %v11308_v58  ;;  %9293 = vmatpush1.bf16.msk.msra.mxu0 %vm11049_vm12, %v9291_v29  ;;  %v10049_v29 = vunpack.i.h.bf16 %v10047_v15 }
 0x39e   :  { %4434 = vmatprep.mubr.f32.mxu0 %v12777_v6  ;;  %9302 = vmatprep.subr.msk.bf16.mxu0 %vm11049_vm12, %v9300_v46 }
 0x39f   :  { %4967 = vmatprep.mubr.f32.mxu1 %v12777_v6  ;;  %v5232_v37 = vsel %vm3302_vm9, %v10044_v11, %v10049_v29 }
 0x3a0   :  { %8371 = vmatmul.mubr.msk.f32.gmra.mrb[10].mxu0 %vm3958_vm13, %v11178_v27  ;;  %v9342_v52 = vpack.c.bf16 %v5232_v37, %v5225_v1  ;;  %v11537_v53 = vpop.permute.xlu1 %5657 }
 0x3a1   :  { %8405 = vmatmul.mubr.msk.f32.gmra.mrb[18].mxu1 %vm3958_vm13, %v11326_v56  ;;  %4440 = vmatprep.mubr.f32.mxu0 %v12777_v6 }
 0x3a2   :  { %4973 = vmatprep.mubr.f32.mxu1 %v12777_v6 }
 0x3a4   :  { %8372 = vmatmul.mubr.msk.f32.gmra.mrb[12].mxu0 %vm3958_vm13, %v11202_v41 }
 0x3a5   :  { %8406 = vmatmul.mubr.msk.f32.gmra.mrb[8].mxu1 %vm3958_vm13, %v11343_v25  ;;  %4446 = vmatprep.mubr.f32.mxu0 %v12777_v6 }
 0x3a6   :  { %8917 = vmatprep.mubr.msk.f32.mxu1 %vm3958_vm13, %v11294_v7 }
 0x3a8   :  { %8373 = vmatmul.mubr.msk.f32.gmra.mrb[14].mxu0 %vm3958_vm13, %v11218_v54 }
 0x3a9   :  { %8918 = vmatmul.mubr.msk.f32.vlgmr.msra.gmra.mrb[10].mxu1 %vm3958_vm13, %v11308_v58  ;;  %4606 = vmatprep.mubr.f32.mxu0 %v12777_v6 }
 0x3aa   :  { %9335 = vmatpush1.bf16.msk.msra.mxu1 %vm11049_vm12, %v9333_v28  ;;  %8920 = vmatprep.mubr.msk.f32.mxu1 %vm3958_vm13, %v11326_v56 }
 0x3ab   :  { %9344 = vmatprep.subr.msk.bf16.mxu1 %vm11049_vm12, %v9342_v52 }
 0x3ac   :  { %8382 = vmatmul.mubr.msk.f32.vlgmr.msra.gmra.mrb[22].mxu0 %vm3958_vm13, %v11162_v43  ;;  %v10029_v43 = vunpack.i.h.bf16 %v11204_v10 }
 0x3ad   :  { %8921 = vmatmul.mubr.msk.f32.gmra.mrb[12].mxu1 %vm3958_vm13, %v11343_v25  ;;  %9305 = vmatpush1.bf16.msk.msra.mxu0 %vm11049_vm12, %v9303_v13 }
 0x3ae   :  { %4612 = vmatprep.mubr.f32.mxu0 %v12777_v6  ;;  %9314 = vmatprep.subr.msk.bf16.mxu0 %vm11049_vm12, %v9312_v22  ;;  %v5226_v20 = vsel %vm3302_vm9, %v10034_v2, %v10029_v43 }
 0x3af   :  { %5419 = vmatprep.mubr.f32.mxu1 %v12777_v6 }
 0x3b0   :  { %8383 = vmatmul.mubr.msk.f32.gmra.mrb[24].mxu0 %vm3958_vm13, %v11178_v27  ;;  %v10028_v27 = vunpack.i.l.bf16 %v11204_v10 }
 0x3b1   :  { %8430 = vmatmul.mubr.msk.f32.vlgmr.msra.gmra.mrb[14].mxu1 %vm3958_vm13, %v11394_v39  ;;  %4618 = vmatprep.mubr.f32.mxu0 %v12777_v6 }
 0x3b2   :  { %9347 = vmatpush3.bf16.msk.msra.mxu1 %vm11049_vm12, %v9342_v52  ;;  %5425 = vmatprep.mubr.f32.mxu1 %v12777_v6  ;;  %v5220_v10 = vsel %vm3302_vm9, %v10028_v27, %v10023_v33  ;;  %v5219_v57 = vsel %vm3302_vm9, %v10033_v4, %v10028_v27 }
 0x3b3   :  { %v9327_v12 = vpack.c.bf16 %v5226_v20, %v5219_v57 }
 0x3b4   :  { %8384 = vmatmul.mubr.msk.f32.gmra.mrb[26].mxu0 %vm3958_vm13, %v11202_v41  ;;  %v5227_v41 = vsel %vm3302_vm9, %v10029_v43, %v10024_v40 }
 0x3b5   :  { %8431 = vmatmul.mubr.msk.f32.gmra.mrb[16].mxu1 %vm3958_vm13, %v11409_v9  ;;  %4624 = vmatprep.mubr.f32.mxu0 %v12777_v6 }
 0x3b6   :  { %5431 = vmatprep.mubr.f32.mxu1 %v12777_v6 }
 0x3b8   :  { %8385 = vmatmul.mubr.msk.f32.gmra.mrb[28].mxu0 %vm3958_vm13, %v11218_v54  ;;  %v9324_v54 = vpack.c.bf16 %v5227_v41, %v5220_v10 }
 0x3b9   :  { %8432 = vmatmul.mubr.msk.f32.gmra.mrb[18].mxu1 %vm3958_vm13, %v8420_v23  ;;  %4866 = vmatprep.mubr.f32.mxu0 %v12777_v6 }
 0x3ba   :  { %5437 = vmatprep.mubr.f32.mxu1 %v12777_v6 }
 0x3bc   :  { %8397 = vmatmul.mubr.msk.f32.vlgmr.msra.gmra.mrb[8].mxu0 %vm3958_vm13, %v11294_v7 }
 0x3bd   :  { %8433 = vmatmul.mubr.msk.f32.gmra.mrb[8].mxu1 %vm3958_vm13, %v8421_v8  ;;  %9317 = vmatpush1.bf16.msk.msra.mxu0 %vm11049_vm12, %v9315_v34 }
 0x3be   :  { %4872 = vmatprep.mubr.f32.mxu0 %v12777_v6  ;;  %9326 = vmatprep.subr.msk.bf16.mxu0 %vm11049_vm12, %v9324_v54 }
 0x3bf   :  { %8927 = vmatprep.mubr.msk.f32.mxu1 %vm3958_vm13, %v11394_v39 }
 0x3c0   :  { %8398 = vmatmul.mubr.msk.f32.gmra.mrb[10].mxu0 %vm3958_vm13, %v11308_v58 }
 0x3c1   :  { %8928 = vmatmul.mubr.msk.f32.vlgmr.msra.gmra.mrb[10].mxu1 %vm3958_vm13, %v11409_v9  ;;  %4878 = vmatprep.mubr.f32.mxu0 %v12777_v6 }
 0x3c2   :  { %8930 = vmatprep.mubr.msk.f32.mxu1 %vm3958_vm13, %v8420_v23 }
 0x3c4   :  { %8399 = vmatmul.mubr.msk.f32.gmra.mrb[12].mxu0 %vm3958_vm13, %v11326_v56 }
 0x3c5   :  { %8931 = vmatmul.mubr.msk.f32.gmra.mrb[12].mxu1 %vm3958_vm13, %v8421_v8  ;;  %4884 = vmatprep.mubr.f32.mxu0 %v12777_v6 }
 0x3c8   :  { %8400 = vmatmul.mubr.msk.f32.gmra.mrb[14].mxu0 %vm3958_vm13, %v11343_v25 }
 0x3c9   :  { %5044 = vmatprep.mubr.f32.mxu0 %v12777_v6 }
 0x3cc   :  { %8409 = vmatmul.mubr.msk.f32.vlgmr.msra.gmra.mrb[22].mxu0 %vm3958_vm13, %v11294_v7 }
 0x3cd   :  { %9329 = vmatpush1.bf16.msk.msra.mxu0 %vm11049_vm12, %v9327_v12  ;;  %5050 = vmatprep.mubr.f32.mxu0 %v12777_v6 }
 0x3ce   :  { %9338 = vmatprep.subr.msk.bf16.mxu0 %vm11049_vm12, %v9336_v30 }
 0x3d0   :  { %8410 = vmatmul.mubr.msk.f32.gmra.mrb[24].mxu0 %vm3958_vm13, %v11308_v58 }
 0x3d1   :  { %5056 = vmatprep.mubr.f32.mxu0 %v12777_v6 }
 0x3d4   :  { %8411 = vmatmul.mubr.msk.f32.gmra.mrb[26].mxu0 %vm3958_vm13, %v11326_v56 }
 0x3d5   :  { %5062 = vmatprep.mubr.f32.mxu0 %v12777_v6 }
 0x3d8   :  { %8412 = vmatmul.mubr.msk.f32.gmra.mrb[28].mxu0 %vm3958_vm13, %v11343_v25  ;;  %v11526_v25 = vpop.permute.xlu0 %5652 }
 0x3d9   :  { %5330 = vmatprep.mubr.f32.mxu0 %v12777_v6 }
 0x3dc   :  { %8424 = vmatmul.mubr.msk.f32.vlgmr.msra.gmra.mrb[8].mxu0 %vm3958_vm13, %v11394_v39 }
 0x3dd   :  { %9341 = vmatpush1.bf16.msk.msra.mxu0 %vm11049_vm12, %v9339_v26  ;;  %5336 = vmatprep.mubr.f32.mxu0 %v12777_v6 }
 0x3e0   :  { %8425 = vmatmul.mubr.msk.f32.gmra.mrb[10].mxu0 %vm3958_vm13, %v11409_v9 }
 0x3e1   :  { %5342 = vmatprep.mubr.f32.mxu0 %v12777_v6 }
 0x3e4   :  { %8426 = vmatmul.mubr.msk.f32.gmra.mrb[12].mxu0 %vm3958_vm13, %v8420_v23 }
 0x3e5   :  { %5348 = vmatprep.mubr.f32.mxu0 %v12777_v6 }
 0x3e8   :  { %8427 = vmatmul.mubr.msk.f32.gmra.mrb[14].mxu0 %vm3958_vm13, %v8421_v8 }
 0x3e9   :  { %5508 = vmatprep.mubr.f32.mxu0 %v12777_v6 }
 0x3ec   :  { %8436 = vmatmul.mubr.msk.f32.vlgmr.msra.gmra.mrb[22].mxu0 %vm3958_vm13, %v11394_v39  ;;  %v11559_v39 = vpop.permute.xlu0 %5662 }
 0x3ed   :  { %5514 = vmatprep.mubr.f32.mxu0 %v12777_v6 }
 0x3f0   :  { %8437 = vmatmul.mubr.msk.f32.gmra.mrb[24].mxu0 %vm3958_vm13, %v11409_v9 }
 0x3f1   :  { %5520 = vmatprep.mubr.f32.mxu0 %v12777_v6 }
 0x3f4   :  { %8438 = vmatmul.mubr.msk.f32.gmra.mrb[26].mxu0 %vm3958_vm13, %v8420_v23 }
 0x3f5   :  { %5526 = vmatprep.mubr.f32.mxu0 %v12777_v6  ;;  %v6058_v6 = vadd.s32 24, %v10297_v3 }
 0x3f8   :  { %8439 = vmatmul.mubr.msk.f32.gmra.mrb[28].mxu0 %vm3958_vm13, %v8421_v8 }
 0x453   :  { %v4141_v21 = vpop.f32.mrb[16].mxu0 }
 0x454   :  { %v4143_v35 = vpop.f32.mrb[17].mxu0 }
 0x457   :  { %v4147_v0 = vpop.f32.mrb[18].mxu0 }
 0x458   :  { %v4149_v14 = vpop.f32.mrb[19].mxu0 }
 0x45b   :  { %v4153_v5 = vpop.f32.mrb[20].mxu0 }
 0x45c   :  { %v4155_v19 = vpop.f32.mrb[21].mxu0 }
 0x484   :  { %v5421_v63 = vpop.f32.mrb[14].mxu1 }
 0x485   :  { %v9621_v26 = vadd.f32 %v5421_v63, %v4141_v21  ;;  %v5423_v42 = vpop.f32.mrb[15].mxu1 }
 0x486   :  { %v9622_v44 = vadd.f32 %v5423_v42, %v4143_v35 }
 0x487   :  { %v11532_v47 = vadd.f32 %v9621_v26, %v11526_v25 }
 0x488   :  { %v5427_v45 = vpop.f32.mrb[16].mxu1  ;;  %v11529_v59 = vadd.f32 %v9622_v44, %v11526_v25 }
 0x489   :  { %v9623_v7 = vadd.f32 %v5427_v45, %v4147_v0  ;;  %v5429_v49 = vpop.f32.mrb[17].mxu1  ;;  %v5700_v61 = vmax.f32 %v11532_v47, 0.0 }
 0x48a   :  { %v9624_v55 = vadd.f32 %v5429_v49, %v4149_v14  ;;  %v5701_v1 = vmax.f32 %v11529_v59, 0.0 }
 0x48b   :  { %v11549_v38 = vadd.f32 %v9623_v7, %v11537_v53 }
 0x48c   :  { %v5433_v51 = vpop.f32.mrb[18].mxu1  ;;  %v11544_v17 = vadd.f32 %v9624_v55, %v11537_v53 }
 0x48d   :  { %v9625_v58 = vadd.f32 %v5433_v51, %v4153_v5  ;;  %v5435_v46 = vpop.f32.mrb[19].mxu1  ;;  %v5707_v41 = vmax.f32 %v11549_v38, 0.0  ;;  %v11610_v5 = vpop.permute.xlu1 %5667 }
 0x48e   :  { %v9626_v56 = vadd.f32 %v5435_v46, %v4155_v19  ;;  %v12791_v27 = vmax.f32 %v11544_v17, 0.0 }
 0x48f   :  { %v11576_v10 = vadd.f32 %v9625_v58, %v11559_v39 }
 0x490   :  { %v11516_v15 = vpop.f32.mrb[8].mxu1  ;;  %v11570_v23 = vadd.f32 %v9626_v56, %v11559_v39 }
 0x491   :  { %v5441_v40 = vpop.f32.mrb[9].mxu1  ;;  %v5714_v12 = vmax.f32 %v11576_v10, 0.0 }
 0x492   :  { %v12787_v20 = vmax.f32 %v11570_v23, 0.0  ;;  %v11623_v45 = vadd.f32 %v11610_v5, %v5441_v40 }
 0x494   :  { %v11518_v33 = vpop.f32.mrb[10].mxu1 }
 0x495   :  { %v11520_v11 = vpop.f32.mrb[11].mxu1 }
 0x498   :  { %v11522_v29 = vpop.f32.mrb[12].mxu1 }
 0x499   :  { %v11524_v60 = vpop.f32.mrb[13].mxu1 }
 0x4af   :  { %v5332_v48 = vpop.f32.mrb[8].mxu0 }
 0x4b0   :  { %v11535_v16 = vadd.f32 %v11526_v25, %v5332_v48  ;;  %v5334_v18 = vpop.f32.mrb[9].mxu0 }
 0x4b1   :  { %v11540_v37 = vadd.f32 %v11526_v25, %v5334_v18  ;;  %v11643_v18 = vadd.f32 %v11610_v5, %v11516_v15 }
 0x4b2   :  { %v5698_v28 = vmax.f32 %v11535_v16, 0.0  ;;  %v6107_v16 = vadd.s32 416, %v10297_v3 }
 0x4b3   :  { %v5699_v52 = vmax.f32 %v11540_v37, 0.0  ;;  %v5338_v32 = vpop.f32.mrb[10].mxu0 }
 0x4b4   :  { %v10055_v13 = vpack.i.bf16 %v5698_v28, %v5701_v1  ;;  %v11557_v62 = vadd.f32 %v11537_v53, %v5338_v32  ;;  %v5340_v22 = vpop.f32.mrb[11].mxu0  ;;  %v12785_v32 = vmax.f32 %v11623_v45, 0.0 }
 0x4b5   :  { %v10050_v9 = vpack.i.bf16 %v5700_v61, %v5699_v52  ;;  %v11566_v43 = vadd.f32 %v11537_v53, %v5340_v22 }
 0x4b6   :  { %v5705_v36 = vmax.f32 %v11557_v62, 0.0  ;;  %10056 = vrot.lane.b32.xlu1 %v10055_v13, %s10216_s0  ;;  %v6092_v62 = vadd.s32 296, %v10297_v3 }
 0x4b7   :  { %v5706_v8 = vmax.f32 %v11566_v43, 0.0  ;;  %v5344_v31 = vpop.f32.mrb[12].mxu0  ;;  %10051 = vrot.lane.b32.xlu0 %v10050_v9, %s10216_s0 }
 0x4b8   :  { %v10060_v34 = vpack.i.bf16 %v5705_v36, %v12791_v27  ;;  %v11585_v54 = vadd.f32 %v11559_v39, %v5344_v31  ;;  %v5346_v2 = vpop.f32.mrb[13].mxu0 }
 0x4b9   :  { %v10065_v4 = vpack.i.bf16 %v5707_v41, %v5706_v8  ;;  %v11592_v57 = vadd.f32 %v11559_v39, %v5346_v2 }
 0x4ba   :  { %v12786_v50 = vmax.f32 %v11585_v54, 0.0 }
 0x4bb   :  { %v5713_v24 = vmax.f32 %v11592_v57, 0.0  ;;  %v5350_v30 = vpop.f32.mrb[14].mxu0  ;;  %10066 = vrot.lane.b32.xlu1 %v10065_v4, %s10216_s0  ;;  %10061 = vrot.lane.b32.xlu0 %v10060_v34, %s10216_s0 }
 0x4bc   :  { %v10070_v21 = vpack.i.bf16 %v12786_v50, %v12787_v20  ;;  %v5352_v35 = vpop.f32.mrb[15].mxu0  ;;  %v11616_v26 = vadd.f32 %v11610_v5, %v5350_v30  ;;  %v6065_v20 = vadd.s32 80, %v10297_v3 }
 0x4bd   :  { %v10075_v0 = vpack.i.bf16 %v5714_v12, %v5713_v24  ;;  %v11631_v46 = vadd.f32 %v11610_v5, %v5352_v35 }
 0x4be   :  { %v5719_v58 = vmax.f32 %v11616_v26, 0.0  ;;  %v12801_v26 = vmax.f32 %v11544_v17, 0.0 }
 0x4bf   :  { %v5510_v14 = vpop.f32.mrb[22].mxu0  ;;  %10076 = vrot.lane.b32.xlu0 %v10075_v0, %s10216_s0  ;;  %10071 = vrot.lane.b32.xlu1 %v10070_v21, %s10216_s0  ;;  %v12789_v2 = vmax.f32 %v11631_v46, 0.0  ;;  %v5721_v21 = vmax.f32 %v11643_v18, 0.0 }
 0x4c0   :  { %v11613_v19 = vadd.f32 %v11526_v25, %v5510_v14  ;;  %v5512_v63 = vpop.f32.mrb[23].mxu0  ;;  %v10095_v34 = vpack.i.bf16 %v5719_v58, %v12785_v32 }
 0x4c1   :  { %v11619_v42 = vadd.f32 %v11526_v25, %v5512_v63 }
 0x4c2   :  { %v5702_v44 = vmax.f32 %v11613_v19, 0.0  ;;  %v6112_v19 = vadd.s32 456, %v10297_v3 }
 0x4c3   :  { %v12783_v7 = vmax.f32 %v11619_v42, 0.0  ;;  %v5516_v49 = vpop.f32.mrb[24].mxu0 }
 0x4c4   :  { %v11627_v55 = vadd.f32 %v11537_v53, %v5516_v49  ;;  %v5518_v51 = vpop.f32.mrb[25].mxu0  ;;  %v11673_v49 = vadd.f32 %v11526_v25, %v11520_v11  ;;  %v11692_v11 = vadd.f32 %v11518_v33, %v11537_v53  ;;  %v6071_v33 = vadd.s32 128, %v10297_v3 }
 0x4c5   :  { %v10080_v56 = vpack.i.bf16 %v12783_v7, %v5702_v44  ;;  %v11638_v40 = vadd.f32 %v11537_v53, %v5518_v51  ;;  %v10090_v51 = vpack.i.bf16 %v5721_v21, %v12789_v2  ;;  %v6072_v53 = vadd.s32 136, %v10297_v3 }
 0x4c6   :  { %v12790_v48 = vmax.f32 %v11627_v55, 0.0  ;;  %v12784_v25 = vmax.f32 %v11673_v49, 0.0  ;;  %v6106_v7 = vadd.s32 408, %v10297_v3 }
 0x4c7   :  { %v12781_v13 = vmax.f32 %v11638_v40, 0.0  ;;  %v5522_v22 = vpop.f32.mrb[26].mxu0  ;;  %10081 = vrot.lane.b32.xlu0 %v10080_v56, %s10216_s0 }
 0x4c8   :  { %v11649_v9 = vadd.f32 %v11559_v39, %v5522_v22  ;;  %v5524_v31 = vpop.f32.mrb[27].mxu0 }
 0x4c9   :  { %v10085_v15 = vpack.i.bf16 %v12781_v13, %v12790_v48  ;;  %v11661_v4 = vadd.f32 %v11559_v39, %v5524_v31 }
 0x4ca   :  { %v12788_v30 = vmax.f32 %v11649_v9, 0.0 }
 0x4cb   :  { %v12779_v35 = vmax.f32 %v11661_v4, 0.0  ;;  %v5528_v0 = vpop.f32.mrb[28].mxu0  ;;  %10086 = vrot.lane.b32.xlu1 %v10085_v15, %s10216_s0  ;;  %10096 = vrot.lane.b32.xlu0 %v10095_v34, %s10216_s0 }
 0x4cc   :  { %v11669_v14 = vadd.f32 %v11610_v5, %v5528_v0  ;;  %v5530_v63 = vpop.f32.mrb[29].mxu0  ;;  %v12780_v0 = vmax.f32 %v11692_v11, 0.0 }
 0x4cd   :  { %v10100_v56 = vpack.i.bf16 %v12779_v35, %v12788_v30  ;;  %v11684_v22 = vadd.f32 %v11610_v5, %v5530_v63  ;;  %v11712_v63 = vld [vmem:[%s12770_s5] ss:$0 sm:$0xff]  ;;  %v6075_v35 = vadd.s32 160, %v10297_v3 }
 0x4ce   :  { %v12782_v31 = vmax.f32 %v11669_v14, 0.0  ;;  %vm6160_vm14 = vcmp.eq.s32.totalorder %v10297_v3, %v11712_v63  ;;  %vm6176_vm15 = vcmp.eq.s32.totalorder %v6071_v33, %v11712_v63  ;;  %vm6177_vm0 = vcmp.eq.s32.totalorder %v6072_v53, %v11712_v63 }
 0x4cf   :  { %v12776_v34 = vmax.f32 %v11684_v22, 0.0  ;;  %10091 = vrot.lane.b32.xlu1 %v10090_v51, %s10216_s0  ;;  %10101 = vrot.lane.b32.xlu0 %v10100_v56, %s10216_s0  ;;  %v6056_v51 = vadd.s32 8, %v10297_v3  ;;  %v6073_v56 = vadd.s32 144, %v10297_v3  ;;  %vm9348_vm1 = vmpackc.low %vm6177_vm0, %vm6176_vm15  ;;  %vm6163_vm9 = vcmp.eq.s32.totalorder %v6058_v6, %v11712_v63 }
 0x4d0   :  { %v6076_v33 = vadd.s32 168, %v10297_v3  ;;  %v6059_v53 = vadd.s32 32, %v10297_v3  ;;  %vm6180_vm11 = vcmp.eq.s32.totalorder %v6075_v35, %v11712_v63  ;;  %v6077_v6 = vadd.s32 176, %v10297_v3 }
 0x4d1   :  { %v10105_v15 = vpack.i.bf16 %v12776_v34, %v12782_v31  ;;  %v6057_v34 = vadd.s32 16, %v10297_v3  ;;  %vm6161_vm2 = vcmp.eq.s32.totalorder %v6056_v51, %v11712_v63  ;;  %vm6178_vm4 = vcmp.eq.s32.totalorder %v6073_v56, %v11712_v63 }
 0x4d2   :  { %vm9350_vm6 = vmpackc.low %vm6161_vm2, %vm6160_vm14  ;;  %v6060_v51 = vadd.s32 40, %v10297_v3  ;;  %vm6181_vm13 = vcmp.eq.s32.totalorder %v6076_v33, %v11712_v63  ;;  %vm6164_vm15 = vcmp.eq.s32.totalorder %v6059_v53, %v11712_v63  ;;  %v6078_v35 = vadd.s32 184, %v10297_v3 }
 0x4d3   :  { %10106 = vrot.lane.b32.xlu0 %v10105_v15, %s10216_s0  ;;  %5766 = vrot.lane.b32.xlu1 %v12784_v25, %s10216_s0  ;;  %v6074_v15 = vadd.s32 152, %v10297_v3  ;;  %vm6162_vm8 = vcmp.eq.s32.totalorder %v6057_v34, %v11712_v63  ;;  %vm9356_vm14 = vmpackc.low %vm6181_vm13, %vm6180_vm11  ;;  %v6061_v34 = vadd.s32 48, %v10297_v3  ;;  %v6062_v56 = vadd.s32 56, %v10297_v3 }
 0x4d4   :  { %vm9354_vm12 = vmpackc.low %vm6163_vm9, %vm6162_vm8  ;;  %vm6165_vm0 = vcmp.eq.s32.totalorder %v6060_v51, %v11712_v63  ;;  %v6104_v33 = vadd.s32 392, %v10297_v3  ;;  %v6087_v53 = vadd.s32 256, %v10297_v3  ;;  %v6088_v51 = vadd.s32 264, %v10297_v3 }
 0x4d5   :  { %vm6179_vm5 = vcmp.eq.s32.totalorder %v6074_v15, %v11712_v63  ;;  %v6103_v15 = vadd.s32 384, %v10297_v3  ;;  %vm6182_vm2 = vcmp.eq.s32.totalorder %v6077_v6, %v11712_v63  ;;  %v6079_v6 = vadd.s32 192, %v10297_v3 }
 0x4d6   :  { %vm9352_vm10 = vmpackc.low %vm6179_vm5, %vm6178_vm4  ;;  %vm6183_vm4 = vcmp.eq.s32.totalorder %v6078_v35, %v11712_v63  ;;  %vm6166_vm5 = vcmp.eq.s32.totalorder %v6061_v34, %v11712_v63  ;;  %vm6192_vm11 = vcmp.eq.s32.totalorder %v6087_v53, %v11712_v63  ;;  %v6080_v35 = vadd.s32 200, %v10297_v3 }
 0x4d7   :  { %5780 = vrot.lane.b32.xlu1 %v12780_v0, %s10216_s0  ;;  %v10225_v0 = vmov 1.0|1.0   ;;  %vm9360_vm8 = vmpackc.low %vm6183_vm4, %vm6182_vm2  ;;  %vm6208_vm9 = vcmp.eq.s32.totalorder %v6103_v15, %v11712_v63  ;;  %v6063_v34 = vadd.s32 64, %v10297_v3  ;;  %v6105_v31 = vadd.s32 400, %v10297_v3 }
 0x4d8   :  { %9349 = vmatprep.subr.msk.bf16.mxu1 %vm9348_vm1, %v10225_v0  ;;  %vm9358_vm1 = vmpackc.low %vm6165_vm0, %vm6164_vm15  ;;  %vm6184_vm0 = vcmp.eq.s32.totalorder %v6079_v6, %v11712_v63  ;;  %v6089_v6 = vadd.s32 272, %v10297_v3 }
 0x4d9   :  { %9351 = vmatpush3.bf16.msk.msra.mxu1 %vm9350_vm6, %v10225_v0  ;;  %vm6167_vm6 = vcmp.eq.s32.totalorder %v6062_v56, %v11712_v63  ;;  %v6064_v56 = vadd.s32 72, %v10297_v3  ;;  %vm6168_vm4 = vcmp.eq.s32.totalorder %v6063_v34, %v11712_v63 }
 0x4da   :  { %9353 = vmatprep.subr.msk.bf16.mxu1 %vm9352_vm10, %v10225_v0  ;;  %vm6209_vm10 = vcmp.eq.s32.totalorder %v6104_v33, %v11712_v63  ;;  %vm9362_vm13 = vmpackc.low %vm6167_vm6, %vm6166_vm5  ;;  %vm6210_vm6 = vcmp.eq.s32.totalorder %v6105_v31, %v11712_v63 }
 0x4db   :  { %vm6169_vm5 = vcmp.eq.s32.totalorder %v6064_v56, %v11712_v63 }
 0x4dd   :  { %9355 = vmatpush3.bf16.msk.msra.mxu1 %vm9354_vm12, %v10225_v0  ;;  %vm6193_vm12 = vcmp.eq.s32.totalorder %v6088_v51, %v11712_v63 }
 0x4de   :  { %9357 = vmatprep.subr.msk.bf16.mxu1 %vm9356_vm14, %v10225_v0  ;;  %vm9380_vm14 = vmpackc.low %vm6209_vm10, %vm6208_vm9 }
 0x4df   :  { %9381 = vmatprep.subr.msk.bf16.mxu0 %vm9380_vm14, %v10225_v0  ;;  %vm9382_vm15 = vmpackc.low %vm6193_vm12, %vm6192_vm11  ;;  %vm6194_vm11 = vcmp.eq.s32.totalorder %v6089_v6, %v11712_v63 }
 0x4e0   :  { %9383 = vmatpush3.bf16.msk.msra.mxu0 %vm9382_vm15, %v10225_v0  ;;  %vm9366_vm9 = vmpackc.low %vm6169_vm5, %vm6168_vm4  ;;  %vm6212_vm5 = vcmp.eq.s32.totalorder %v6107_v16, %v11712_v63 }
 0x4e1   :  { %9359 = vmatpush3.bf16.msk.msra.mxu1 %vm9358_vm1, %v10225_v0  ;;  %vm6185_vm1 = vcmp.eq.s32.totalorder %v6080_v35, %v11712_v63 }
 0x4e2   :  { %9361 = vmatprep.subr.msk.bf16.mxu1 %vm9360_vm8, %v10225_v0  ;;  %vm9364_vm2 = vmpackc.low %vm6185_vm1, %vm6184_vm0  ;;  %vm6211_vm8 = vcmp.eq.s32.totalorder %v6106_v7, %v11712_v63  ;;  %vm6170_vm1 = vcmp.eq.s32.totalorder %v6065_v20, %v11712_v63  ;;  %v6091_v20 = vadd.s32 288, %v10297_v3 }
 0x4e3   :  { %vm9384_vm10 = vmpackc.low %vm6211_vm8, %vm6210_vm6 }
 0x4e4   :  { %9385 = vmatprep.subr.msk.bf16.mxu0 %vm9384_vm10, %v10225_v0  ;;  %vm6196_vm8 = vcmp.eq.s32.totalorder %v6091_v20, %v11712_v63  ;;  %v6110_v20 = vadd.s32 440, %v10297_v3 }
 0x4e5   :  { %9363 = vmatpush3.bf16.msk.msra.mxu1 %vm9362_vm13, %v10225_v0 }
 0x4e6   :  { %9365 = vmatprep.subr.msk.bf16.mxu1 %vm9364_vm2, %v10225_v0 }
 0x4e9   :  { %9367 = vmatpush3.bf16.msk.msra.mxu1 %vm9366_vm9, %v10225_v0  ;;  %vm6197_vm9 = vcmp.eq.s32.totalorder %v6092_v62, %v11712_v63  ;;  %v6093_v62 = vadd.s32 304, %v10297_v3 }
 0x528   :  { %v11758_v13 = vpop.permute.xlu1 %10056 }
 0x529   :  { %v10058_v15 = vunpack.i.l.bf16 %v11758_v13  ;;  %v10052_v33 = vpop.permute.xlu0 %10051  ;;  %v10059_v35 = vunpack.i.h.bf16 %v11758_v13 }
 0x52a   :  { %v10054_v25 = vunpack.i.h.bf16 %v10052_v33  ;;  %v10053_v32 = vunpack.i.l.bf16 %v10052_v33 }
 0x52c   :  { %v5811_v53 = vsel %vm836_vm3, %v10053_v32, %v10054_v25  ;;  %v5812_v51 = vsel %vm836_vm3, %v10054_v25, %v10058_v15  ;;  %v6090_v25 = vadd.s32 280, %v10297_v3 }
 0x52d   :  { %v11790_v34 = vmax.f32 %v5699_v52, %v5811_v53  ;;  %v11794_v7 = vmax.f32 %v5700_v61, %v5812_v51  ;;  %v11796_v31 = vpop.permute.xlu1 %10066  ;;  %v11798_v56 = vpop.permute.xlu0 %10061  ;;  %v6081_v61 = vadd.s32 208, %v10297_v3  ;;  %v6082_v53 = vadd.s32 216, %v10297_v3 }
 0x52e   :  { %v10069_v33 = vunpack.i.h.bf16 %v11796_v31  ;;  %v10068_v50 = vunpack.i.l.bf16 %v11796_v31  ;;  %v10064_v37 = vunpack.i.h.bf16 %v11798_v56  ;;  %v10063_v52 = vunpack.i.l.bf16 %v11798_v56 }
 0x52f   :  { %v10110_v47 = vpack.i.bf16 %v11794_v7, %v11790_v34  ;;  %vm6195_vm12 = vcmp.eq.s32.totalorder %v6090_v25, %v11712_v63  ;;  %v5810_v51 = vsel %vm836_vm3, %v10059_v35, %v10053_v32  ;;  %vm6186_vm14 = vcmp.eq.s32.totalorder %v6081_v61, %v11712_v63 }
 0x530   :  { %vm9386_vm13 = vmpackc.low %vm6195_vm12, %vm6194_vm11  ;;  %v5816_v30 = vsel %vm836_vm3, %v10064_v37, %v10068_v50  ;;  %v5818_v6 = vsel %vm836_vm3, %v10069_v33, %v10063_v52  ;;  %vm6187_vm15 = vcmp.eq.s32.totalorder %v6082_v53, %v11712_v63  ;;  %v6066_v32 = vadd.s32 88, %v10297_v3 }
 0x531   :  { %10111 = vrot.lane.b32.xlu0 %v10110_v47, %s10220_s14  ;;  %9387 = vmatpush3.bf16.msk.msra.mxu0 %vm9386_vm13, %v10225_v0  ;;  %v11825_v25 = vpop.permute.xlu0 %10076  ;;  %v11832_v35 = vmax.f32 %v5698_v28, %v5810_v51  ;;  %vm9368_vm0 = vmpackc.low %vm6187_vm15, %vm6186_vm14  ;;  %v11837_v37 = vmax.f32 %v5705_v36, %v5816_v30  ;;  %v11841_v47 = vmax.f32 %v5707_v41, %v5818_v6  ;;  %v6108_v28 = vadd.s32 424, %v10297_v3  ;;  %v11851_v38 = vpop.permute.xlu1 %10071 }
 0x532   :  { %v10079_v61 = vunpack.i.h.bf16 %v11825_v25  ;;  %9369 = vmatprep.subr.msk.bf16.mxu1 %vm9368_vm0, %v10225_v0  ;;  %vm6171_vm2 = vcmp.eq.s32.totalorder %v6066_v32, %v11712_v63  ;;  %v12792_v36 = vunpack.i.l.bf16 %v11825_v25  ;;  %v6083_v41 = vadd.s32 224, %v10297_v3  ;;  %vm9390_vm14 = vmpackc.low %vm6197_vm9, %vm6196_vm8 }
 0x533   :  { %vm9370_vm4 = vmpackc.low %vm6171_vm2, %vm6170_vm1  ;;  %v6084_v30 = vadd.s32 232, %v10297_v3  ;;  %v6067_v53 = vadd.s32 96, %v10297_v3  ;;  %vm6213_vm6 = vcmp.eq.s32.totalorder %v6108_v28, %v11712_v63  ;;  %v6068_v6 = vadd.s32 104, %v10297_v3 }
 0x534   :  { %9371 = vmatpush3.bf16.msk.msra.mxu1 %vm9370_vm4, %v10225_v0  ;;  %vm9388_vm10 = vmpackc.low %vm6213_vm6, %vm6212_vm5  ;;  %vm6188_vm11 = vcmp.eq.s32.totalorder %v6083_v41, %v11712_v63  ;;  %v10073_v32 = vunpack.i.l.bf16 %v11851_v38  ;;  %v6109_v28 = vadd.s32 432, %v10297_v3  ;;  %v6094_v41 = vadd.s32 312, %v10297_v3 }
 0x535   :  { %vm6189_vm12 = vcmp.eq.s32.totalorder %v6084_v30, %v11712_v63  ;;  %vm6172_vm13 = vcmp.eq.s32.totalorder %v6067_v53, %v11712_v63  ;;  %9389 = vmatprep.subr.msk.bf16.mxu0 %vm9388_vm10, %v10225_v0  ;;  %vm6173_vm0 = vcmp.eq.s32.totalorder %v6068_v6, %v11712_v63  ;;  %v6085_v30 = vadd.s32 240, %v10297_v3 }
 0x536   :  { %9391 = vmatpush3.bf16.msk.msra.mxu0 %vm9390_vm14, %v10225_v0  ;;  %vm9372_vm15 = vmpackc.low %vm6189_vm12, %vm6188_vm11  ;;  %v5823_v2 = vsel %vm836_vm3, %v12792_v36, %v10079_v61  ;;  %vm6214_vm2 = vcmp.eq.s32.totalorder %v6109_v28, %v11712_v63  ;;  %vm6215_vm4 = vcmp.eq.s32.totalorder %v6110_v20, %v11712_v63  ;;  %vm6198_vm6 = vcmp.eq.s32.totalorder %v6093_v62, %v11712_v63 }
 0x537   :  { %9373 = vmatprep.subr.msk.bf16.mxu1 %vm9372_vm15, %v10225_v0  ;;  %vm9374_vm1 = vmpackc.low %vm6173_vm0, %vm6172_vm13  ;;  %vm6199_vm8 = vcmp.eq.s32.totalorder %v6094_v41, %v11712_v63  ;;  %v5817_v59 = vsel %vm836_vm3, %v10068_v50, %v10069_v33  ;;  %vm6190_vm10 = vcmp.eq.s32.totalorder %v6085_v30, %v11712_v63  ;;  %v10120_v50 = vpack.i.bf16 %v11837_v37, %v11841_v47 }
 0x538   :  { %9375 = vmatpush3.bf16.msk.msra.mxu1 %vm9374_vm1, %v10225_v0  ;;  %vm9392_vm5 = vmpackc.low %vm6215_vm4, %vm6214_vm2  ;;  %v6069_v31 = vadd.s32 112, %v10297_v3  ;;  %v6070_v33 = vadd.s32 120, %v10297_v3  ;;  %v6111_v41 = vadd.s32 448, %v10297_v3  ;;  %vm6217_vm1 = vcmp.eq.s32.totalorder %v6112_v19, %v11712_v63 }
 0x539   :  { %v11861_v51 = vpop.permute.xlu0 %10081  ;;  %9393 = vmatprep.subr.msk.bf16.mxu0 %vm9392_vm5, %v10225_v0  ;;  %vm9394_vm9 = vmpackc.low %vm6199_vm8, %vm6198_vm6  ;;  %v12807_v19 = vmax.f32 %v11570_v23, 0.0  ;;  %v12051_v23 = vadd.f32 %v11522_v29, %v11610_v5  ;;  %v6099_v29 = vadd.s32 352, %v10297_v3  ;;  %v12809_v5 = vmax.f32 %v11623_v45, 0.0 }
 0x53a   :  { %v10083_v16 = vunpack.i.l.bf16 %v11861_v51  ;;  %v10084_v6 = vunpack.i.h.bf16 %v11861_v51  ;;  %9395 = vmatpush3.bf16.msk.msra.mxu0 %vm9394_vm9, %v10225_v0  ;;  %vm6174_vm13 = vcmp.eq.s32.totalorder %v6069_v31, %v11712_v63  ;;  %vm6175_vm14 = vcmp.eq.s32.totalorder %v6070_v33, %v11712_v63 }
 0x53b   :  { %vm9378_vm15 = vmpackc.low %vm6175_vm14, %vm6174_vm13  ;;  %v11972_v33 = vmax.f32 %v5706_v8, %v5817_v59  ;;  %v12802_v8 = vmax.f32 %v11627_v55, 0.0  ;;  %vm6216_vm0 = vcmp.eq.s32.totalorder %v6111_v41, %v11712_v63  ;;  %v6095_v55 = vadd.s32 320, %v10297_v3 }
 0x53c   :  { %v5813_v48 = vsel %vm836_vm3, %v10058_v15, %v10083_v16  ;;  %v11902_v15 = vadd.f32 %v11559_v39, %v11524_v60  ;;  %v6086_v60 = vadd.s32 248, %v10297_v3  ;;  %v11921_v39 = vmax.f32 %v5713_v24, %v5823_v2  ;;  %vm9396_vm2 = vmpackc.low %vm6217_vm1, %vm6216_vm0 }
 0x53d   :  { %v11891_v27 = vmax.f32 %v5701_v1, %v5813_v48  ;;  %v11893_v36 = vpop.permute.xlu1 %10086  ;;  %v11895_v13 = vpop.permute.xlu0 %10096  ;;  %v5824_v1 = vsel %vm836_vm3, %v10079_v61, %v10073_v32  ;;  %v5814_v28 = vsel %vm836_vm3, %v10083_v16, %v10084_v6  ;;  %v12804_v41 = vmax.f32 %v11649_v9, 0.0  ;;  %9397 = vmatprep.subr.msk.bf16.mxu0 %vm9396_vm2, %v10225_v0 }
 0x53e   :  { %v10088_v48 = vunpack.i.l.bf16 %v11893_v36  ;;  %v11929_v61 = vmax.f32 %v5714_v12, %v5824_v1  ;;  %v10089_v20 = vunpack.i.h.bf16 %v11893_v36  ;;  %vm6191_vm11 = vcmp.eq.s32.totalorder %v6086_v60, %v11712_v63 }
 0x53f   :  { %v10115_v53 = vpack.i.bf16 %v11891_v27, %v11832_v35  ;;  %v10099_v2 = vunpack.i.h.bf16 %v11895_v13  ;;  %v10098_v62 = vunpack.i.l.bf16 %v11895_v13  ;;  %vm9376_vm12 = vmpackc.low %vm6191_vm11, %vm6190_vm10  ;;  %v11956_v56 = vmax.f32 %v5702_v44, %v5814_v28 }
 0x540   :  { %v5819_v16 = vsel %vm836_vm3, %v10063_v52, %v10088_v48  ;;  %9377 = vmatprep.subr.msk.bf16.mxu1 %vm9376_vm12, %v10225_v0  ;;  %v5820_v52 = vsel %vm836_vm3, %v10088_v48, %v10089_v20  ;;  %v10074_v44 = vunpack.i.h.bf16 %v11851_v38  ;;  %v10125_v43 = vpack.i.bf16 %v11929_v61, %v11921_v39 }
 0x541   :  { %v10092_v57 = vpop.permute.xlu1 %10091  ;;  %v11935_v24 = vpop.permute.xlu0 %10101  ;;  %10116 = vrot.lane.b32.xlu1 %v10115_v53, %s10220_s14  ;;  %9379 = vmatpush3.bf16.msk.msra.mxu1 %vm9378_vm15, %v10225_v0  ;;  %v10135_v28 = vpack.i.bf16 %v11972_v33, %v11956_v56  ;;  %vm6200_vm4 = vcmp.eq.s32.totalorder %v6095_v55, %v11712_v63  ;;  %v6135_v38 = vadd.s32 640, %v10297_v3  ;;  %v6113_v9 = vadd.s32 464, %v10297_v3 }
 0x542   :  { %v10094_v10 = vunpack.i.h.bf16 %v10092_v57  ;;  %v10093_v12 = vunpack.i.l.bf16 %v10092_v57  ;;  %v10104_v53 = vunpack.i.h.bf16 %v11935_v24  ;;  %v10103_v30 = vunpack.i.l.bf16 %v11935_v24 }
 0x543   :  { %vm6240_vm8 = vcmp.eq.s32.totalorder %v6135_v38, %v11712_v63  ;;  %vm6218_vm11 = vcmp.eq.s32.totalorder %v6113_v9, %v11712_v63  ;;  %v12811_v51 = vmax.f32 %v11619_v42, 0.0  ;;  %v6117_v38 = vadd.s32 496, %v10297_v3 }
 0x544   :  { %v5828_v1 = vsel %vm836_vm3, %v10099_v2, %v10093_v12  ;;  %v5830_v13 = vsel %vm836_vm3, %v10094_v10, %v10098_v62  ;;  %v5829_v59 = vsel %vm836_vm3, %v10093_v12, %v10094_v10  ;;  %v5826_v17 = vsel %vm836_vm3, %v10103_v30, %v10104_v53 }
 0x545   :  { %v11963_v60 = vmax.f32 %v5719_v58, %v5828_v1  ;;  %v11967_v31 = vmax.f32 %v5721_v21, %v5830_v13  ;;  %10121 = vrot.lane.b32.xlu1 %v10120_v50, %s10220_s14  ;;  %v11979_v58 = vmax.f32 %v12801_v26, %v5819_v16  ;;  %v11981_v48 = vpop.permute.xlu0 %10106  ;;  %v11989_v21 = vmax.f32 %v12802_v8, %v5820_v52 }
 0x546   :  { %v12796_v50 = vmax.f32 %v11902_v15, 0.0  ;;  %v5825_v57 = vsel %vm836_vm3, %v10073_v32, %v10103_v30  ;;  %v10108_v2 = vunpack.i.l.bf16 %v11981_v48  ;;  %v6096_v10 = vadd.s32 328, %v10297_v3 }
 0x547   :  { %v10130_v18 = vpack.i.bf16 %v11963_v60, %v11967_v31  ;;  %v12803_v12 = vmax.f32 %v11631_v46, 0.0  ;;  %v12014_v1 = vmax.f32 %v12804_v41, %v5826_v17  ;;  %v12806_v32 = vunpack.i.l.bf16 %v11825_v25 }
 0x548   :  { %v10140_v30 = vpack.i.bf16 %v11989_v21, %v11979_v58  ;;  %vm6201_vm5 = vcmp.eq.s32.totalorder %v6096_v10, %v11712_v63  ;;  %v6136_v46 = vadd.s32 648, %v10297_v3  ;;  %v6114_v25 = vadd.s32 472, %v10297_v3 }
 0x549   :  { %10131 = vrot.lane.b32.xlu0 %v10130_v18, %s10220_s14  ;;  %10126 = vrot.lane.b32.xlu1 %v10125_v43, %s10220_s14  ;;  %v12010_v16 = vmax.f32 %v12803_v12, %v5829_v59  ;;  %12805 = vst [vmem:[#allocation8_spill] sm:$0xff] %v12014_v1  ;;  %v5822_v13 = vsel %vm836_vm3, %v10074_v44, %v12806_v32  ;;  %vm9398_vm6 = vmpackc.low %vm6201_vm5, %vm6200_vm4  ;;  %v6097_v52 = vadd.s32 336, %v10297_v3  ;;  %v6098_v18 = vadd.s32 344, %v10297_v3  ;;  %v5767_v43 = vpop.permute.xlu1 %5766 }
 0x54a   :  { %v12036_v44 = vmax.f32 %v12807_v19, %v5825_v57  ;;  %v5831_v26 = vsel %vm836_vm3, %v10098_v62, %v10108_v2  ;;  %9399 = vmatpush3.bf16.msk.msra.mxu0 %vm9398_vm6, %v10225_v0  ;;  %vm6241_vm9 = vcmp.eq.s32.totalorder %v6136_v46, %v11712_v63  ;;  %vm6219_vm12 = vcmp.eq.s32.totalorder %v6114_v25, %v11712_v63 }
 0x54b   :  { %v10150_v8 = vpack.i.bf16 %v12010_v16, %v12014_v1  ;;  %vm9412_vm10 = vmpackc.low %vm6241_vm9, %vm6240_vm8  ;;  %vm6202_vm13 = vcmp.eq.s32.totalorder %v6097_v52, %v11712_v63  ;;  %vm6203_vm14 = vcmp.eq.s32.totalorder %v6098_v18, %v11712_v63  ;;  %v12808_v62 = vmax.f32 %v11585_v54, 0.0 }
 0x54c   :  { %9413 = vmatprep.subr.msk.bf16.mxu1 %vm9412_vm10, %v10225_v0  ;;  %vm9400_vm15 = vmpackc.low %vm6219_vm12, %vm6218_vm11  ;;  %v6115_v17 = vadd.s32 480, %v10297_v3  ;;  %v12066_v55 = vmax.f32 %v12809_v5, %v5831_v26  ;;  %v5815_v54 = vsel %vm836_vm3, %v10084_v6, %v5767_v43  ;;  %v12810_v57 = vmax.f32 %v11673_v49, 0.0 }
 0x54d   :  { %10136 = vrot.lane.b32.xlu0 %v10135_v28, %s10220_s14  ;;  %5794 = vrot.lane.b32.xlu1 %v12796_v50, %s10216_s0  ;;  %v12057_v59 = vmax.f32 %v12808_v62, %v5822_v13  ;;  %v6116_v28 = vadd.s32 488, %v10297_v3  ;;  %vm9402_vm0 = vmpackc.low %vm6203_vm14, %vm6202_vm13  ;;  %v6100_v12 = vadd.s32 360, %v10297_v3  ;;  %vm6204_vm4 = vcmp.eq.s32.totalorder %v6099_v29, %v11712_v63  ;;  %v5781_v41 = vpop.permute.xlu1 %5780 }
 0x54e   :  { %v12073_v10 = vmax.f32 %v12810_v57, %v5767_v43  ;;  %9401 = vmatprep.subr.msk.bf16.mxu0 %vm9400_vm15, %v10225_v0  ;;  %vm6220_vm1 = vcmp.eq.s32.totalorder %v6115_v17, %v11712_v63  ;;  %v12794_v49 = vunpack.i.h.bf16 %v11981_v48  ;;  %v12089_v6 = vmax.f32 %v12811_v51, %v5815_v54 }
 0x54f   :  { %v10145_v45 = vpack.i.bf16 %v12036_v44, %v12057_v59  ;;  %9403 = vmatpush3.bf16.msk.msra.mxu0 %vm9402_vm0, %v10225_v0  ;;  %vm6221_vm2 = vcmp.eq.s32.totalorder %v6116_v28, %v11712_v63  ;;  %vm6205_vm5 = vcmp.eq.s32.totalorder %v6100_v12, %v11712_v63  ;;  %v6118_v32 = vadd.s32 504, %v10297_v3 }
 0x550   :  { %vm9404_vm6 = vmpackc.low %vm6221_vm2, %vm6220_vm1  ;;  %v6101_v13 = vadd.s32 368, %v10297_v3  ;;  %v6102_v42 = vadd.s32 376, %v10297_v3  ;;  %v10155_v46 = vpack.i.bf16 %v12066_v55, %v12089_v6  ;;  %vm6222_vm9 = vcmp.eq.s32.totalorder %v6117_v38, %v11712_v63 }
 0x551   :  { %10141 = vrot.lane.b32.xlu0 %v10140_v30, %s10220_s14  ;;  %10151 = vrot.lane.b32.xlu1 %v10150_v8, %s10220_s14  ;;  %v12793_v30 = vmax.f32 %v12051_v23, 0.0  ;;  %vm9406_vm8 = vmpackc.low %vm6205_vm5, %vm6204_vm4  ;;  %vm6223_vm10 = vcmp.eq.s32.totalorder %v6118_v32, %v11712_v63  ;;  %v5832_v9 = vsel %vm836_vm3, %v10108_v2, %v12794_v49  ;;  %v5821_v25 = vsel %vm836_vm3, %v10089_v20, %v5781_v41 }
 0x552   :  { %9405 = vmatprep.subr.msk.bf16.mxu0 %vm9404_vm6, %v10225_v0  ;;  %vm6206_vm11 = vcmp.eq.s32.totalorder %v6101_v13, %v11712_v63  ;;  %vm6207_vm12 = vcmp.eq.s32.totalorder %v6102_v42, %v11712_v63  ;;  %vm9408_vm13 = vmpackc.low %vm6223_vm10, %vm6222_vm9  ;;  %v12812_v52 = vmax.f32 %v11669_v14, 0.0  ;;  %v12814_v36 = vmax.f32 %v11638_v40, 0.0 }
 0x553   :  { %9407 = vmatpush3.bf16.msk.msra.mxu0 %vm9406_vm8, %v10225_v0  ;;  %vm9410_vm14 = vmpackc.low %vm6207_vm12, %vm6206_vm11  ;;  %v6151_v20 = vadd.s32 768, %v10297_v3  ;;  %v6152_v26 = vadd.s32 776, %v10297_v3  ;;  %v12815_v14 = vmax.f32 %v11692_v11, 0.0  ;;  %v6119_v28 = vadd.s32 512, %v10297_v3 }
 0x554   :  { %9409 = vmatprep.subr.msk.bf16.mxu0 %vm9408_vm13, %v10225_v0  ;;  %v12122_v19 = vmax.f32 %v12812_v52, %v5832_v9  ;;  %v12126_v2 = vmax.f32 %v12814_v36, %v5821_v25  ;;  %v6120_v29 = vadd.s32 520, %v10297_v3  ;;  %v6137_v5 = vadd.s32 656, %v10297_v3 }
 0x555   :  { %10146 = vrot.lane.b32.xlu0 %v10145_v45, %s10220_s14  ;;  %5930 = vrot.lane.b32.xlu1 %v12073_v10, %s10220_s14  ;;  %v12137_v18 = vmax.f32 %v12815_v14, %v5781_v41  ;;  %vm6256_vm15 = vcmp.eq.s32.totalorder %v6151_v20, %v11712_v63  ;;  %vm6257_vm0 = vcmp.eq.s32.totalorder %v6152_v26, %v11712_v63  ;;  %v6138_v54 = vadd.s32 664, %v10297_v3 }
 0x556   :  { %12813 = vst [vmem:[#allocation9_spill] sm:$0xff] %v12122_v19  ;;  %vm12143_vm1 = vmpackc.low %vm6257_vm0, %vm6256_vm15  ;;  %v6121_v57 = vadd.s32 528, %v10297_v3  ;;  %vm6224_vm2 = vcmp.eq.s32.totalorder %v6119_v28, %v11712_v63  ;;  %vm6225_vm4 = vcmp.eq.s32.totalorder %v6120_v29, %v11712_v63  ;;  %v6122_v45 = vadd.s32 536, %v10297_v3 }
 0x557   :  { %9411 = vmatpush3.bf16.msk.msra.mxu0 %vm9410_vm14, %v10225_v0  ;;  %vm6242_vm5 = vcmp.eq.s32.totalorder %v6137_v5, %v11712_v63  ;;  %vm6243_vm6 = vcmp.eq.s32.totalorder %v6138_v54, %v11712_v63  ;;  %v6139_v51 = vadd.s32 672, %v10297_v3  ;;  %v6140_v41 = vadd.s32 680, %v10297_v3  ;;  %vm9414_vm9 = vmpackc.low %vm6225_vm4, %vm6224_vm2 }
 0x558   :  { %9445 = vmatprep.subr.msk.bf16.mxu0 %vm12143_vm1, %v10225_v0  ;;  %vm6226_vm8 = vcmp.eq.s32.totalorder %v6121_v57, %v11712_v63  ;;  %v6123_v38 = vadd.s32 544, %v10297_v3  ;;  %v6124_v32 = vadd.s32 552, %v10297_v3  ;;  %v6141_v42 = vadd.s32 688, %v10297_v3  ;;  %vm12202_vm10 = vmpackc.low %vm6243_vm6, %vm6242_vm5 }
 0x559   :  { %10156 = vrot.lane.b32.xlu0 %v10155_v46, %s10220_s14  ;;  %5808 = vrot.lane.b32.xlu1 %v12793_v30, %s10216_s0  ;;  %v6142_v46 = vadd.s32 696, %v10297_v3  ;;  %v12180_v9 = vadd.s32 560, %v10297_v3  ;;  %v12190_v36 = vadd.s32 568, %v10297_v3  ;;  %v12193_v20 = vadd.s32 704, %v10297_v3 }
 0x55a   :  { %v12196_v26 = vadd.s32 712, %v10297_v3  ;;  %vm6227_vm11 = vcmp.eq.s32.totalorder %v6122_v45, %v11712_v63  ;;  %vm6244_vm12 = vcmp.eq.s32.totalorder %v6139_v51, %v11712_v63  ;;  %v12209_v14 = vadd.s32 576, %v10297_v3 }
 0x55b   :  { %vm6245_vm13 = vcmp.eq.s32.totalorder %v6140_v41, %v11712_v63  ;;  %vm6228_vm14 = vcmp.eq.s32.totalorder %v6123_v38, %v11712_v63  ;;  %vm6229_vm15 = vcmp.eq.s32.totalorder %v6124_v32, %v11712_v63  ;;  %vm6246_vm0 = vcmp.eq.s32.totalorder %v6141_v42, %v11712_v63  ;;  %vm9418_vm5 = vmpackc.low %vm6227_vm11, %vm6226_vm8 }
 0x55c   :  { %vm6247_vm2 = vcmp.eq.s32.totalorder %v6142_v46, %v11712_v63  ;;  %vm6231_vm6 = vcmp.eq.s32.totalorder %v12190_v36, %v11712_v63  ;;  %vm6249_vm4 = vcmp.eq.s32.totalorder %v12196_v26, %v11712_v63  ;;  %v6154_v5 = vadd.s32 792, %v10297_v3 }
 0x55d   :  { %5968 = vrot.lane.b32.xlu0 %v12122_v19, %s10220_s14  ;;  %5942 = vrot.lane.b32.xlu1 %v12126_v2, %s10220_s14  ;;  %vm6232_vm8 = vcmp.eq.s32.totalorder %v12209_v14, %v11712_v63  ;;  %v12259_v57 = vadd.s32 592, %v10297_v3  ;;  %v12262_v45 = vadd.s32 600, %v10297_v3  ;;  %v12822_v19 = vmax.f32 %v11902_v15, 0.0 }
 0x561   :  { %5944 = vrot.lane.b32.xlu0 %v12137_v18, %s10220_s14 }
 0x5a3   :  { %v12150_v43 = vpop.permute.xlu0 %10111 }
 0x5a4   :  { %v12795_v11 = vunpack.i.h.bf16 %v12150_v43  ;;  %v10113_v8 = vunpack.i.l.bf16 %v12150_v43  ;;  %v12825_v24 = vunpack.i.h.bf16 %v12150_v43 }
 0x5a6   :  { %v5975_v62 = vsel %vm2480_vm7, %v10113_v8, %v12795_v11 }
 0x5a7   :  { %v6027_v17 = vmax.f32 %v11790_v34, %v5975_v62  ;;  %v12218_v62 = vadd.s32 720, %v10297_v3 }
 0x5a9   :  { %6441 = vmatprep.mubr.f32.mxu1 %v6027_v17  ;;  %v12226_v17 = vadd.s32 728, %v10297_v3 }
 0x5b3   :  { %v12163_v12 = vpop.permute.xlu1 %10116 }
 0x5b4   :  { %v10118_v34 = vunpack.i.l.bf16 %v12163_v12 }
 0x5b6   :  { %v5974_v13 = vsel %vm2480_vm7, %v10118_v34, %v10113_v8  ;;  %v12212_v8 = vadd.s32 584, %v10297_v3  ;;  %v10119_v34 = vunpack.i.h.bf16 %v12163_v12  ;;  %v12280_v12 = vadd.s32 608, %v10297_v3 }
 0x5b7   :  { %v6026_v25 = vmax.f32 %v11832_v35, %v5974_v13  ;;  %v12183_v52 = vpop.permute.xlu1 %10121  ;;  %v6153_v13 = vadd.s32 784, %v10297_v3  ;;  %v12277_v35 = vadd.s32 744, %v10297_v3 }
 0x5b8   :  { %vm6233_vm11 = vcmp.eq.s32.totalorder %v12212_v8, %v11712_v63  ;;  %v10124_v30 = vunpack.i.h.bf16 %v12183_v52  ;;  %v10123_v49 = vunpack.i.l.bf16 %v12183_v52  ;;  %v5976_v15 = vsel %vm2480_vm7, %v12825_v24, %v10119_v34 }
 0x5b9   :  { %6442 = vmatmul.mubr.f32.vlgmr.msra.gmra.mrb[20].mxu1 %v6026_v25  ;;  %v12274_v25 = vadd.s32 736, %v10297_v3  ;;  %v6133_v8 = vadd.s32 624, %v10297_v3 }
 0x5ba   :  { %9415 = vmatpush3.bf16.msk.msra.mxu1 %vm9414_vm9, %v10225_v0  ;;  %vm6248_vm9 = vcmp.eq.s32.totalorder %v12193_v20, %v11712_v63 }
 0x5bb   :  { %v12228_v28 = vpop.permute.xlu0 %10131  ;;  %v12230_v29 = vpop.permute.xlu1 %10126  ;;  %9417 = vmatprep.subr.msk.bf16.mxu1 %vm12202_vm10, %v10225_v0  ;;  %vm12250_vm10 = vmpackc.low %vm6245_vm13, %vm6244_vm12  ;;  %vm6250_vm12 = vcmp.eq.s32.totalorder %v12218_v62, %v11712_v63  ;;  %vm6259_vm13 = vcmp.eq.s32.totalorder %v6154_v5, %v11712_v63 }
 0x5bc   :  { %v12827_v32 = vunpack.i.h.bf16 %v12230_v29  ;;  %v12828_v42 = vunpack.i.l.bf16 %v12230_v29  ;;  %v12840_v40 = vunpack.i.l.bf16 %v12230_v29 }
 0x5be   :  { %9419 = vmatpush3.bf16.msk.msra.mxu1 %vm9418_vm5, %v10225_v0  ;;  %vm9422_vm5 = vmpackc.low %vm6229_vm15, %vm6228_vm14  ;;  %vm6234_vm14 = vcmp.eq.s32.totalorder %v12259_v57, %v11712_v63  ;;  %vm6235_vm15 = vcmp.eq.s32.totalorder %v12262_v45, %v11712_v63  ;;  %v5987_v46 = vsel %vm2480_vm7, %v12828_v42, %v12827_v32  ;;  %v6150_v42 = vadd.s32 760, %v10297_v3 }
 0x5bf   :  { %v12284_v41 = vpop.permute.xlu0 %10136  ;;  %v5795_v51 = vpop.permute.xlu1 %5794  ;;  %9421 = vmatprep.subr.msk.bf16.mxu1 %vm12250_vm10, %v10225_v0  ;;  %vm12307_vm10 = vmpackc.low %vm6247_vm2, %vm6246_vm0  ;;  %vm6258_vm0 = vcmp.eq.s32.totalorder %v6153_v13, %v11712_v63  ;;  %vm6373_vm2 = vcmask 1040384   ;;  %v6041_v20 = vmax.f32 %v11921_v39, %v5987_v46  ;;  %v12844_v57 = vmax.f32 %v11684_v22, 0.0 }
 0x5c0   :  { %v10139_v11 = vunpack.i.h.bf16 %v12284_v41  ;;  %v10138_v50 = vunpack.i.l.bf16 %v12284_v41  ;;  %v5827_v52 = vsel %vm836_vm3, %v10104_v53, %v5795_v51  ;;  %v12301_v1 = vmax.f32 %v12822_v19, %v5795_v51 }
 0x5c1   :  { %v12826_v53 = vmax.f32 %v11661_v4, 0.0  ;;  %v12829_v51 = vmov 0.0  }
 0x5c2   :  { %9423 = vmatpush3.bf16.msk.msra.mxu1 %vm9422_vm5, %v10225_v0  ;;  %5958 = vrot.lane.b32.xlu1 %v12301_v1, %s10220_s14  ;;  %v5981_v43 = vsel %vm2480_vm7, %v10139_v11, %v10123_v49  ;;  %v5977_v4 = vsel %vm2480_vm7, %v10119_v34, %v10138_v50  ;;  %v5980_v54 = vsel %vm2480_vm7, %v10124_v30, %v10139_v11 }
 0x5c3   :  { %v12320_v19 = vmax.f32 %v12826_v53, %v5827_v52  ;;  %v6359_v52 = vsel %vm6259_vm13, 1.0, %v12829_v51  ;;  %v12341_v24 = vpop.permute.xlu0 %10141  ;;  %v12345_v53 = vpop.permute.xlu1 %10151  ;;  %9425 = vmatprep.subr.msk.bf16.mxu1 %vm12307_vm10, %v10225_v0  ;;  %v6034_v30 = vmax.f32 %v11972_v33, %v5981_v43  ;;  %v6029_v11 = vmax.f32 %v11891_v27, %v5977_v4  ;;  %vm12368_vm10 = vmpackc.low %vm6249_vm4, %vm6248_vm9  ;;  %v6720_v43 = vld [vmem:[#allocation2 + $0x18] sm:$0xff] }
 0x5c4   :  { %vm12830_vm5 = vcmp.eq.s32.totalorder %v12180_v9, %v11712_v63  ;;  %v6033_v5 = vmax.f32 %v11837_v37, %v5980_v54  ;;  %v6028_v34 = vmax.f32 %v11794_v7, %v5976_v15  ;;  %v10144_v32 = vunpack.i.h.bf16 %v12341_v24  ;;  %vm12391_vm4 = vmpackc.low %vm6373_vm2, %vm6258_vm0 }
 0x5c5   :  { %5956 = vrot.lane.b32.xlu0 %v12320_v19, %s10220_s14  ;;  %vm9426_vm13 = vmpackc.low %vm6231_vm6, %vm12830_vm5  ;;  %v10143_v38 = vunpack.i.l.bf16 %v12341_v24  ;;  %v12373_v33 = vadd.s32 616, %v10297_v3  ;;  %v10154_v37 = vunpack.i.h.bf16 %v12345_v53  ;;  %6446 = vmatprep.mubr.f32.mxu1 %v6034_v30  ;;  %vm6253_vm6 = vcmp.eq.s32.totalorder %v12277_v35, %v11712_v63  ;;  %v6725_v24 = vld [vmem:[#allocation2 + $0x39] sm:$0xff] }
 0x5c6   :  { %6526 = vmatprep.mubr.f32.mxu0 %v6029_v11  ;;  %v12379_v7 = vadd.s32 752, %v10297_v3  ;;  %v10226_v9 = vmov 1.0   ;;  %9427 = vmatpush3.bf16.msk.msra.mxu1 %vm9426_vm13, %v10225_v0  ;;  %v10133_v4 = vunpack.i.l.bf16 %v12228_v28  ;;  %vm12408_vm9 = vmpackc.low %vm6233_vm11, %vm6232_vm8  ;;  %vm6236_vm0 = vcmp.eq.s32.totalorder %v12280_v12, %v11712_v63 }
 0x5c7   :  { %v9448_v36 = vpack.c.bf16 %v6359_v52, %v10226_v9  ;;  %6527 = vmatmul.mubr.f32.vlgmr.msra.gmra.mrb[30].mxu0 %v6028_v34  ;;  %v5983_v26 = vsel %vm2480_vm7, %v10143_v38, %v10144_v32  ;;  %v5982_v15 = vsel %vm2480_vm7, %v10123_v49, %v10143_v38  ;;  %6447 = vmatmul.mubr.f32.gmra.mrb[22].mxu1 %v6033_v5  ;;  %v10147_v54 = vpop.permute.xlu0 %10146  ;;  %v12396_v39 = vpop.permute.xlu1 %5930  ;;  %v10153_v52 = vunpack.i.l.bf16 %v12345_v53  ;;  %v6730_v53 = vld [vmem:[#allocation2 + $0x61] sm:$0x1] }
 0x5c8   :  { %9429 = vmatprep.subr.msk.bf16.mxu1 %vm12368_vm10, %v10225_v0  ;;  %v6036_v49 = vmax.f32 %v11979_v58, %v5983_v26  ;;  %v6035_v46 = vmax.f32 %v11841_v47, %v5982_v15  ;;  %v10149_v30 = vunpack.i.h.bf16 %v10147_v54  ;;  %v10148_v11 = vunpack.i.l.bf16 %v10147_v54  ;;  %6451 = vmatprep.mubr.f32.mxu1 %v6041_v20  ;;  %v6728_v58 = vld [vmem:[#allocation2 + $0x51] sm:$0xff] }
 0x5c9   :  { %vm12837_vm5 = vcmp.eq.s32.totalorder %v12226_v17, %v11712_v63  ;;  %vm6237_vm11 = vcmp.eq.s32.totalorder %v12373_v33, %v11712_v63  ;;  %9447 = vmatpush3.bf16.msk.msra.mxu0 %vm12143_vm1, %v10225_v0  ;;  %v10134_v47 = vunpack.i.h.bf16 %v12228_v28  ;;  %v5993_v14 = vsel %vm2480_vm7, %v10154_v37, %v10133_v4  ;;  %vm9434_vm1 = vmpackc.low %vm6235_vm15, %vm6234_vm14 }
 0x5ca   :  { %vm12422_vm8 = vmpackc.low %vm12837_vm5, %vm6250_vm12  ;;  %6531 = vmatprep.mubr.f32.mxu0 %v6036_v49  ;;  %vm6254_vm13 = vcmp.eq.s32.totalorder %v12379_v7, %v11712_v63  ;;  %9450 = vmatprep.subr.msk.bf16.mxu0 %vm12391_vm4, %v9448_v36  ;;  %v5986_v62 = vsel %vm2480_vm7, %v10148_v11, %v12840_v40  ;;  %v5989_v17 = vsel %vm2480_vm7, %v10149_v30, %v10153_v52  ;;  %v12841_v28 = vunpack.i.h.bf16 %v12230_v29  ;;  %v6722_v11 = vld [vmem:[#allocation2 + $0x28] sm:$0xff]  ;;  %v6729_v40 = vld [vmem:[#allocation2 + $0x59] sm:$0xff] }
 0x5cb   :  { %9431 = vmatpush3.bf16.msk.msra.mxu1 %vm12408_vm9, %v10225_v0  ;;  %6532 = vmatmul.mubr.f32.gmra.mrb[32].mxu0 %v6035_v46  ;;  %v6134_v34 = vadd.s32 632, %v10297_v3  ;;  %v10157_v38 = vpop.permute.xlu0 %10156  ;;  %v5809_v27 = vpop.permute.xlu1 %5808  ;;  %v6040_v9 = vmax.f32 %v12057_v59, %v5986_v62  ;;  %v6043_v20 = vmax.f32 %v12036_v44, %v5989_v17  ;;  %v5992_v3 = vsel %vm2480_vm7, %v10134_v47, %v10154_v37  ;;  %vm9438_vm15 = vmpackc.low %vm6237_vm11, %vm6236_vm0 }
 0x5cc   :  { %v5988_v5 = vsel %vm2480_vm7, %v12841_v28, %v10149_v30  ;;  %9433 = vmatprep.subr.msk.bf16.mxu1 %vm12422_vm8, %v10225_v0  ;;  %v10159_v26 = vunpack.i.h.bf16 %v10157_v38  ;;  %v10158_v15 = vunpack.i.l.bf16 %v10157_v38  ;;  %v12842_v54 = vunpack.i.h.bf16 %v11981_v48  ;;  %v6721_v30 = vld [vmem:[#allocation2 + $0x20] sm:$0xff] }
 0x5cd   :  { %v6042_v29 = vmax.f32 %v11929_v61, %v5988_v5  ;;  %v12843_v59 = vmax.f32 %v12051_v23, 0.0  ;;  %9453 = vmatpush3.bf16.msk.msra.mxu0 %vm12391_vm4, %v9448_v36  ;;  %6452 = vmatmul.mubr.f32.gmra.mrb[24].mxu1 %v6040_v9  ;;  %v6048_v61 = vmax.f32 %v12010_v16, %v5993_v14  ;;  %vm12845_vm12 = vcmp.eq.s32.totalorder %v12274_v25, %v11712_v63  ;;  %v6717_v36 = vld [vmem:[#allocation2] sm:$0xff]  ;;  %v12846_v5 = vld [vmem:[#allocation8_spill] sm:$0xff] }
 0x5ce   :  { %v5833_v49 = vsel %vm836_vm3, %v12842_v54, %v5809_v27  ;;  %6536 = vmatprep.mubr.f32.mxu0 %v6043_v20  ;;  %vm9436_vm3 = vmpackc.low %vm6253_vm6, %vm12845_vm12  ;;  %vm6255_vm14 = vcmp.eq.s32.totalorder %v6150_v42, %v11712_v63  ;;  %v5979_v22 = vsel %vm2480_vm7, %v10158_v15, %v12396_v39  ;;  %v6047_v16 = vmax.f32 %v11963_v60, %v5992_v3  ;;  %v6718_v42 = vld [vmem:[#allocation2 + $0x8] sm:$0xff] }
 0x5cf   :  { %v12469_v44 = vmax.f32 %v12843_v59, %v5809_v27  ;;  %v12475_v45 = vmax.f32 %v12844_v57, %v5833_v49  ;;  %9435 = vmatpush3.bf16.msk.msra.mxu1 %vm9434_vm1, %v10225_v0  ;;  %6456 = vmatprep.mubr.f32.mxu1 %v6048_v61  ;;  %v12490_v48 = vpop.permute.xlu0 %5968  ;;  %v6031_v23 = vmax.f32 %v12089_v6, %v5979_v22  ;;  %vm9440_vm10 = vmpackc.low %vm6255_vm14, %vm6254_vm13  ;;  %vm6360_vm9 = vcmask 203776  }
 0x5d0   :  { %6537 = vmatmul.mubr.f32.gmra.mrb[34].mxu0 %v6042_v29  ;;  %v5994_v25 = vsel %vm2480_vm7, %v10133_v4, %v10159_v26  ;;  %v5995_v35 = vsel %vm2480_vm7, %v10159_v26, %v12490_v48  ;;  %9437 = vmatprep.subr.msk.bf16.mxu1 %vm9436_vm3, %v10225_v0  ;;  %vm6238_vm6 = vcmp.eq.s32.totalorder %v6133_v8, %v11712_v63  ;;  %v6726_v4 = vld [vmem:[#allocation2 + $0x41] sm:$0xff]  ;;  %vm10228_vm5 = vmmov 0  }
 0x5d1   :  { %5972 = vrot.lane.b32.xlu0 %v12469_v44, %s10220_s14  ;;  %5970 = vrot.lane.b32.xlu1 %v12475_v45, %s10220_s14  ;;  %vm6239_vm4 = vcmp.eq.s32.totalorder %v6134_v34, %v11712_v63  ;;  %v6050_v60 = vmax.f32 %v12066_v55, %v5995_v35  ;;  %v6049_v6 = vmax.f32 %v11967_v31, %v5994_v25  ;;  %v5943_v55 = vpop.permute.xlu1 %5942  ;;  %v12847_v29 = vld [vmem:[#allocation9_spill] sm:$0xff]  ;;  %vm8164_vm8 = vcmask 74752  }
 0x5d2   :  { %6457 = vmatmul.mubr.f32.gmra.mrb[26].mxu1 %v6047_v16  ;;  %v6032_v12 = vmax.f32 %v12073_v10, %v12396_v39  ;;  %vm9442_vm0 = vmpackc.low %vm6239_vm4, %vm6238_vm6  ;;  %v5978_v63 = vsel %vm2480_vm7, %v10138_v50, %v10158_v15  ;;  %v5984_v7 = vsel %vm2480_vm7, %v10144_v32, %v5943_v55  ;;  %v6727_v39 = vld [vmem:[#allocation2 + $0x49] sm:$0xff]  ;;  %v9470_v8 = vpack.c.bf16 %v6722_v11, %v6721_v30 }
 0x5d3   :  { %9439 = vmatpush3.bf16.msk.msra.mxu1 %vm9438_vm15, %v10225_v0  ;;  %6611 = vmatprep.mubr.f32.mxu1 %v6031_v23  ;;  %v5945_v33 = vpop.permute.xlu0 %5944  ;;  %v6030_v10 = vmax.f32 %v11956_v56, %v5978_v63  ;;  %v6037_v50 = vmax.f32 %v11989_v21, %v5984_v7  ;;  %v6724_v56 = vld [vmem:[#allocation2 + $0x31] sm:$0xff]  ;;  %v9458_v13 = vpack.c.bf16 %v6727_v39, %v6726_v4 }
 0x5d4   :  { %6541 = vmatprep.mubr.f32.mxu0 %v6050_v60  ;;  %9441 = vmatprep.subr.msk.bf16.mxu1 %vm9440_vm10, %v10225_v0  ;;  %v5985_v37 = vsel %vm2480_vm7, %v5943_v55, %v5945_v33  ;;  %v6039_v31 = vmax.f32 %v12137_v18, %v5945_v33  ;;  %v10227_v18 = vmov 0.0|0.0   ;;  %v9455_v32 = vpack.c.bf16 %v6725_v24, %v6724_v56 }
 0x5d5   :  { %6542 = vmatmul.mubr.f32.gmra.mrb[36].mxu0 %v6049_v6  ;;  %v6038_v41 = vmax.f32 %v12126_v2, %v5985_v37  ;;  %9463 = vmatprep.subr.bf16.mxu0 %v10227_v18  ;;  %v6719_v2 = vld [vmem:[#allocation2 + $0x10] sm:$0xff]  ;;  %v9461_v28 = vpack.c.bf16 %v6729_v40, %v6728_v58 }
 0x5d6   :  { %8941 = vmatprep.mubr.msk.f32.mxu0 %vm6360_vm9, %v6032_v12  ;;  %v9467_v21 = vpack.c.bf16 %v6720_v43, %v6719_v2  ;;  %v6968_v43 = vld [vmem:[#allocation2 + $0x93] sm:$0xff] }
 0x5d7   :  { %9443 = vmatpush3.bf16.msk.msra.mxu1 %vm9442_vm0, %v10225_v0  ;;  %v9464_v0 = vpack.c.bf16 %v6718_v42, %v6717_v36 }
 0x5d8   :  { %9454 = vmatprep.subr.bf16.mxu1 %v10227_v18 }
 0x5d9   :  { %8942 = vmatmul.mubr.msk.f32.vlgmr.msra.gmra.mrb[38].mxu0 %vm6360_vm9, %v6039_v31 }
 0x5da   :  { %6612 = vmatmul.mubr.f32.vlgmr.msra.gmra.mrb[28].mxu1 %v6030_v10  ;;  %9465 = vmatpush3.bf16.msra.mxu0 %v9464_v0 }
 0x5db   :  { %6616 = vmatprep.mubr.f32.mxu1 %v6038_v41  ;;  %9456 = vmatpush3.bf16.msra.mxu1 %v9455_v32 }
 0x5dc   :  { %9466 = vmatprep.subr.bf16.mxu0 %v10227_v18  ;;  %9457 = vmatprep.subr.bf16.mxu1 %v10227_v18 }
 0x5de   :  { %6617 = vmatmul.mubr.f32.gmra.mrb[30].mxu1 %v6037_v50  ;;  %9468 = vmatpush3.bf16.msra.mxu0 %v9467_v21  ;;  %v6969_v21 = vld [vmem:[#allocation2 + $0x9b] sm:$0xff] }
 0x5df   :  { %9459 = vmatpush3.bf16.msra.mxu1 %v9458_v13  ;;  %9469 = vmatprep.subr.bf16.mxu0 %v10227_v18  ;;  %v6884_v13 = vld [vmem:[#allocation2 + $0x62] sm:$0xff]  ;;  %v9482_v11 = vpack.c.bf16 %v6969_v21, %v6968_v43 }
 0x5e0   :  { %9460 = vmatprep.subr.bf16.mxu1 %v10227_v18  ;;  %v7223_v43 = vld [vmem:[#allocation2 + $0x13e] sm:$0xff] }
 0x5e2   :  { %9471 = vmatpush3.bf16.msra.mxu0 %v9470_v8  ;;  %v6971_v8 = vld [vmem:[#allocation2 + $0xab] sm:$0xff] }
 0x5e3   :  { %9462 = vmatpush3.bf16.msra.mxu1 %v9461_v28  ;;  %8976 = vmatprep.subr.mxu0 %v12829_v51  ;;  %v6886_v28 = vld [vmem:[#allocation2 + $0x72] sm:$0xff] }
 0x5e4   :  { %8959 = vmatprep.subr.mxu1 %v12829_v51 }
 0x5e7   :  { %8960 = vmatpush3.msk.msra.mxu1 %vm6373_vm2, %v6730_v53  ;;  %v6973_v53 = vld [vmem:[#allocation2 + $0xbb] sm:$0xff] }
 0x5e8   :  { %9472 = vmatprep.subr.bf16.mxu1 %v10227_v18 }
 0x634   :  { %v5959_v46 = vpop.permute.xlu1 %5958 }
 0x635   :  { %v6046_v47 = vmax.f32 %v12301_v1, %v5959_v46  ;;  %v6723_v1 = vld [vmem:[#allocation2 + $0x30] sm:$0x1] }
 0x636   :  { %8977 = vmatpush3.msk.msra.mxu0 %vm6373_vm2, %v6723_v1  ;;  %v6972_v1 = vld [vmem:[#allocation2 + $0xb3] sm:$0xff] }
 0x637   :  { %v5957_v14 = vpop.permute.xlu0 %5956  ;;  %8944 = vmatprep.mubr.msk.f32.mxu0 %vm6360_vm9, %v6046_v47  ;;  %9481 = vmatprep.subr.bf16.mxu0 %v10227_v18 }
 0x638   :  { %v5990_v62 = vsel %vm2480_vm7, %v10153_v52, %v5957_v14  ;;  %v5991_v17 = vsel %vm2480_vm7, %v5957_v14, %v5959_v46  ;;  %v6885_v46 = vld [vmem:[#allocation2 + $0x6a] sm:$0xff] }
 0x639   :  { %v6044_v34 = vmax.f32 %v12846_v5, %v5990_v62  ;;  %v6045_v38 = vmax.f32 %v12320_v19, %v5991_v17  ;;  %v6970_v14 = vld [vmem:[#allocation2 + $0xa3] sm:$0xff]  ;;  %v9473_v40 = vpack.c.bf16 %v6885_v46, %v6884_v13  ;;  %v6887_v5 = vld [vmem:[#allocation2 + $0x7a] sm:$0xff] }
 0x63a   :  { %v7224_v46 = vld [vmem:[#allocation2 + $0x146] sm:$0xff] }
 0x63b   :  { %6621 = vmatprep.mubr.f32.mxu1 %v6045_v38 }
 0x63c   :  { %6622 = vmatmul.mubr.f32.gmra.mrb[32].mxu1 %v6044_v34  ;;  %v9485_v34 = vpack.c.bf16 %v6971_v8, %v6970_v14  ;;  %v7473_v14 = vld [vmem:[#allocation2 + $0x1c1] sm:$0xff] }
 0x63d   :  { %v7310_v8 = vld [vmem:[#allocation2 + $0x187] sm:$0x1] }
 0x643   :  { %v5973_v19 = vpop.permute.xlu0 %5972  ;;  %v5971_v27 = vpop.permute.xlu1 %5970 }
 0x644   :  { %v6053_v52 = vmax.f32 %v12469_v44, %v5973_v19  ;;  %v5996_v9 = vsel %vm2480_vm7, %v12490_v48, %v5971_v27  ;;  %v5997_v20 = vsel %vm2480_vm7, %v5971_v27, %v5973_v19  ;;  %vm6733_vm7 = vcmask 400384   ;;  %v6889_v27 = vld [vmem:[#allocation2 + $0x8a] sm:$0xff] }
 0x645   :  { %v6051_v3 = vmax.f32 %v12847_v29, %v5996_v9  ;;  %v6052_v26 = vmax.f32 %v12475_v45, %v5997_v20  ;;  %v9476_v19 = vpack.c.bf16 %v6887_v5, %v6886_v28  ;;  %v9488_v9 = vpack.c.bf16 %v6973_v53, %v6972_v1  ;;  %v7136_v29 = vld [vmem:[#allocation2 + $0xf5] sm:$0xff] }
 0x646   :  { %8945 = vmatmul.mubr.msk.f32.gmra.mrb[40].mxu0 %vm6360_vm9, %v6053_v52  ;;  %v6888_v52 = vld [vmem:[#allocation2 + $0x82] sm:$0xff]  ;;  %v7226_v5 = vld [vmem:[#allocation2 + $0x156] sm:$0x1] }
 0x647   :  { %8978 = vmatprep.mubr.msk.f32.mxu0 %vm10228_vm5, %v12829_v51  ;;  %6626 = vmatprep.mubr.f32.mxu1 %v6052_v26  ;;  %v9479_v20 = vpack.c.bf16 %v6889_v27, %v6888_v52  ;;  %v6974_v26 = vld [vmem:[#allocation2 + $0xc3] sm:$0x1]  ;;  %v7475_v1 = vld [vmem:[#allocation2 + $0x1d1] sm:$0xff] }
 0x648   :  { %6627 = vmatmul.mubr.f32.gmra.mrb[34].mxu1 %v6051_v3  ;;  %v7137_v3 = vld [vmem:[#allocation2 + $0xfd] sm:$0xff] }
 0x649   :  { %8961 = vmatprep.mubr.msk.f32.mxu1 %vm10228_vm5, %v12829_v51  ;;  %v7390_v52 = vld [vmem:[#allocation2 + $0x198] sm:$0xff]  ;;  %v7391_v27 = vld [vmem:[#allocation2 + $0x1a0] sm:$0xff] }
 0x68c   :  { %v8641_v15 = vpop.f32.mrb[20].mxu1 }
 0x68d   :  { %v8642_v54 = vpop.f32.mrb[21].mxu1 }
 0x68e   :  { %v8643_v49 = vadd.f32 %v8642_v54, %v8641_v15  ;;  %v7052_v15 = vld [vmem:[#allocation2 + $0xc4] sm:$0xff]  ;;  %v7053_v54 = vld [vmem:[#allocation2 + $0xcc] sm:$0xff] }
 0x69a   :  { %v8685_v59 = vpop.f32.mrb[30].mxu0  ;;  %v8644_v44 = vpop.f32.mrb[22].mxu1 }
 0x69b   :  { %v8686_v57 = vpop.f32.mrb[31].mxu0  ;;  %v8645_v61 = vpop.f32.mrb[23].mxu1 }
 0x69c   :  { %v8687_v22 = vadd.f32 %v8686_v57, %v8685_v59  ;;  %v8646_v48 = vadd.f32 %v8645_v61, %v8644_v44  ;;  %v6890_v44 = vld [vmem:[#allocation2 + $0x92] sm:$0x1]  ;;  %v7138_v57 = vld [vmem:[#allocation2 + $0x105] sm:$0xff] }
 0x69d   :  { %v7139_v61 = vld [vmem:[#allocation2 + $0x10d] sm:$0xff] }
 0x69e   :  { %v6529_v16 = vadd.f32 %v8687_v22, %v8643_v49  ;;  %v8688_v45 = vpop.f32.mrb[32].mxu0  ;;  %v9500_v49 = vpack.c.bf16 %v7137_v3, %v7136_v29  ;;  %v9491_v22 = vpack.c.bf16 %v7053_v54, %v7052_v15  ;;  %v7477_v29 = vld [vmem:[#allocation2 + $0x1e1] sm:$0xff]  ;;  %v9530_v3 = vpack.c.bf16 %v7391_v27, %v7390_v52 }
 0x69f   :  { %v8689_v23 = vpop.f32.mrb[33].mxu0  ;;  %v7813_v52 = vld [vmem:[#allocation2 + $0x2a5] sm:$0xff] }
 0x6a0   :  { %v8690_v25 = vadd.f32 %v8689_v23, %v8688_v45  ;;  %v8647_v35 = vpop.f32.mrb[24].mxu1  ;;  %v7055_v45 = vld [vmem:[#allocation2 + $0xdc] sm:$0xff]  ;;  %v9503_v23 = vpack.c.bf16 %v7139_v61, %v7138_v57 }
 0x6a1   :  { %v8648_v6 = vpop.f32.mrb[25].mxu1 }
 0x6a2   :  { %v6534_v60 = vadd.f32 %v8690_v25, %v8646_v48  ;;  %v8649_v12 = vadd.f32 %v8648_v6, %v8647_v35  ;;  %v7140_v25 = vld [vmem:[#allocation2 + $0x115] sm:$0xff]  ;;  %v7141_v35 = vld [vmem:[#allocation2 + $0x11d] sm:$0xff] }
 0x6a3   :  { %v8691_v33 = vpop.f32.mrb[34].mxu0  ;;  %v7056_v6 = vld [vmem:[#allocation2 + $0xe4] sm:$0xff] }
 0x6a4   :  { %v8692_v63 = vpop.f32.mrb[35].mxu0 }
 0x6a5   :  { %v8693_v55 = vadd.f32 %v8692_v63, %v8691_v33  ;;  %v8650_v37 = vpop.f32.mrb[26].mxu1  ;;  %v9506_v33 = vpack.c.bf16 %v7141_v35, %v7140_v25  ;;  %v7641_v25 = vld [vmem:[#allocation2 + $0x223] sm:$0xff] }
 0x6a6   :  { %v8651_v31 = vpop.f32.mrb[27].mxu1 }
 0x6a7   :  { %v12562_v10 = vadd.f32 %v8693_v55, %v8649_v12  ;;  %v8652_v7 = vadd.f32 %v8651_v31, %v8650_v37  ;;  %v7057_v12 = vld [vmem:[#allocation2 + $0xec] sm:$0xff]  ;;  %v7304_v55 = vld [vmem:[#allocation2 + $0x157] sm:$0xff]  ;;  %v7305_v37 = vld [vmem:[#allocation2 + $0x15f] sm:$0xff] }
 0x6a8   :  { %v8694_v41 = vpop.f32.mrb[36].mxu0  ;;  %v9497_v63 = vpack.c.bf16 %v7057_v12, %v7056_v6  ;;  %v7142_v31 = vld [vmem:[#allocation2 + $0x125] sm:$0x1]  ;;  %v7558_v12 = vld [vmem:[#allocation2 + $0x1fa] sm:$0xff] }
 0x6a9   :  { %v8695_v50 = vpop.f32.mrb[37].mxu0 }
 0x6aa   :  { %v8696_v36 = vadd.f32 %v8695_v50, %v8694_v41  ;;  %v7221_v41 = vld [vmem:[#allocation2 + $0x12e] sm:$0xff]  ;;  %v9518_v50 = vpack.c.bf16 %v7305_v37, %v7304_v55 }
 0x6ac   :  { %v12564_v42 = vadd.f32 %v8696_v36, %v8652_v7  ;;  %v8943_v0 = vpop.f32.mrb[38].mxu0  ;;  %v7220_v7 = vld [vmem:[#allocation2 + $0x126] sm:$0xff] }
 0x6ad   :  { %v8729_v56 = vpop.f32.mrb[28].mxu1  ;;  %v6698_v24 = vpop.f32.mrb[39].mxu0 }
 0x6ae   :  { %v8730_v32 = vpop.f32.mrb[29].mxu1 }
 0x6af   :  { %v8731_v2 = vadd.f32 %v8730_v32, %v8729_v56  ;;  %v7306_v56 = vld [vmem:[#allocation2 + $0x167] sm:$0xff]  ;;  %v9509_v32 = vpack.c.bf16 %v7221_v41, %v7220_v7  ;;  %v7643_v7 = vld [vmem:[#allocation2 + $0x233] sm:$0xff] }
 0x6b1   :  { %v6614_v4 = vadd.f32 %v8731_v2, %v6529_v16  ;;  %v8732_v39 = vpop.f32.mrb[30].mxu1  ;;  %v7054_v16 = vld [vmem:[#allocation2 + $0xd4] sm:$0xff] }
 0x6b2   :  { %v8733_v30 = vpop.f32.mrb[31].mxu1  ;;  %v7222_v2 = vld [vmem:[#allocation2 + $0x136] sm:$0xff] }
 0x6b3   :  { %v6699_v58 = vadd.f32 %v6698_v24, %v6614_v4  ;;  %v8734_v47 = vadd.f32 %v8733_v30, %v8732_v39  ;;  %v7307_v24 = vld [vmem:[#allocation2 + $0x16f] sm:$0xff]  ;;  %v7308_v4 = vld [vmem:[#allocation2 + $0x177] sm:$0xff]  ;;  %v7309_v39 = vld [vmem:[#allocation2 + $0x17f] sm:$0xff]  ;;  %v9512_v13 = vpack.c.bf16 %v7223_v43, %v7222_v2 }
 0x6b4   :  { %v9521_v21 = vpack.c.bf16 %v7307_v24, %v7306_v56  ;;  %v7225_v30 = vld [vmem:[#allocation2 + $0x14e] sm:$0xff]  ;;  %v7645_v2 = vld [vmem:[#allocation2 + $0x243] sm:$0xff] }
 0x6b5   :  { %v6732_v62 = vrot.slane %v6699_v58, 2  ;;  %v6619_v17 = vadd.f32 %v8734_v47, %v6534_v60  ;;  %8979 = vmatmul.mubr.msk.f32.vlgmr.msra.gmra.mrb[42].mxu0 %vm6733_vm7, %v6699_v58  ;;  %v6975_v59 = vrot.slane %v6699_v58, 6  ;;  %v6891_v48 = vrot.slane %v6699_v58, 4  ;;  %v7472_v47 = vld [vmem:[#allocation2 + $0x1b9] sm:$0xff] }
 0x6b6   :  { %9483 = vmatpush3.bf16.msra.mxu0 %v9482_v11  ;;  %9012 = vmatprep.mubr.msk.f32.mxu0 %vm10228_vm5, %v12829_v51  ;;  %v9494_v60 = vpack.c.bf16 %v7055_v45, %v7054_v16  ;;  %v9524_v11 = vpack.c.bf16 %v7309_v39, %v7308_v4  ;;  %v9515_v58 = vpack.c.bf16 %v7225_v30, %v7224_v46  ;;  %v7557_v16 = vld [vmem:[#allocation2 + $0x1f2] sm:$0xff]  ;;  %v7808_v46 = vld [vmem:[#allocation2 + $0x27d] sm:$0xff]  ;;  %v7809_v30 = vld [vmem:[#allocation2 + $0x285] sm:$0xff] }
 0x6b7   :  { %v12569_v38 = vadd.f32 %v8943_v0, %v6619_v17  ;;  %8962 = vmatmul.mubr.msk.f32.vlgmr.msra.gmra.mrb[36].mxu1 %vm6733_vm7, %v6732_v62  ;;  %9484 = vmatprep.subr.bf16.mxu0 %v10227_v18  ;;  %v7058_v0 = vld [vmem:[#allocation2 + $0xf4] sm:$0x1]  ;;  %v9536_v17 = vpack.c.bf16 %v7473_v14, %v7472_v47  ;;  %v7724_v39 = vld [vmem:[#allocation2 + $0x24c] sm:$0xff]  ;;  %v7646_v47 = vld [vmem:[#allocation2 + $0x24b] sm:$0x1] }
 0x6b8   :  { %9474 = vmatpush3.bf16.msra.mxu1 %v9473_v40  ;;  %8995 = vmatprep.mubr.msk.f32.mxu1 %vm10228_vm5, %v12829_v51  ;;  %v7388_v40 = vld [vmem:[#allocation2 + $0x188] sm:$0xff]  ;;  %v7389_v62 = vld [vmem:[#allocation2 + $0x190] sm:$0xff]  ;;  %v7726_v14 = vld [vmem:[#allocation2 + $0x25c] sm:$0xff] }
 0x6b9   :  { %9475 = vmatprep.subr.bf16.mxu1 %v10227_v18  ;;  %v7143_v36 = vrot.slane %v12569_v38, 2  ;;  %v7311_v28 = vrot.slane %v12569_v38, 6  ;;  %v9527_v53 = vpack.c.bf16 %v7389_v62, %v7388_v40  ;;  %v9572_v40 = vpack.c.bf16 %v7809_v30, %v7808_v46  ;;  %v8077_v46 = vld [vmem:[%s12773_s8 + $0x48] sm:$0xff] }
 0x6ba   :  { %9486 = vmatpush3.bf16.msra.mxu0 %v9485_v34  ;;  %v7474_v34 = vld [vmem:[#allocation2 + $0x1c9] sm:$0xff] }
 0x6bb   :  { %9487 = vmatprep.subr.bf16.mxu0 %v10227_v18 }
 0x6bc   :  { %9477 = vmatpush3.bf16.msra.mxu1 %v9476_v19  ;;  %v7227_v19 = vrot.slane %v12569_v38, 4 }
 0x6bd   :  { %9478 = vmatprep.subr.bf16.mxu1 %v10227_v18 }
 0x6be   :  { %9489 = vmatpush3.bf16.msra.mxu0 %v9488_v9  ;;  %v9539_v9 = vpack.c.bf16 %v7475_v1, %v7474_v34  ;;  %v7728_v34 = vld [vmem:[#allocation2 + $0x26c] sm:$0xff]  ;;  %v7729_v1 = vld [vmem:[#allocation2 + $0x274] sm:$0xff] }
 0x6bf   :  { %9010 = vmatprep.subr.mxu0 %v12829_v51  ;;  %v9569_v27 = vpack.c.bf16 %v7729_v1, %v7728_v34  ;;  %v8081_v34 = vld [vmem:[%s12773_s8 + $0x68] sm:$0xff] }
 0x6c0   :  { %9480 = vmatpush3.bf16.msra.mxu1 %v9479_v20  ;;  %v7476_v20 = vld [vmem:[#allocation2 + $0x1d9] sm:$0xff] }
 0x6c1   :  { %8993 = vmatprep.subr.mxu1 %v12829_v51  ;;  %v9542_v15 = vpack.c.bf16 %v7477_v29, %v7476_v20  ;;  %v7892_v20 = vld [vmem:[#allocation2 + $0x2ae] sm:$0xff]  ;;  %v7893_v29 = vld [vmem:[#allocation2 + $0x2b6] sm:$0xff] }
 0x6c2   :  { %9011 = vmatpush3.msk.msra.mxu0 %vm6373_vm2, %v6974_v26  ;;  %v7393_v26 = vld [vmem:[#allocation2 + $0x1b0] sm:$0xff] }
 0x6c3   :  { %9013 = vmatmul.mubr.msk.f32.vlgmr.msra.gmra.mrb[44].mxu0 %vm6733_vm7, %v6975_v59  ;;  %9499 = vmatprep.subr.bf16.mxu0 %v10227_v18  ;;  %v7394_v59 = vld [vmem:[#allocation2 + $0x1b8] sm:$0x1] }
 0x6c4   :  { %8994 = vmatpush3.msk.msra.mxu1 %vm6373_vm2, %v6890_v44  ;;  %9501 = vmatpush3.bf16.msra.mxu0 %v9500_v49  ;;  %v7478_v49 = vld [vmem:[#allocation2 + $0x1e9] sm:$0x1] }
 0x6c5   :  { %8996 = vmatmul.mubr.msk.f32.vlgmr.msra.gmra.mrb[38].mxu1 %vm6733_vm7, %v6891_v48  ;;  %9490 = vmatprep.subr.bf16.mxu1 %v10227_v18  ;;  %v7556_v48 = vld [vmem:[#allocation2 + $0x1ea] sm:$0xff] }
 0x6c6   :  { %9492 = vmatpush3.bf16.msra.mxu1 %v9491_v22  ;;  %9502 = vmatprep.subr.bf16.mxu0 %v10227_v18 }
 0x6c7   :  { %9493 = vmatprep.subr.bf16.mxu1 %v10227_v18  ;;  %9046 = vmatprep.mubr.msk.f32.mxu0 %vm10228_vm5, %v12829_v51 }
 0x6c8   :  { %9504 = vmatpush3.bf16.msra.mxu0 %v9503_v23  ;;  %9029 = vmatprep.mubr.msk.f32.mxu1 %vm10228_vm5, %v12829_v51  ;;  %v7640_v23 = vld [vmem:[#allocation2 + $0x21b] sm:$0xff] }
 0x6c9   :  { %9505 = vmatprep.subr.bf16.mxu0 %v10227_v18 }
 0x6ca   :  { %9495 = vmatpush3.bf16.msra.mxu1 %v9494_v60  ;;  %v9545_v60 = vpack.c.bf16 %v7557_v16, %v7556_v48  ;;  %v7896_v16 = vld [vmem:[#allocation2 + $0x2ce] sm:$0xff] }
 0x6cb   :  { %9496 = vmatprep.subr.bf16.mxu1 %v10227_v18 }
 0x6cc   :  { %9507 = vmatpush3.bf16.msra.mxu0 %v9506_v33  ;;  %v7559_v33 = vld [vmem:[#allocation2 + $0x202] sm:$0xff] }
 0x6cd   :  { %9044 = vmatprep.subr.mxu0 %v12829_v51 }
 0x6ce   :  { %9498 = vmatpush3.bf16.msra.mxu1 %v9497_v63  ;;  %v9554_v63 = vpack.c.bf16 %v7641_v25, %v7640_v23  ;;  %v7980_v25 = vld [vmem:[#allocation2 + $0x2ff] sm:$0xff] }
 0x6cf   :  { %9027 = vmatprep.subr.mxu1 %v12829_v51 }
 0x6d0   :  { %9045 = vmatpush3.msk.msra.mxu0 %vm6373_vm2, %v7142_v31  ;;  %v7642_v31 = vld [vmem:[#allocation2 + $0x22b] sm:$0xff] }
 0x6d1   :  { %9047 = vmatmul.mubr.msk.f32.vlgmr.msra.gmra.mrb[46].mxu0 %vm6733_vm7, %v7143_v36  ;;  %9517 = vmatprep.subr.bf16.mxu0 %v10227_v18  ;;  %v7560_v36 = vld [vmem:[#allocation2 + $0x20a] sm:$0xff]  ;;  %v9557_v56 = vpack.c.bf16 %v7643_v7, %v7642_v31 }
 0x6d2   :  { %9028 = vmatpush3.msk.msra.mxu1 %vm6373_vm2, %v7058_v0  ;;  %9519 = vmatpush3.bf16.msra.mxu0 %v9518_v50  ;;  %v7561_v0 = vld [vmem:[#allocation2 + $0x212] sm:$0xff]  ;;  %v8069_v31 = vld [vmem:[%s12773_s8 + $0x8] sm:$0xff] }
 0x6d3   :  { %9030 = vmatmul.mubr.msk.f32.vlgmr.msra.gmra.mrb[40].mxu1 %vm6733_vm7, %v12569_v38  ;;  %9508 = vmatprep.subr.bf16.mxu1 %v10227_v18  ;;  %v7392_v38 = vld [vmem:[#allocation2 + $0x1a8] sm:$0xff]  ;;  %v9551_v43 = vpack.c.bf16 %v7561_v0, %v7560_v36  ;;  %v8070_v7 = vld [vmem:[%s12773_s8 + $0x10] sm:$0xff] }
 0x6d4   :  { %9510 = vmatpush3.bf16.msra.mxu1 %v9509_v32  ;;  %9520 = vmatprep.subr.bf16.mxu0 %v10227_v18  ;;  %v9533_v54 = vpack.c.bf16 %v7393_v26, %v7392_v38  ;;  %v7644_v32 = vld [vmem:[#allocation2 + $0x23b] sm:$0xff]  ;;  %v7977_v26 = vld [vmem:[#allocation2 + $0x2e7] sm:$0xff] }
 0x6d5   :  { %9511 = vmatprep.subr.bf16.mxu1 %v10227_v18  ;;  %9080 = vmatprep.mubr.msk.f32.mxu0 %vm10228_vm5, %v12829_v51  ;;  %v9560_v4 = vpack.c.bf16 %v7645_v2, %v7644_v32  ;;  %v7976_v38 = vld [vmem:[#allocation2 + $0x2df] sm:$0xff] }
 0x6d6   :  { %9522 = vmatpush3.bf16.msra.mxu0 %v9521_v21  ;;  %9063 = vmatprep.mubr.msk.f32.mxu1 %vm10228_vm5, %v12829_v51  ;;  %v8072_v2 = vld [vmem:[%s12773_s8 + $0x20] sm:$0xff] }
 0x6d7   :  { %9523 = vmatprep.subr.bf16.mxu0 %v10227_v18 }
 0x6d8   :  { %9513 = vmatpush3.bf16.msra.mxu1 %v9512_v13  ;;  %v7725_v13 = vld [vmem:[#allocation2 + $0x254] sm:$0xff] }
 0x6d9   :  { %9514 = vmatprep.subr.bf16.mxu1 %v10227_v18 }
 0x6da   :  { %9525 = vmatpush3.bf16.msra.mxu0 %v9524_v11  ;;  %v9563_v11 = vpack.c.bf16 %v7725_v13, %v7724_v39  ;;  %v8075_v39 = vld [vmem:[%s12773_s8 + $0x38] sm:$0xff] }
 0x6db   :  { %9078 = vmatprep.subr.mxu0 %v12829_v51 }
 0x6dc   :  { %9516 = vmatpush3.bf16.msra.mxu1 %v9515_v58 }
 0x6dd   :  { %9061 = vmatprep.subr.mxu1 %v12829_v51 }
 0x6de   :  { %9079 = vmatpush3.msk.msra.mxu0 %vm6373_vm2, %v7310_v8  ;;  %v7727_v8 = vld [vmem:[#allocation2 + $0x264] sm:$0xff] }
 0x6df   :  { %9081 = vmatmul.mubr.msk.f32.vlgmr.msra.gmra.mrb[48].mxu0 %vm6733_vm7, %v7311_v28  ;;  %9535 = vmatprep.subr.bf16.mxu0 %v10227_v18  ;;  %v7811_v28 = vld [vmem:[#allocation2 + $0x295] sm:$0xff] }
 0x6e0   :  { %9062 = vmatpush3.msk.msra.mxu1 %vm6373_vm2, %v7226_v5  ;;  %9537 = vmatpush3.bf16.msra.mxu0 %v9536_v17  ;;  %v7810_v17 = vld [vmem:[#allocation2 + $0x28d] sm:$0xff]  ;;  %v9566_v5 = vpack.c.bf16 %v7727_v8, %v7726_v14 }
 0x6e1   :  { %9064 = vmatmul.mubr.msk.f32.vlgmr.msra.gmra.mrb[42].mxu1 %vm6733_vm7, %v7227_v19  ;;  %9526 = vmatprep.subr.bf16.mxu1 %v10227_v18  ;;  %v7812_v19 = vld [vmem:[#allocation2 + $0x29d] sm:$0xff] }
 0x6e2   :  { %9528 = vmatpush3.bf16.msra.mxu1 %v9527_v53  ;;  %9538 = vmatprep.subr.bf16.mxu0 %v10227_v18  ;;  %v9575_v53 = vpack.c.bf16 %v7811_v28, %v7810_v17 }
 0x6e3   :  { %9529 = vmatprep.subr.bf16.mxu1 %v10227_v18  ;;  %9097 = vmatprep.mubr.msk.f32.mxu1 %vm10228_vm5, %v12829_v51 }
 0x6e4   :  { %9540 = vmatpush3.bf16.msra.mxu0 %v9539_v9  ;;  %9114 = vmatprep.mubr.msk.f32.mxu0 %vm10228_vm5, %v12829_v51  ;;  %v9578_v9 = vpack.c.bf16 %v7813_v52, %v7812_v19 }
 0x6e5   :  { %9541 = vmatprep.subr.bf16.mxu0 %v10227_v18 }
 0x6e6   :  { %9531 = vmatpush3.bf16.msra.mxu1 %v9530_v3  ;;  %v7730_v3 = vld [vmem:[#allocation2 + $0x27c] sm:$0x1] }
 0x6e7   :  { %9532 = vmatprep.subr.bf16.mxu1 %v10227_v18 }
 0x6e8   :  { %9543 = vmatpush3.bf16.msra.mxu0 %v9542_v15  ;;  %v9581_v15 = vpack.c.bf16 %v7893_v29, %v7892_v20 }
 0x6e9   :  { %9112 = vmatprep.subr.mxu0 %v12829_v51 }
 0x6ea   :  { %9534 = vmatpush3.bf16.msra.mxu1 %v9533_v54  ;;  %v7814_v54 = vld [vmem:[#allocation2 + $0x2ad] sm:$0x1] }
 0x6eb   :  { %9095 = vmatprep.subr.mxu1 %v12829_v51 }
 0x6ec   :  { %9113 = vmatpush3.msk.msra.mxu0 %vm6373_vm2, %v7478_v49  ;;  %v7894_v49 = vld [vmem:[#allocation2 + $0x2be] sm:$0xff] }
 0x6ed   :  { %9553 = vmatprep.subr.bf16.mxu0 %v10227_v18 }
 0x6ee   :  { %9096 = vmatpush3.msk.msra.mxu1 %vm6373_vm2, %v7394_v59  ;;  %v7895_v59 = vld [vmem:[#allocation2 + $0x2c6] sm:$0xff] }
 0x6ef   :  { %9544 = vmatprep.subr.bf16.mxu1 %v10227_v18  ;;  %v9584_v48 = vpack.c.bf16 %v7895_v59, %v7894_v49 }
 0x70f   :  { %v8735_v44 = vpop.f32.mrb[32].mxu1 }
 0x710   :  { %v8736_v57 = vpop.f32.mrb[33].mxu1 }
 0x711   :  { %v8737_v61 = vadd.f32 %v8736_v57, %v8735_v44  ;;  %v9590_v44 = vpack.c.bf16 %v7977_v26, %v7976_v38 }
 0x713   :  { %v6624_v22 = vadd.f32 %v8737_v61, %v12562_v10  ;;  %v9548_v10 = vpack.c.bf16 %v7559_v33, %v7558_v12  ;;  %v7978_v61 = vld [vmem:[#allocation2 + $0x2ef] sm:$0xff]  ;;  %v7898_v12 = vld [vmem:[#allocation2 + $0x2de] sm:$0x1] }
 0x719   :  { %v8946_v45 = vpop.f32.mrb[40].mxu0 }
 0x71a   :  { %v6708_v35 = vpop.f32.mrb[41].mxu0 }
 0x71b   :  { %v6709_v6 = vadd.f32 %v6708_v35, %v6624_v22  ;;  %v8738_v37 = vpop.f32.mrb[34].mxu1  ;;  %v7979_v22 = vld [vmem:[#allocation2 + $0x2f7] sm:$0xff]  ;;  %v7981_v35 = vld [vmem:[#allocation2 + $0x307] sm:$0xff] }
 0x71c   :  { %v8739_v41 = vpop.f32.mrb[35].mxu1  ;;  %v9593_v23 = vpack.c.bf16 %v7979_v22, %v7978_v61 }
 0x71d   :  { %v7479_v55 = vrot.slane %v6709_v6, 2  ;;  %9098 = vmatmul.mubr.msk.f32.vlgmr.msra.gmra.mrb[44].mxu1 %vm6733_vm7, %v6709_v6  ;;  %v8740_v50 = vadd.f32 %v8739_v41, %v8738_v37  ;;  %v7563_v58 = vrot.slane %v6709_v6, 4  ;;  %v7647_v62 = vrot.slane %v6709_v6, 6  ;;  %v8068_v37 = vld [vmem:[%s12773_s8] sm:$0xff] }
 0x71e   :  { %9546 = vmatpush3.bf16.msra.mxu1 %v9545_v60  ;;  %9131 = vmatprep.mubr.msk.f32.mxu1 %vm10228_vm5, %v12829_v51  ;;  %v9596_v6 = vpack.c.bf16 %v7981_v35, %v7980_v25  ;;  %v9599_v41 = vpack.c.bf16 %v8069_v31, %v8068_v37 }
 0x71f   :  { %9115 = vmatmul.mubr.msk.f32.vlgmr.msra.gmra.mrb[50].mxu0 %vm6733_vm7, %v7479_v55  ;;  %9547 = vmatprep.subr.bf16.mxu1 %v10227_v18  ;;  %v6629_v24 = vadd.f32 %v8740_v50, %v12564_v42  ;;  %v7562_v42 = vld [vmem:[#allocation2 + $0x21a] sm:$0x1] }
 0x720   :  { %9555 = vmatpush3.bf16.msra.mxu0 %v9554_v63  ;;  %9148 = vmatprep.mubr.msk.f32.mxu0 %vm10228_vm5, %v12829_v51  ;;  %v7982_v63 = vld [vmem:[#allocation2 + $0x30f] sm:$0x1] }
 0x721   :  { %9556 = vmatprep.subr.bf16.mxu0 %v10227_v18  ;;  %v12646_v21 = vadd.f32 %v8946_v45, %v6629_v24  ;;  %v7897_v45 = vld [vmem:[#allocation2 + $0x2d6] sm:$0xff] }
 0x722   :  { %9549 = vmatpush3.bf16.msra.mxu1 %v9548_v10  ;;  %v9587_v60 = vpack.c.bf16 %v7897_v45, %v7896_v16  ;;  %v8071_v10 = vld [vmem:[%s12773_s8 + $0x18] sm:$0xff] }
 0x723   :  { %9550 = vmatprep.subr.bf16.mxu1 %v10227_v18  ;;  %v7815_v57 = vrot.slane %v12646_v21, 2  ;;  %v7899_v33 = vrot.slane %v12646_v21, 4  ;;  %v7983_v55 = vrot.slane %v12646_v21, 6  ;;  %v9602_v50 = vpack.c.bf16 %v8071_v10, %v8070_v7 }
 0x724   :  { %9558 = vmatpush3.bf16.msra.mxu0 %v9557_v56 }
 0x725   :  { %9559 = vmatprep.subr.bf16.mxu0 %v10227_v18 }
 0x726   :  { %9552 = vmatpush3.bf16.msra.mxu1 %v9551_v43  ;;  %v8073_v43 = vld [vmem:[%s12773_s8 + $0x28] sm:$0xff] }
 0x727   :  { %9129 = vmatprep.subr.mxu1 %v12829_v51 }
 0x728   :  { %9561 = vmatpush3.bf16.msra.mxu0 %v9560_v4  ;;  %v8074_v4 = vld [vmem:[%s12773_s8 + $0x30] sm:$0xff] }
 0x729   :  { %9146 = vmatprep.subr.mxu0 %v12829_v51  ;;  %v9608_v13 = vpack.c.bf16 %v8075_v39, %v8074_v4 }
 0x72a   :  { %9130 = vmatpush3.msk.msra.mxu1 %vm6373_vm2, %v7562_v42  ;;  %v8076_v42 = vld [vmem:[%s12773_s8 + $0x40] sm:$0xff] }
 0x72b   :  { %9132 = vmatmul.mubr.msk.f32.vlgmr.msra.gmra.mrb[46].mxu1 %vm6733_vm7, %v7563_v58  ;;  %9562 = vmatprep.subr.bf16.mxu1 %v10227_v18  ;;  %v9611_v30 = vpack.c.bf16 %v8077_v46, %v8076_v42  ;;  %v8079_v58 = vld [vmem:[%s12773_s8 + $0x58] sm:$0xff] }
 0x72c   :  { %9147 = vmatpush3.msk.msra.mxu0 %vm6373_vm2, %v7646_v47  ;;  %9564 = vmatpush3.bf16.msra.mxu1 %v9563_v11  ;;  %v8078_v11 = vld [vmem:[%s12773_s8 + $0x50] sm:$0xff] }
 0x72d   :  { %9149 = vmatmul.mubr.msk.f32.vlgmr.msra.gmra.mrb[52].mxu0 %vm6733_vm7, %v7647_v62  ;;  %9571 = vmatprep.subr.bf16.mxu0 %v10227_v18  ;;  %v9614_v14 = vpack.c.bf16 %v8079_v58, %v8078_v11 }
 0x72e   :  { %9573 = vmatpush3.bf16.msra.mxu0 %v9572_v40  ;;  %9565 = vmatprep.subr.bf16.mxu1 %v10227_v18 }
 0x72f   :  { %9574 = vmatprep.subr.bf16.mxu0 %v10227_v18  ;;  %9165 = vmatprep.mubr.msk.f32.mxu1 %vm10228_vm5, %v12829_v51 }
 0x730   :  { %9567 = vmatpush3.bf16.msra.mxu1 %v9566_v5  ;;  %9182 = vmatprep.mubr.msk.f32.mxu0 %vm10228_vm5, %v12829_v51  ;;  %v8080_v5 = vld [vmem:[%s12773_s8 + $0x60] sm:$0xff] }
 0x731   :  { %9568 = vmatprep.subr.bf16.mxu1 %v10227_v18  ;;  %v9617_v1 = vpack.c.bf16 %v8081_v34, %v8080_v5 }
 0x732   :  { %9576 = vmatpush3.bf16.msra.mxu0 %v9575_v53  ;;  %v8082_v53 = vld [vmem:[%s12773_s8 + $0x70] sm:$0xff] }
 0x733   :  { %9577 = vmatprep.subr.bf16.mxu0 %v10227_v18 }
 0x734   :  { %9570 = vmatpush3.bf16.msra.mxu1 %v9569_v27 }
 0x735   :  { %9163 = vmatprep.subr.mxu1 %v12829_v51 }
 0x736   :  { %9579 = vmatpush3.bf16.msra.mxu0 %v9578_v9 }
 0x737   :  { %9180 = vmatprep.subr.mxu0 %v12829_v51 }
 0x738   :  { %9164 = vmatpush3.msk.msra.mxu1 %vm6373_vm2, %v7730_v3 }
 0x739   :  { %9166 = vmatmul.mubr.msk.f32.vlgmr.msra.gmra.mrb[48].mxu1 %vm6733_vm7, %v12646_v21  ;;  %9580 = vmatprep.subr.bf16.mxu1 %v10227_v18  ;;  %v9605_v21 = vpack.c.bf16 %v8073_v43, %v8072_v2 }
 0x73a   :  { %9181 = vmatpush3.msk.msra.mxu0 %vm6373_vm2, %v7814_v54  ;;  %9582 = vmatpush3.bf16.msra.mxu1 %v9581_v15 }
 0x73b   :  { %9183 = vmatmul.mubr.msk.f32.vlgmr.msra.gmra.mrb[54].mxu0 %vm6733_vm7, %v7815_v57  ;;  %9589 = vmatprep.subr.bf16.mxu0 %v10227_v18 }
 0x73c   :  { %9591 = vmatpush3.bf16.msra.mxu0 %v9590_v44  ;;  %9583 = vmatprep.subr.bf16.mxu1 %v10227_v18 }
 0x73d   :  { %9592 = vmatprep.subr.bf16.mxu0 %v10227_v18  ;;  %9199 = vmatprep.mubr.msk.f32.mxu1 %vm10228_vm5, %v12829_v51 }
 0x73e   :  { %9585 = vmatpush3.bf16.msra.mxu1 %v9584_v48  ;;  %9216 = vmatprep.mubr.msk.f32.mxu0 %vm10228_vm5, %v12829_v51 }
 0x73f   :  { %9586 = vmatprep.subr.bf16.mxu1 %v10227_v18 }
 0x740   :  { %9594 = vmatpush3.bf16.msra.mxu0 %v9593_v23 }
 0x741   :  { %9595 = vmatprep.subr.bf16.mxu0 %v10227_v18 }
 0x742   :  { %9588 = vmatpush3.bf16.msra.mxu1 %v9587_v60 }
 0x743   :  { %9197 = vmatprep.subr.mxu1 %v12829_v51 }
 0x744   :  { %9597 = vmatpush3.bf16.msra.mxu0 %v9596_v6 }
 0x745   :  { %9214 = vmatprep.subr.mxu0 %v12829_v51 }
 0x746   :  { %9198 = vmatpush3.msk.msra.mxu1 %vm6373_vm2, %v7898_v12 }
 0x747   :  { %9200 = vmatmul.mubr.msk.f32.vlgmr.msra.gmra.mrb[50].mxu1 %vm6733_vm7, %v7899_v33  ;;  %9598 = vmatprep.subr.bf16.mxu1 %v10227_v18 }
 0x748   :  { %9215 = vmatpush3.msk.msra.mxu0 %vm6373_vm2, %v7982_v63  ;;  %9249 = vmatprep.mubr.msk.f32.mxu1 %vm10228_vm5, %v12829_v51  ;;  %vm8090_vm2 = vcmask 982016  }
 0x749   :  { %9217 = vmatmul.mubr.msk.f32.vlgmr.msra.gmra.mrb[56].mxu0 %vm6733_vm7, %v7983_v55  ;;  %9600 = vmatpush3.bf16.msra.mxu1 %v9599_v41  ;;  %v8582_v41 = vld [vmem:[%s12772_s7] ss:$0 sm:$0xff] }
 0x74a   :  { %9601 = vmatprep.subr.bf16.mxu1 %v10227_v18 }
 0x74d   :  { %9603 = vmatpush3.bf16.msra.mxu1 %v9602_v50 }
 0x74e   :  { %9604 = vmatprep.subr.bf16.mxu1 %v10227_v18 }
 0x751   :  { %9606 = vmatpush3.bf16.msra.mxu1 %v9605_v21 }
 0x752   :  { %9607 = vmatprep.subr.bf16.mxu1 %v10227_v18 }
 0x755   :  { %9609 = vmatpush3.bf16.msra.mxu1 %v9608_v13 }
 0x756   :  { %9610 = vmatprep.subr.bf16.mxu1 %v10227_v18 }
 0x759   :  { %9612 = vmatpush3.bf16.msra.mxu1 %v9611_v30 }
 0x75a   :  { %9613 = vmatprep.subr.bf16.mxu1 %v10227_v18 }
 0x75d   :  { %9615 = vmatpush3.bf16.msra.mxu1 %v9614_v14 }
 0x75e   :  { %9616 = vmatprep.subr.bf16.mxu1 %v10227_v18 }
 0x761   :  { %9618 = vmatpush3.bf16.msra.mxu1 %v9617_v1 }
 0x762   :  { %9247 = vmatprep.subr.mxu1 %v12829_v51 }
 0x765   :  { %9248 = vmatpush3.msra.mxu1 %v8082_v53 }
 0x788   :  { %v6880_v36 = vpop.f32.mrb[42].mxu0 }
 0x789   :  { %v8980_v0 = vpop.f32.mrb[43].mxu0 }
 0x78a   :  { %v6805_v56 = vpop.f32.mrb[36].mxu1  ;;  %v8583_v0 = vld [vmem:[%s12774_s9] ss:$0 sm:$0xff] }
 0x78b   :  { %v6881_v24 = vadd.f32 %v6880_v36, %v6805_v56  ;;  %v8963_v32 = vpop.f32.mrb[37].mxu1 }
 0x796   :  { %v7047_v47 = vpop.f32.mrb[44].mxu0 }
 0x797   :  { %v9014_v8 = vpop.f32.mrb[45].mxu0 }
 0x798   :  { %v6963_v40 = vpop.f32.mrb[38].mxu1 }
 0x799   :  { %v6967_v62 = vadd.f32 %v6963_v40, %v6881_v24  ;;  %v8997_v17 = vpop.f32.mrb[39].mxu1 }
 0x79b   :  { %v7051_v28 = vadd.f32 %v7047_v47, %v6967_v62 }
 0x7a4   :  { %v7215_v19 = vpop.f32.mrb[46].mxu0 }
 0x7a5   :  { %v9048_v52 = vpop.f32.mrb[47].mxu0 }
 0x7a6   :  { %v7131_v18 = vpop.f32.mrb[40].mxu1 }
 0x7a7   :  { %v7135_v27 = vadd.f32 %v7131_v18, %v7051_v28  ;;  %v9031_v9 = vpop.f32.mrb[41].mxu1 }
 0x7a9   :  { %v7219_v20 = vadd.f32 %v7215_v19, %v7135_v27 }
 0x7b2   :  { %v7383_v29 = vpop.f32.mrb[48].mxu0 }
 0x7b3   :  { %v9082_v3 = vpop.f32.mrb[49].mxu0 }
 0x7b4   :  { %v7299_v38 = vpop.f32.mrb[42].mxu1 }
 0x7b5   :  { %v7303_v26 = vadd.f32 %v7299_v38, %v7219_v20  ;;  %v9065_v15 = vpop.f32.mrb[43].mxu1 }
 0x7b7   :  { %v7387_v54 = vadd.f32 %v7383_v29, %v7303_v26 }
 0x7f0   :  { %v7467_v49 = vpop.f32.mrb[44].mxu1 }
 0x7f1   :  { %v7471_v59 = vadd.f32 %v7467_v49, %v7387_v54  ;;  %v9099_v51 = vpop.f32.mrb[45].mxu1 }
 0x7f2   :  { %v7551_v44 = vpop.f32.mrb[50].mxu0 }
 0x7f3   :  { %v7555_v57 = vadd.f32 %v7551_v44, %v7471_v59  ;;  %v9116_v61 = vpop.f32.mrb[51].mxu0 }
 0x7fe   :  { %v7635_v22 = vpop.f32.mrb[46].mxu1 }
 0x7ff   :  { %v7639_v48 = vadd.f32 %v7635_v22, %v7555_v57  ;;  %v9133_v16 = vpop.f32.mrb[47].mxu1 }
 0x800   :  { %v7719_v45 = vpop.f32.mrb[52].mxu0 }
 0x801   :  { %v7723_v23 = vadd.f32 %v7719_v45, %v7639_v48  ;;  %v9150_v25 = vpop.f32.mrb[53].mxu0 }
 0x80c   :  { %v7803_v35 = vpop.f32.mrb[48].mxu1 }
 0x80d   :  { %v7807_v60 = vadd.f32 %v7803_v35, %v7723_v23  ;;  %v9167_v6 = vpop.f32.mrb[49].mxu1 }
 0x80e   :  { %v7887_v12 = vpop.f32.mrb[54].mxu0 }
 0x80f   :  { %v7891_v33 = vadd.f32 %v7887_v12, %v7807_v60  ;;  %v9184_v63 = vpop.f32.mrb[55].mxu0 }
 0x81a   :  { %v7971_v55 = vpop.f32.mrb[50].mxu1 }
 0x81b   :  { %v7975_v37 = vadd.f32 %v7971_v55, %v7891_v33  ;;  %v9201_v31 = vpop.f32.mrb[51].mxu1 }
 0x81c   :  { %v8055_v7 = vpop.f32.mrb[56].mxu0 }
 0x81d   :  { %v8059_v10 = vadd.f32 %v8055_v7, %v7975_v37  ;;  %v9218_v50 = vpop.f32.mrb[57].mxu0 }
 0x81f   :  { %v8067_v36 = vadd.f32 %v8582_v41, %v8059_v10 }
 0x821   :  { %9250 = vmatmul.mubr.msk.f32.vlgmr.msra.gmra.mrb[52].mxu1 %vm8090_vm2, %v8067_v36 }
 0x8f4   :  { %v8160_v56 = vpop.f32.mrb[52].mxu1 }
 0x8f5   :  { %v8161_v24 = vadd.f32 %v8583_v0, %v8160_v56  ;;  %v9251_v32 = vpop.f32.mrb[53].mxu1 }
 0x8f7   :  { %8165 = vst.msk [vmem:[#allocation5] sm:$0x3] %vm8164_vm8, %v8161_v24 }
 0x8f8   :  { %10195 = shalt.err (!%p10192_p12)
}
 0x8f9   :  { %s10196_s11 = scalar_lea.hbm %s12775_s10, 32 }
 0x8fa   :  { %p10197_p13 = scmp.ne.s32.totalorder %s12775_s10, %s10196_s11  ;;  %p10200_p0 = scmp.lt.u32.totalorder %s10196_s11, %s12775_s10 }
 0x8fc   :  { %p10202_p1 = pnand %p10200_p0, %p10197_p13 }
 0x8fe   :  { %10205 = shalt.err (!%p10202_p1)
}
 0x8ff   :  { %8175 = dma.vmem_to_hbm [thread:$0]  %s8173_s20, 32, %s12775_s10, [#allocation4]  }
 0x900   :  { %10208 = dma.done.wait [#allocation4], 32  }
 0x901   :  { %10209 = vsyncadd [#allocation4], 4294967264 }
 0x902   :  { %8179 = vsyncpa [#allocation3], 1 }
 0x903   :  { %8180 = vsyncpa [#allocation4], 1 }

</bundles_post_ra>
